<compile_context>
chip_gen: v6e
topology: v6e:2x2x1
jax: 0.10.0
libtpu: 0.0.40
codegen_flags: <defaults>
</compile_context>

<pallas_src>
import jax
import jax.numpy as jnp
from jax.experimental import pallas as pl
from jax.experimental.pallas import tpu as pltpu

# ----------------------- synthetic model configuration -----------------------
B           = 2                 # batch
C           = 3                 # image channels
IMG         = 16                # spatial size (stand-in for 224)
PATCH       = 4                 # patch size (stand-in for 16)
HIDDEN      = 32                # hidden size
HEADS       = 4
HEAD_DIM    = HIDDEN // HEADS
LAYERS      = 2
MLP_DIM     = 4 * HIDDEN
NUM_CLASSES = 8
N_PATCHES   = (IMG // PATCH) ** 2
SEQ         = N_PATCHES + 1     # +1 CLS token  (= 17)
S_PAD       = 24                # SEQ padded to a sublane-friendly multiple of 8
BS          = B * S_PAD         # batch folded onto the sublane axis (= 48)
CPP         = C * PATCH * PATCH
LN_EPS      = 1e-12             # BEiT layer_norm_eps
LAYER_SCALE = 0.1               # BEiT layer_scale_init_value
ATTN_SCALE  = HEAD_DIM ** -0.5
NEG_INF     = -1e9              # mask value for padded keys / cross-batch blocks


# ------------------------------- Pallas kernel --------------------------------

def _fused_forward_kernel(
        patches_ref, pw_ref, pb_ref, cls_ref,
        ln1g_ref, ln1b_ref, wqkv_ref, bqkv_ref, relb_ref,
        wo_ref, bo_ref, lam1_ref, ln2g_ref, ln2b_ref,
        w1_ref, b1_ref, w2_ref, b2_ref, lam2_ref,
        poolm_ref, poolg_ref, poolb_ref, clfw_ref, clfb_ref,
        o_ref, h_scratch):
    """Whole UnsupBEiTSeqCLF forward for the full batch, fully resident in VMEM."""

    def layernorm(x, g, b):
        mu = jnp.mean(x, axis=-1, keepdims=True)
        var = jnp.mean((x - mu) ** 2, axis=-1, keepdims=True)
        return (x - mu) * jax.lax.rsqrt(var + LN_EPS) * g + b

    # --- patch embedding (pixel normalization pre-folded into pw/pb) + CLS + zero pad ---
    emb = jnp.dot(patches_ref[...], pw_ref[...],
                  preferred_element_type=jnp.float32) + pb_ref[...]      # (B*NP, D)
    h_scratch[...] = jnp.zeros_like(h_scratch)
    for b in range(B):                                  # static slice stores, no concat
        r0 = b * S_PAD
        h_scratch[r0:r0 + 1, :] = cls_ref[...]
        h_scratch[r0 + 1:r0 + 1 + N_PATCHES, :] = emb[b * N_PATCHES:(b + 1) * N_PATCHES, :]
    h = h_scratch[...]                                  # (B*S_PAD, D), batch on sublanes

    # --- encoder layers, statically unrolled, all weights VMEM-resident ---
    for l in range(LAYERS):
        # attention block
        hn = layernorm(h, ln1g_ref[l], ln1b_ref[l])
        qkv = jnp.dot(hn, wqkv_ref[l],
                      preferred_element_type=jnp.float32) + bqkv_ref[l]  # (BS, 3D) head-major
        wo_l = wo_ref[l]
        attn = jnp.zeros((BS, HIDDEN), jnp.float32)
        for hd in range(HEADS):
            base = 3 * HEAD_DIM * hd                    # contiguous [q|k|v] window per head
            qh = qkv[:, base:base + HEAD_DIM]           # ATTN_SCALE already folded into Wq
            kh = qkv[:, base + HEAD_DIM:base + 2 * HEAD_DIM]
            vh = qkv[:, base + 2 * HEAD_DIM:base + 3 * HEAD_DIM]
            s = jax.lax.dot_general(qh, kh, (((1,), (1,)), ((), ())),
                                    preferred_element_type=jnp.float32)  # (BS, BS)
            # bias carries rel-pos + padded-key mask + cross-batch block mask
            s = s + relb_ref[l * HEADS + hd]
            s = s - jnp.max(s, axis=-1, keepdims=True)
            p = jnp.exp(s)
            p = p / jnp.sum(p, axis=-1, keepdims=True)
            ctx_h = jnp.dot(p, vh, preferred_element_type=jnp.float32)   # (BS, HEAD_DIM)
            # per-head accumulation through sublane-aligned Wo rows: no lane concat
            attn = attn + jnp.dot(ctx_h, wo_l[hd * HEAD_DIM:(hd + 1) * HEAD_DIM, :],
                                  preferred_element_type=jnp.float32)
        h = h + lam1_ref[l] * (attn + bo_ref[l])        # layer-scale residual

        # MLP block
        hn2 = layernorm(h, ln2g_ref[l], ln2b_ref[l])
        mid = jnp.dot(hn2, w1_ref[l],
                      preferred_element_type=jnp.float32) + b1_ref[l]
        # TODO(synk): HF BEiT uses exact erf GELU; tanh approximation kept for Mosaic-safe lowering.
        mid = jax.nn.gelu(mid, approximate=True)
        mlp = jnp.dot(mid, w2_ref[l],
                      preferred_element_type=jnp.float32) + b2_ref[l]
        h = h + lam2_ref[l] * mlp

    # --- pooler: masked mean over patch tokens via one (B, BS) matmul -> LN -> classifier ---
    pooled = jnp.dot(poolm_ref[...], h, preferred_element_type=jnp.float32)   # (B, D)
    pn = layernorm(pooled, poolg_ref[...], poolb_ref[...])
    o_ref[...] = jnp.dot(pn, clfw_ref[...],
                         preferred_element_type=jnp.float32) + clfb_ref[...]


def fused_forward(patches, p):
    full = lambda *shape: pl.BlockSpec(shape, lambda i: (0,) * len(shape))
    in_specs = [
        full(B * N_PATCHES, CPP),            # patches
        full(CPP, HIDDEN),                   # patch_w_eff
        full(1, HIDDEN),                     # patch_b_eff
        full(1, HIDDEN),                     # cls_token
        full(LAYERS, 1, HIDDEN),             # ln1_g
        full(LAYERS, 1, HIDDEN),             # ln1_b
        full(LAYERS, HIDDEN, 3 * HIDDEN),    # wqkv (head-major, Q pre-scaled)
        full(LAYERS, 1, 3 * HIDDEN),         # bqkv
        full(LAYERS * HEADS, BS, BS),        # rel-pos bias (+ pad / cross-batch masks)
        full(LAYERS, HIDDEN, HIDDEN),        # wo
        full(LAYERS, 1, HIDDEN),             # bo
        full(LAYERS, 1, HIDDEN),             # lambda_1
        full(LAYERS, 1, HIDDEN),             # ln2_g
        full(LAYERS, 1, HIDDEN),             # ln2_b
        full(LAYERS, HIDDEN, MLP_DIM),       # w1
        full(LAYERS, 1, MLP_DIM),            # b1
        full(LAYERS, MLP_DIM, HIDDEN),       # w2
        full(LAYERS, 1, HIDDEN),             # b2
        full(LAYERS, 1, HIDDEN),             # lambda_2
        full(B, BS),                         # pooling matrix
        full(1, HIDDEN),                     # pool_g
        full(1, HIDDEN),                     # pool_b
        full(HIDDEN, NUM_CLASSES),           # clf_w
        full(1, NUM_CLASSES),                # clf_b
    ]
    return pl.pallas_call(
        _fused_forward_kernel,
        out_shape=jax.ShapeDtypeStruct((B, NUM_CLASSES), jnp.float32),
        grid=(1,),
        in_specs=in_specs,
        out_specs=pl.BlockSpec((B, NUM_CLASSES), lambda i: (0, 0)),
        scratch_shapes=[pltpu.VMEM((BS, HIDDEN), jnp.float32)],
        compiler_params=pltpu.CompilerParams(dimension_semantics=("arbitrary",)),
    )(patches, p["patch_w_eff"], p["patch_b_eff"], p["cls_token"],
      p["ln1_g"], p["ln1_b"], p["wqkv"], p["bqkv"], p["rel_bias"],
      p["wo"], p["bo"], p["lambda_1"], p["ln2_g"], p["ln2_b"],
      p["w1"], p["b1"], p["w2"], p["b2"], p["lambda_2"],
      p["pool_m"], p["pool_g"], p["pool_b"], p["clf_w"], p["clf_b"])


# ------------------------------ parameter setup ------------------------------

def init_params(key):
    def nrm(k, shape, scale=0.02):
        return scale * jax.random.normal(k, shape, dtype=jnp.float32)

    keys = jax.random.split(key, 8 + LAYERS)

    patch_w = nrm(keys[0], (CPP, HIDDEN))
    patch_b = jnp.zeros((HIDDEN,), jnp.float32)
    # Fold feature-extractor normalization (x-0.5)/0.5 = 2x-1 into the patch matmul:
    #   (2x-1) @ W + b == x @ (2W) + (b - 1^T W)
    patch_w_eff = 2.0 * patch_w
    patch_b_eff = (patch_b - jnp.sum(patch_w, axis=0)).reshape(1, HIDDEN)

    # pooling matrix: mean over patch tokens (excl. CLS and pad) for each batch element
    pool_m = jnp.zeros((B, BS), jnp.float32)
    for b in range(B):
        pool_m = pool_m.at[b, b * S_PAD + 1:b * S_PAD + 1 + N_PATCHES].set(1.0 / N_PATCHES)

    params = {
        "patch_w_eff": patch_w_eff,
        "patch_b_eff": patch_b_eff,
        "cls_token": nrm(keys[1], (1, HIDDEN)),
        "pool_m": pool_m,
        "pool_g": jnp.ones((1, HIDDEN), jnp.float32),
        "pool_b": jnp.zeros((1, HIDDEN), jnp.float32),
        "clf_w": nrm(keys[2], (HIDDEN, NUM_CLASSES)),
        "clf_b": jnp.zeros((1, NUM_CLASSES), jnp.float32),
    }

    per_layer = {name: [] for name in
                 ("ln1_g", "ln1_b", "wqkv", "bqkv", "rel_bias", "wo", "bo",
                  "lambda_1", "ln2_g", "ln2_b", "w1", "b1", "w2", "b2", "lambda_2")}

    for l in range(LAYERS):
        lk = jax.random.split(keys[8 + l], 10)
        wq = nrm(lk[0], (HIDDEN, HIDDEN))
        wk = nrm(lk[1], (HIDDEN, HIDDEN))          # BEiT: K projection has no bias
        wv = nrm(lk[2], (HIDDEN, HIDDEN))
        bq = jnp.zeros((HIDDEN,), jnp.float32)
        bv = jnp.zeros((HIDDEN,), jnp.float32)

        # head-major fused QKV ([q_h | k_h | v_h] per head), ATTN_SCALE folded into Q columns
        w_cols, b_cols = [], []
        for hd in range(HEADS):
            sl = slice(hd * HEAD_DIM, (hd + 1) * HEAD_DIM)
            w_cols += [ATTN_SCALE * wq[:, sl], wk[:, sl], wv[:, sl]]
            b_cols += [ATTN_SCALE * bq[sl], jnp.zeros((HEAD_DIM,), jnp.float32), bv[sl]]
        wqkv = jnp.concatenate(w_cols, axis=1)                     # (D, 3D)
        bqkv = jnp.concatenate(b_cols).reshape(1, 3 * HIDDEN)

        # per-layer relative-position bias, materialized (H, SEQ, SEQ)
        # (real BEiT gathers it from a bucketed table; the gather stays host-side).
        # Baked-in masks for the (B*S_PAD, B*S_PAD) batched-attention tile:
        #   * padded KEY columns  -> -1e9  (softmax ignores pad tokens)
        #   * cross-batch blocks  -> -1e9  (batch folded onto the sublane axis)
        #   * padded QUERY rows   -> finite bias so their softmax stays defined (rows unused)
        rel_raw = nrm(lk[4], (HEADS, SEQ, SEQ))
        blk = jnp.full((HEADS, S_PAD, S_PAD), NEG_INF, jnp.float32)
        blk = blk.at[:, :, :SEQ].set(0.0)
        blk = blk.at[:, :SEQ, :SEQ].set(rel_raw)
        big = jnp.full((HEADS, BS, BS), NEG_INF, jnp.float32)
        for b in range(B):
            r0 = b * S_PAD
            big = big.at[:, r0:r0 + S_PAD, r0:r0 + S_PAD].set(blk)

        per_layer["ln1_g"].append(jnp.ones((1, HIDDEN), jnp.float32))
        per_layer["ln1_b"].append(jnp.zeros((1, HIDDEN), jnp.float32))
        per_layer["wqkv"].append(wqkv)
        per_layer["bqkv"].append(bqkv)
        per_layer["rel_bias"].append(big)
        per_layer["wo"].append(nrm(lk[3], (HIDDEN, HIDDEN)))
        per_layer["bo"].append(jnp.zeros((1, HIDDEN), jnp.float32))
        per_layer["lambda_1"].append(jnp.full((1, HIDDEN), LAYER_SCALE, jnp.float32))
        per_layer["ln2_g"].append(jnp.ones((1, HIDDEN), jnp.float32))
        per_layer["ln2_b"].append(jnp.zeros((1, HIDDEN), jnp.float32))
        per_layer["w1"].append(nrm(lk[5], (HIDDEN, MLP_DIM)))
        per_layer["b1"].append(jnp.zeros((1, MLP_DIM), jnp.float32))
        per_layer["w2"].append(nrm(lk[6], (MLP_DIM, HIDDEN)))
        per_layer["b2"].append(jnp.zeros((1, HIDDEN), jnp.float32))
        per_layer["lambda_2"].append(jnp.full((1, HIDDEN), LAYER_SCALE, jnp.float32))

    for name, vals in per_layer.items():
        params[name] = jnp.stack(vals, axis=0)
    params["rel_bias"] = params["rel_bias"].reshape(LAYERS * HEADS, BS, BS)
    return params


# --------------------------------- forward -----------------------------------

def beit_seq_clf_forward(x, params):
    """x: float32 NCHW images (B, C, IMG, IMG) in [0,1] -> logits (B, NUM_CLASSES)."""
    # TODO(synk): BeitFeatureExtractor's bicubic 224x224 resize has no clean Pallas
    #             equivalent; synthetic inputs are already at the model resolution.
    nh = nw = IMG // PATCH
    patches = x.reshape(B, C, nh, PATCH, nw, PATCH)
    patches = patches.transpose(0, 2, 4, 1, 3, 5).reshape(B * N_PATCHES, CPP)
    # whole forward (embed + all encoder layers + pooler/classifier) in ONE pallas_call
    return fused_forward(patches, params)


# ----------------------------------- main -------------------------------------

if __name__ == "__main__":
    root = jax.random.PRNGKey(0)
    k_x, k_p = jax.random.split(root)
    # synthetic image batch in [0, 1], NCHW like the PyTorch module expects
    x = jax.random.uniform(k_x, (B, C, IMG, IMG), dtype=jnp.float32)
    params = init_params(k_p)

    fwd = jax.jit(beit_seq_clf_forward)
    logits = jax.block_until_ready(fwd(x, params))
    assert logits.shape == (B, NUM_CLASSES)
    assert bool(jnp.all(jnp.isfinite(logits)))
    print("KERNEL_OK")
</pallas_src>

<mosaic_0001>
module attributes {stable_mosaic.version = 11 : i64} {
  func.func @_fused_forward_kernel(%arg0: i32, %arg1: memref<32x48xf32, #tpu.memory_space<vmem>>, %arg2: memref<48x32xf32, #tpu.memory_space<vmem>>, %arg3: memref<1x32xf32, #tpu.memory_space<vmem>>, %arg4: memref<1x32xf32, #tpu.memory_space<vmem>>, %arg5: memref<2x1x32xf32, #tpu.memory_space<vmem>>, %arg6: memref<2x1x32xf32, #tpu.memory_space<vmem>>, %arg7: memref<2x32x96xf32, #tpu.memory_space<vmem>>, %arg8: memref<2x1x96xf32, #tpu.memory_space<vmem>>, %arg9: memref<8x48x48xf32, #tpu.memory_space<vmem>>, %arg10: memref<2x32x32xf32, #tpu.memory_space<vmem>>, %arg11: memref<2x1x32xf32, #tpu.memory_space<vmem>>, %arg12: memref<2x1x32xf32, #tpu.memory_space<vmem>>, %arg13: memref<2x1x32xf32, #tpu.memory_space<vmem>>, %arg14: memref<2x1x32xf32, #tpu.memory_space<vmem>>, %arg15: memref<2x32x128xf32, #tpu.memory_space<vmem>>, %arg16: memref<2x1x128xf32, #tpu.memory_space<vmem>>, %arg17: memref<2x128x32xf32, #tpu.memory_space<vmem>>, %arg18: memref<2x1x32xf32, #tpu.memory_space<vmem>>, %arg19: memref<2x1x32xf32, #tpu.memory_space<vmem>>, %arg20: memref<2x48xf32, #tpu.memory_space<vmem>>, %arg21: memref<1x32xf32, #tpu.memory_space<vmem>>, %arg22: memref<1x32xf32, #tpu.memory_space<vmem>>, %arg23: memref<32x8xf32, #tpu.memory_space<vmem>>, %arg24: memref<1x8xf32, #tpu.memory_space<vmem>>, %arg25: memref<2x8xf32, #tpu.memory_space<vmem>>, %arg26: memref<48x32xf32, #tpu.memory_space<vmem>>) attributes {dimension_semantics = [#tpu.dimension_semantics<arbitrary>], iteration_bounds = array<i64: 1>, scalar_prefetch = 0 : i64, scratch_operands = 1 : i64, tpu.core_type = #tpu.core_type<tc>, window_params = [{pipeline_mode = #tpu.pipeline_mode<synchronous>, transform_indices = @transform_0, window_bounds = array<i64: 32, 48>}, {pipeline_mode = #tpu.pipeline_mode<synchronous>, transform_indices = @transform_1, window_bounds = array<i64: 48, 32>}, {pipeline_mode = #tpu.pipeline_mode<synchronous>, transform_indices = @transform_2, window_bounds = array<i64: 1, 32>}, {pipeline_mode = #tpu.pipeline_mode<synchronous>, transform_indices = @transform_3, window_bounds = array<i64: 1, 32>}, {pipeline_mode = #tpu.pipeline_mode<synchronous>, transform_indices = @transform_4, window_bounds = array<i64: 2, 1, 32>}, {pipeline_mode = #tpu.pipeline_mode<synchronous>, transform_indices = @transform_5, window_bounds = array<i64: 2, 1, 32>}, {pipeline_mode = #tpu.pipeline_mode<synchronous>, transform_indices = @transform_6, window_bounds = array<i64: 2, 32, 96>}, {pipeline_mode = #tpu.pipeline_mode<synchronous>, transform_indices = @transform_7, window_bounds = array<i64: 2, 1, 96>}, {pipeline_mode = #tpu.pipeline_mode<synchronous>, transform_indices = @transform_8, window_bounds = array<i64: 8, 48, 48>}, {pipeline_mode = #tpu.pipeline_mode<synchronous>, transform_indices = @transform_9, window_bounds = array<i64: 2, 32, 32>}, {pipeline_mode = #tpu.pipeline_mode<synchronous>, transform_indices = @transform_10, window_bounds = array<i64: 2, 1, 32>}, {pipeline_mode = #tpu.pipeline_mode<synchronous>, transform_indices = @transform_11, window_bounds = array<i64: 2, 1, 32>}, {pipeline_mode = #tpu.pipeline_mode<synchronous>, transform_indices = @transform_12, window_bounds = array<i64: 2, 1, 32>}, {pipeline_mode = #tpu.pipeline_mode<synchronous>, transform_indices = @transform_13, window_bounds = array<i64: 2, 1, 32>}, {pipeline_mode = #tpu.pipeline_mode<synchronous>, transform_indices = @transform_14, window_bounds = array<i64: 2, 32, 128>}, {pipeline_mode = #tpu.pipeline_mode<synchronous>, transform_indices = @transform_15, window_bounds = array<i64: 2, 1, 128>}, {pipeline_mode = #tpu.pipeline_mode<synchronous>, transform_indices = @transform_16, window_bounds = array<i64: 2, 128, 32>}, {pipeline_mode = #tpu.pipeline_mode<synchronous>, transform_indices = @transform_17, window_bounds = array<i64: 2, 1, 32>}, {pipeline_mode = #tpu.pipeline_mode<synchronous>, transform_indices = @transform_18, window_bounds = array<i64: 2, 1, 32>}, {pipeline_mode = #tpu.pipeline_mode<synchronous>, transform_indices = @transform_19, window_bounds = array<i64: 2, 48>}, {pipeline_mode = #tpu.pipeline_mode<synchronous>, transform_indices = @transform_20, window_bounds = array<i64: 1, 32>}, {pipeline_mode = #tpu.pipeline_mode<synchronous>, transform_indices = @transform_21, window_bounds = array<i64: 1, 32>}, {pipeline_mode = #tpu.pipeline_mode<synchronous>, transform_indices = @transform_22, window_bounds = array<i64: 32, 8>}, {pipeline_mode = #tpu.pipeline_mode<synchronous>, transform_indices = @transform_23, window_bounds = array<i64: 1, 8>}, {pipeline_mode = #tpu.pipeline_mode<synchronous>, transform_indices = @transform_24, window_bounds = array<i64: 2, 8>}]} {
    %c0 = arith.constant 0 : index
    %c0_0 = arith.constant 0 : index
    %0 = vector.load %arg1[%c0, %c0_0] : memref<32x48xf32, #tpu.memory_space<vmem>>, vector<32x48xf32>
    %c0_1 = arith.constant 0 : index
    %c0_2 = arith.constant 0 : index
    %1 = vector.load %arg2[%c0_1, %c0_2] : memref<48x32xf32, #tpu.memory_space<vmem>>, vector<48x32xf32>
    %cst = arith.constant dense<0.000000e+00> : vector<32x32xf32>
    %2 = tpu.matmul %0, %1, %cst {dimension_numbers = #tpu.dot_dimension_numbers<[1], [0], [0], [1], [0, 0, 1, 1], [], []>} : vector<32x48xf32>, vector<48x32xf32>, vector<32x32xf32> -> vector<32x32xf32>
    %c0_3 = arith.constant 0 : index
    %c0_4 = arith.constant 0 : index
    %3 = vector.load %arg3[%c0_3, %c0_4] : memref<1x32xf32, #tpu.memory_space<vmem>>, vector<1x32xf32>
    %4 = vector.broadcast %3 : vector<1x32xf32> to vector<32x32xf32>
    %5 = arith.addf %2, %4 : vector<32x32xf32>
    %cst_5 = arith.constant 0.000000e+00 : f32
    %6 = vector.broadcast %cst_5 : f32 to vector<48x32xf32>
    %c0_6 = arith.constant 0 : index
    %c0_7 = arith.constant 0 : index
    %7 = vector.load %arg26[%c0_6, %c0_7] : memref<48x32xf32, #tpu.memory_space<vmem>>, vector<48x32xf32>
    tpu.vector_store %arg26[%c0_6, %c0_7], %6 {strides = array<i32>} : memref<48x32xf32, #tpu.memory_space<vmem>>, vector<48x32xf32>,
    %c0_8 = arith.constant 0 : index
    %c0_9 = arith.constant 0 : index
    %8 = vector.load %arg4[%c0_8, %c0_9] : memref<1x32xf32, #tpu.memory_space<vmem>>, vector<1x32xf32>
    %c0_10 = arith.constant 0 : index
    %c0_11 = arith.constant 0 : index
    %9 = vector.load %arg26[%c0_10, %c0_11] : memref<48x32xf32, #tpu.memory_space<vmem>>, vector<1x32xf32>
    tpu.vector_store %arg26[%c0_10, %c0_11], %8 {strides = array<i32>} : memref<48x32xf32, #tpu.memory_space<vmem>>, vector<1x32xf32>,
    %10 = vector.extract_strided_slice %5 {offsets = [0, 0], sizes = [16, 32], strides = [1, 1]} : vector<32x32xf32> to vector<16x32xf32>
    %c1 = arith.constant 1 : index
    %c0_12 = arith.constant 0 : index
    %11 = vector.load %arg26[%c1, %c0_12] : memref<48x32xf32, #tpu.memory_space<vmem>>, vector<16x32xf32>
    tpu.vector_store %arg26[%c1, %c0_12], %10 {strides = array<i32>} : memref<48x32xf32, #tpu.memory_space<vmem>>, vector<16x32xf32>,
    %c0_13 = arith.constant 0 : index
    %c0_14 = arith.constant 0 : index
    %12 = vector.load %arg4[%c0_13, %c0_14] : memref<1x32xf32, #tpu.memory_space<vmem>>, vector<1x32xf32>
    %c24 = arith.constant 24 : index
    %c0_15 = arith.constant 0 : index
    %13 = vector.load %arg26[%c24, %c0_15] : memref<48x32xf32, #tpu.memory_space<vmem>>, vector<1x32xf32>
    tpu.vector_store %arg26[%c24, %c0_15], %12 {strides = array<i32>} : memref<48x32xf32, #tpu.memory_space<vmem>>, vector<1x32xf32>,
    %14 = vector.extract_strided_slice %5 {offsets = [16, 0], sizes = [16, 32], strides = [1, 1]} : vector<32x32xf32> to vector<16x32xf32>
    %c25 = arith.constant 25 : index
    %c0_16 = arith.constant 0 : index
    %15 = vector.load %arg26[%c25, %c0_16] : memref<48x32xf32, #tpu.memory_space<vmem>>, vector<16x32xf32>
    tpu.vector_store %arg26[%c25, %c0_16], %14 {strides = array<i32>} : memref<48x32xf32, #tpu.memory_space<vmem>>, vector<16x32xf32>,
    %c0_17 = arith.constant 0 : index
    %c0_18 = arith.constant 0 : index
    %16 = vector.load %arg26[%c0_17, %c0_18] : memref<48x32xf32, #tpu.memory_space<vmem>>, vector<48x32xf32>
    %c0_19 = arith.constant 0 : index
    %c0_20 = arith.constant 0 : index
    %c0_21 = arith.constant 0 : index
    %17 = vector.load %arg5[%c0_19, %c0_20, %c0_21] : memref<2x1x32xf32, #tpu.memory_space<vmem>>, vector<1x1x32xf32>
    %18 = vector.shape_cast %17 : vector<1x1x32xf32> to vector<1x32xf32>
    %c0_22 = arith.constant 0 : index
    %c0_23 = arith.constant 0 : index
    %c0_24 = arith.constant 0 : index
    %19 = vector.load %arg6[%c0_22, %c0_23, %c0_24] : memref<2x1x32xf32, #tpu.memory_space<vmem>>, vector<1x1x32xf32>
    %20 = vector.shape_cast %19 : vector<1x1x32xf32> to vector<1x32xf32>
    %cst_25 = arith.constant dense<0.000000e+00> : vector<48xf32>
    %21 = vector.multi_reduction <add>, %16, %cst_25 [1] : vector<48x32xf32> to vector<48xf32>
    %22 = vector.shape_cast %21 : vector<48xf32> to vector<48x1xf32>
    %cst_26 = arith.constant 3.200000e+01 : f32
    %23 = vector.broadcast %cst_26 : f32 to vector<48x1xf32>
    %24 = arith.divf %22, %23 : vector<48x1xf32>
    %25 = vector.broadcast %24 : vector<48x1xf32> to vector<48x32xf32>
    %26 = arith.subf %16, %25 : vector<48x32xf32>
    %27 = arith.mulf %26, %26 : vector<48x32xf32>
    %cst_27 = arith.constant dense<0.000000e+00> : vector<48xf32>
    %28 = vector.multi_reduction <add>, %27, %cst_27 [1] : vector<48x32xf32> to vector<48xf32>
    %29 = vector.shape_cast %28 : vector<48xf32> to vector<48x1xf32>
    %cst_28 = arith.constant 3.200000e+01 : f32
    %30 = vector.broadcast %cst_28 : f32 to vector<48x1xf32>
    %31 = arith.divf %29, %30 : vector<48x1xf32>
    %32 = vector.broadcast %24 : vector<48x1xf32> to vector<48x32xf32>
    %33 = arith.subf %16, %32 : vector<48x32xf32>
    %cst_29 = arith.constant 9.99999996E-13 : f32
    %34 = vector.broadcast %cst_29 : f32 to vector<48x1xf32>
    %35 = arith.addf %31, %34 : vector<48x1xf32>
    %36 = math.rsqrt %35 : vector<48x1xf32>
    %37 = vector.broadcast %36 : vector<48x1xf32> to vector<48x32xf32>
    %38 = arith.mulf %33, %37 : vector<48x32xf32>
    %39 = vector.broadcast %18 : vector<1x32xf32> to vector<48x32xf32>
    %40 = arith.mulf %38, %39 : vector<48x32xf32>
    %41 = vector.broadcast %20 : vector<1x32xf32> to vector<48x32xf32>
    %42 = arith.addf %40, %41 : vector<48x32xf32>
    %c0_30 = arith.constant 0 : index
    %c0_31 = arith.constant 0 : index
    %c0_32 = arith.constant 0 : index
    %43 = vector.load %arg7[%c0_30, %c0_31, %c0_32] : memref<2x32x96xf32, #tpu.memory_space<vmem>>, vector<1x32x96xf32>
    %44 = vector.shape_cast %43 : vector<1x32x96xf32> to vector<32x96xf32>
    %cst_33 = arith.constant dense<0.000000e+00> : vector<48x96xf32>
    %45 = tpu.matmul %42, %44, %cst_33 {dimension_numbers = #tpu.dot_dimension_numbers<[1], [0], [0], [1], [0, 0, 1, 1], [], []>} : vector<48x32xf32>, vector<32x96xf32>, vector<48x96xf32> -> vector<48x96xf32>
    %c0_34 = arith.constant 0 : index
    %c0_35 = arith.constant 0 : index
    %c0_36 = arith.constant 0 : index
    %46 = vector.load %arg8[%c0_34, %c0_35, %c0_36] : memref<2x1x96xf32, #tpu.memory_space<vmem>>, vector<1x1x96xf32>
    %47 = vector.shape_cast %46 : vector<1x1x96xf32> to vector<1x96xf32>
    %48 = vector.broadcast %47 : vector<1x96xf32> to vector<48x96xf32>
    %49 = arith.addf %45, %48 : vector<48x96xf32>
    %c0_37 = arith.constant 0 : index
    %c0_38 = arith.constant 0 : index
    %c0_39 = arith.constant 0 : index
    %50 = vector.load %arg10[%c0_37, %c0_38, %c0_39] : memref<2x32x32xf32, #tpu.memory_space<vmem>>, vector<1x32x32xf32>
    %51 = vector.shape_cast %50 : vector<1x32x32xf32> to vector<32x32xf32>
    %cst_40 = arith.constant 0.000000e+00 : f32
    %52 = vector.broadcast %cst_40 : f32 to vector<48x32xf32>
    %53 = vector.extract_strided_slice %49 {offsets = [0, 0], sizes = [48, 8], strides = [1, 1]} : vector<48x96xf32> to vector<48x8xf32>
    %54 = vector.extract_strided_slice %49 {offsets = [0, 8], sizes = [48, 8], strides = [1, 1]} : vector<48x96xf32> to vector<48x8xf32>
    %55 = vector.extract_strided_slice %49 {offsets = [0, 16], sizes = [48, 8], strides = [1, 1]} : vector<48x96xf32> to vector<48x8xf32>
    %cst_41 = arith.constant dense<0.000000e+00> : vector<48x48xf32>
    %56 = tpu.matmul %53, %54, %cst_41 {dimension_numbers = #tpu.dot_dimension_numbers<[1], [1], [0], [0], [0, 0, 1, 0], [], []>} : vector<48x8xf32>, vector<48x8xf32>, vector<48x48xf32> -> vector<48x48xf32>
    %c0_42 = arith.constant 0 : index
    %c0_43 = arith.constant 0 : index
    %c0_44 = arith.constant 0 : index
    %57 = vector.load %arg9[%c0_42, %c0_43, %c0_44] : memref<8x48x48xf32, #tpu.memory_space<vmem>>, vector<1x48x48xf32>
    %58 = vector.shape_cast %57 : vector<1x48x48xf32> to vector<48x48xf32>
    %59 = arith.addf %56, %58 : vector<48x48xf32>
    %cst_45 = arith.constant dense<0xFF800000> : vector<48xf32>
    %60 = vector.multi_reduction <maximumf>, %59, %cst_45 [1] : vector<48x48xf32> to vector<48xf32>
    %61 = vector.shape_cast %60 : vector<48xf32> to vector<48x1xf32>
    %62 = vector.broadcast %61 : vector<48x1xf32> to vector<48x48xf32>
    %63 = arith.subf %59, %62 : vector<48x48xf32>
    %64 = math.exp %63 : vector<48x48xf32>
    %cst_46 = arith.constant dense<0.000000e+00> : vector<48xf32>
    %65 = vector.multi_reduction <add>, %64, %cst_46 [1] : vector<48x48xf32> to vector<48xf32>
    %66 = vector.shape_cast %65 : vector<48xf32> to vector<48x1xf32>
    %67 = vector.broadcast %66 : vector<48x1xf32> to vector<48x48xf32>
    %68 = arith.divf %64, %67 : vector<48x48xf32>
    %cst_47 = arith.constant dense<0.000000e+00> : vector<48x8xf32>
    %69 = tpu.matmul %68, %55, %cst_47 {dimension_numbers = #tpu.dot_dimension_numbers<[1], [0], [0], [1], [0, 0, 1, 1], [], []>} : vector<48x48xf32>, vector<48x8xf32>, vector<48x8xf32> -> vector<48x8xf32>
    %70 = vector.extract_strided_slice %51 {offsets = [0, 0], sizes = [8, 32], strides = [1, 1]} : vector<32x32xf32> to vector<8x32xf32>
    %cst_48 = arith.constant dense<0.000000e+00> : vector<48x32xf32>
    %71 = tpu.matmul %69, %70, %cst_48 {dimension_numbers = #tpu.dot_dimension_numbers<[1], [0], [0], [1], [0, 0, 1, 1], [], []>} : vector<48x8xf32>, vector<8x32xf32>, vector<48x32xf32> -> vector<48x32xf32>
    %72 = arith.addf %52, %71 : vector<48x32xf32>
    %73 = vector.extract_strided_slice %49 {offsets = [0, 24], sizes = [48, 8], strides = [1, 1]} : vector<48x96xf32> to vector<48x8xf32>
    %74 = vector.extract_strided_slice %49 {offsets = [0, 32], sizes = [48, 8], strides = [1, 1]} : vector<48x96xf32> to vector<48x8xf32>
    %75 = vector.extract_strided_slice %49 {offsets = [0, 40], sizes = [48, 8], strides = [1, 1]} : vector<48x96xf32> to vector<48x8xf32>
    %cst_49 = arith.constant dense<0.000000e+00> : vector<48x48xf32>
    %76 = tpu.matmul %73, %74, %cst_49 {dimension_numbers = #tpu.dot_dimension_numbers<[1], [1], [0], [0], [0, 0, 1, 0], [], []>} : vector<48x8xf32>, vector<48x8xf32>, vector<48x48xf32> -> vector<48x48xf32>
    %c1_50 = arith.constant 1 : index
    %c0_51 = arith.constant 0 : index
    %c0_52 = arith.constant 0 : index
    %77 = vector.load %arg9[%c1_50, %c0_51, %c0_52] : memref<8x48x48xf32, #tpu.memory_space<vmem>>, vector<1x48x48xf32>
    %78 = vector.shape_cast %77 : vector<1x48x48xf32> to vector<48x48xf32>
    %79 = arith.addf %76, %78 : vector<48x48xf32>
    %cst_53 = arith.constant dense<0xFF800000> : vector<48xf32>
    %80 = vector.multi_reduction <maximumf>, %79, %cst_53 [1] : vector<48x48xf32> to vector<48xf32>
    %81 = vector.shape_cast %80 : vector<48xf32> to vector<48x1xf32>
    %82 = vector.broadcast %81 : vector<48x1xf32> to vector<48x48xf32>
    %83 = arith.subf %79, %82 : vector<48x48xf32>
    %84 = math.exp %83 : vector<48x48xf32>
    %cst_54 = arith.constant dense<0.000000e+00> : vector<48xf32>
    %85 = vector.multi_reduction <add>, %84, %cst_54 [1] : vector<48x48xf32> to vector<48xf32>
    %86 = vector.shape_cast %85 : vector<48xf32> to vector<48x1xf32>
    %87 = vector.broadcast %86 : vector<48x1xf32> to vector<48x48xf32>
    %88 = arith.divf %84, %87 : vector<48x48xf32>
    %cst_55 = arith.constant dense<0.000000e+00> : vector<48x8xf32>
    %89 = tpu.matmul %88, %75, %cst_55 {dimension_numbers = #tpu.dot_dimension_numbers<[1], [0], [0], [1], [0, 0, 1, 1], [], []>} : vector<48x48xf32>, vector<48x8xf32>, vector<48x8xf32> -> vector<48x8xf32>
    %90 = vector.extract_strided_slice %51 {offsets = [8, 0], sizes = [8, 32], strides = [1, 1]} : vector<32x32xf32> to vector<8x32xf32>
    %cst_56 = arith.constant dense<0.000000e+00> : vector<48x32xf32>
    %91 = tpu.matmul %89, %90, %cst_56 {dimension_numbers = #tpu.dot_dimension_numbers<[1], [0], [0], [1], [0, 0, 1, 1], [], []>} : vector<48x8xf32>, vector<8x32xf32>, vector<48x32xf32> -> vector<48x32xf32>
    %92 = arith.addf %72, %91 : vector<48x32xf32>
    %93 = vector.extract_strided_slice %49 {offsets = [0, 48], sizes = [48, 8], strides = [1, 1]} : vector<48x96xf32> to vector<48x8xf32>
    %94 = vector.extract_strided_slice %49 {offsets = [0, 56], sizes = [48, 8], strides = [1, 1]} : vector<48x96xf32> to vector<48x8xf32>
    %95 = vector.extract_strided_slice %49 {offsets = [0, 64], sizes = [48, 8], strides = [1, 1]} : vector<48x96xf32> to vector<48x8xf32>
    %cst_57 = arith.constant dense<0.000000e+00> : vector<48x48xf32>
    %96 = tpu.matmul %93, %94, %cst_57 {dimension_numbers = #tpu.dot_dimension_numbers<[1], [1], [0], [0], [0, 0, 1, 0], [], []>} : vector<48x8xf32>, vector<48x8xf32>, vector<48x48xf32> -> vector<48x48xf32>
    %c2 = arith.constant 2 : index
    %c0_58 = arith.constant 0 : index
    %c0_59 = arith.constant 0 : index
    %97 = vector.load %arg9[%c2, %c0_58, %c0_59] : memref<8x48x48xf32, #tpu.memory_space<vmem>>, vector<1x48x48xf32>
    %98 = vector.shape_cast %97 : vector<1x48x48xf32> to vector<48x48xf32>
    %99 = arith.addf %96, %98 : vector<48x48xf32>
    %cst_60 = arith.constant dense<0xFF800000> : vector<48xf32>
    %100 = vector.multi_reduction <maximumf>, %99, %cst_60 [1] : vector<48x48xf32> to vector<48xf32>
    %101 = vector.shape_cast %100 : vector<48xf32> to vector<48x1xf32>
    %102 = vector.broadcast %101 : vector<48x1xf32> to vector<48x48xf32>
    %103 = arith.subf %99, %102 : vector<48x48xf32>
    %104 = math.exp %103 : vector<48x48xf32>
    %cst_61 = arith.constant dense<0.000000e+00> : vector<48xf32>
    %105 = vector.multi_reduction <add>, %104, %cst_61 [1] : vector<48x48xf32> to vector<48xf32>
    %106 = vector.shape_cast %105 : vector<48xf32> to vector<48x1xf32>
    %107 = vector.broadcast %106 : vector<48x1xf32> to vector<48x48xf32>
    %108 = arith.divf %104, %107 : vector<48x48xf32>
    %cst_62 = arith.constant dense<0.000000e+00> : vector<48x8xf32>
    %109 = tpu.matmul %108, %95, %cst_62 {dimension_numbers = #tpu.dot_dimension_numbers<[1], [0], [0], [1], [0, 0, 1, 1], [], []>} : vector<48x48xf32>, vector<48x8xf32>, vector<48x8xf32> -> vector<48x8xf32>
    %110 = vector.extract_strided_slice %51 {offsets = [16, 0], sizes = [8, 32], strides = [1, 1]} : vector<32x32xf32> to vector<8x32xf32>
    %cst_63 = arith.constant dense<0.000000e+00> : vector<48x32xf32>
    %111 = tpu.matmul %109, %110, %cst_63 {dimension_numbers = #tpu.dot_dimension_numbers<[1], [0], [0], [1], [0, 0, 1, 1], [], []>} : vector<48x8xf32>, vector<8x32xf32>, vector<48x32xf32> -> vector<48x32xf32>
    %112 = arith.addf %92, %111 : vector<48x32xf32>
    %113 = vector.extract_strided_slice %49 {offsets = [0, 72], sizes = [48, 8], strides = [1, 1]} : vector<48x96xf32> to vector<48x8xf32>
    %114 = vector.extract_strided_slice %49 {offsets = [0, 80], sizes = [48, 8], strides = [1, 1]} : vector<48x96xf32> to vector<48x8xf32>
    %115 = vector.extract_strided_slice %49 {offsets = [0, 88], sizes = [48, 8], strides = [1, 1]} : vector<48x96xf32> to vector<48x8xf32>
    %cst_64 = arith.constant dense<0.000000e+00> : vector<48x48xf32>
    %116 = tpu.matmul %113, %114, %cst_64 {dimension_numbers = #tpu.dot_dimension_numbers<[1], [1], [0], [0], [0, 0, 1, 0], [], []>} : vector<48x8xf32>, vector<48x8xf32>, vector<48x48xf32> -> vector<48x48xf32>
    %c3 = arith.constant 3 : index
    %c0_65 = arith.constant 0 : index
    %c0_66 = arith.constant 0 : index
    %117 = vector.load %arg9[%c3, %c0_65, %c0_66] : memref<8x48x48xf32, #tpu.memory_space<vmem>>, vector<1x48x48xf32>
    %118 = vector.shape_cast %117 : vector<1x48x48xf32> to vector<48x48xf32>
    %119 = arith.addf %116, %118 : vector<48x48xf32>
    %cst_67 = arith.constant dense<0xFF800000> : vector<48xf32>
    %120 = vector.multi_reduction <maximumf>, %119, %cst_67 [1] : vector<48x48xf32> to vector<48xf32>
    %121 = vector.shape_cast %120 : vector<48xf32> to vector<48x1xf32>
    %122 = vector.broadcast %121 : vector<48x1xf32> to vector<48x48xf32>
    %123 = arith.subf %119, %122 : vector<48x48xf32>
    %124 = math.exp %123 : vector<48x48xf32>
    %cst_68 = arith.constant dense<0.000000e+00> : vector<48xf32>
    %125 = vector.multi_reduction <add>, %124, %cst_68 [1] : vector<48x48xf32> to vector<48xf32>
    %126 = vector.shape_cast %125 : vector<48xf32> to vector<48x1xf32>
    %127 = vector.broadcast %126 : vector<48x1xf32> to vector<48x48xf32>
    %128 = arith.divf %124, %127 : vector<48x48xf32>
    %cst_69 = arith.constant dense<0.000000e+00> : vector<48x8xf32>
    %129 = tpu.matmul %128, %115, %cst_69 {dimension_numbers = #tpu.dot_dimension_numbers<[1], [0], [0], [1], [0, 0, 1, 1], [], []>} : vector<48x48xf32>, vector<48x8xf32>, vector<48x8xf32> -> vector<48x8xf32>
    %130 = vector.extract_strided_slice %51 {offsets = [24, 0], sizes = [8, 32], strides = [1, 1]} : vector<32x32xf32> to vector<8x32xf32>
    %cst_70 = arith.constant dense<0.000000e+00> : vector<48x32xf32>
    %131 = tpu.matmul %129, %130, %cst_70 {dimension_numbers = #tpu.dot_dimension_numbers<[1], [0], [0], [1], [0, 0, 1, 1], [], []>} : vector<48x8xf32>, vector<8x32xf32>, vector<48x32xf32> -> vector<48x32xf32>
    %132 = arith.addf %112, %131 : vector<48x32xf32>
    %c0_71 = arith.constant 0 : index
    %c0_72 = arith.constant 0 : index
    %c0_73 = arith.constant 0 : index
    %133 = vector.load %arg12[%c0_71, %c0_72, %c0_73] : memref<2x1x32xf32, #tpu.memory_space<vmem>>, vector<1x1x32xf32>
    %134 = vector.shape_cast %133 : vector<1x1x32xf32> to vector<1x32xf32>
    %c0_74 = arith.constant 0 : index
    %c0_75 = arith.constant 0 : index
    %c0_76 = arith.constant 0 : index
    %135 = vector.load %arg11[%c0_74, %c0_75, %c0_76] : memref<2x1x32xf32, #tpu.memory_space<vmem>>, vector<1x1x32xf32>
    %136 = vector.shape_cast %135 : vector<1x1x32xf32> to vector<1x32xf32>
    %137 = vector.broadcast %136 : vector<1x32xf32> to vector<48x32xf32>
    %138 = arith.addf %132, %137 : vector<48x32xf32>
    %139 = vector.broadcast %134 : vector<1x32xf32> to vector<48x32xf32>
    %140 = arith.mulf %139, %138 : vector<48x32xf32>
    %141 = arith.addf %16, %140 : vector<48x32xf32>
    %c0_77 = arith.constant 0 : index
    %c0_78 = arith.constant 0 : index
    %c0_79 = arith.constant 0 : index
    %142 = vector.load %arg13[%c0_77, %c0_78, %c0_79] : memref<2x1x32xf32, #tpu.memory_space<vmem>>, vector<1x1x32xf32>
    %143 = vector.shape_cast %142 : vector<1x1x32xf32> to vector<1x32xf32>
    %c0_80 = arith.constant 0 : index
    %c0_81 = arith.constant 0 : index
    %c0_82 = arith.constant 0 : index
    %144 = vector.load %arg14[%c0_80, %c0_81, %c0_82] : memref<2x1x32xf32, #tpu.memory_space<vmem>>, vector<1x1x32xf32>
    %145 = vector.shape_cast %144 : vector<1x1x32xf32> to vector<1x32xf32>
    %cst_83 = arith.constant dense<0.000000e+00> : vector<48xf32>
    %146 = vector.multi_reduction <add>, %141, %cst_83 [1] : vector<48x32xf32> to vector<48xf32>
    %147 = vector.shape_cast %146 : vector<48xf32> to vector<48x1xf32>
    %cst_84 = arith.constant 3.200000e+01 : f32
    %148 = vector.broadcast %cst_84 : f32 to vector<48x1xf32>
    %149 = arith.divf %147, %148 : vector<48x1xf32>
    %150 = vector.broadcast %149 : vector<48x1xf32> to vector<48x32xf32>
    %151 = arith.subf %141, %150 : vector<48x32xf32>
    %152 = arith.mulf %151, %151 : vector<48x32xf32>
    %cst_85 = arith.constant dense<0.000000e+00> : vector<48xf32>
    %153 = vector.multi_reduction <add>, %152, %cst_85 [1] : vector<48x32xf32> to vector<48xf32>
    %154 = vector.shape_cast %153 : vector<48xf32> to vector<48x1xf32>
    %cst_86 = arith.constant 3.200000e+01 : f32
    %155 = vector.broadcast %cst_86 : f32 to vector<48x1xf32>
    %156 = arith.divf %154, %155 : vector<48x1xf32>
    %157 = vector.broadcast %149 : vector<48x1xf32> to vector<48x32xf32>
    %158 = arith.subf %141, %157 : vector<48x32xf32>
    %cst_87 = arith.constant 9.99999996E-13 : f32
    %159 = vector.broadcast %cst_87 : f32 to vector<48x1xf32>
    %160 = arith.addf %156, %159 : vector<48x1xf32>
    %161 = math.rsqrt %160 : vector<48x1xf32>
    %162 = vector.broadcast %161 : vector<48x1xf32> to vector<48x32xf32>
    %163 = arith.mulf %158, %162 : vector<48x32xf32>
    %164 = vector.broadcast %143 : vector<1x32xf32> to vector<48x32xf32>
    %165 = arith.mulf %163, %164 : vector<48x32xf32>
    %166 = vector.broadcast %145 : vector<1x32xf32> to vector<48x32xf32>
    %167 = arith.addf %165, %166 : vector<48x32xf32>
    %c0_88 = arith.constant 0 : index
    %c0_89 = arith.constant 0 : index
    %c0_90 = arith.constant 0 : index
    %168 = vector.load %arg15[%c0_88, %c0_89, %c0_90] : memref<2x32x128xf32, #tpu.memory_space<vmem>>, vector<1x32x128xf32>
    %169 = vector.shape_cast %168 : vector<1x32x128xf32> to vector<32x128xf32>
    %cst_91 = arith.constant dense<0.000000e+00> : vector<48x128xf32>
    %170 = tpu.matmul %167, %169, %cst_91 {dimension_numbers = #tpu.dot_dimension_numbers<[1], [0], [0], [1], [0, 0, 1, 1], [], []>} : vector<48x32xf32>, vector<32x128xf32>, vector<48x128xf32> -> vector<48x128xf32>
    %c0_92 = arith.constant 0 : index
    %c0_93 = arith.constant 0 : index
    %c0_94 = arith.constant 0 : index
    %171 = vector.load %arg16[%c0_92, %c0_93, %c0_94] : memref<2x1x128xf32, #tpu.memory_space<vmem>>, vector<1x1x128xf32>
    %172 = vector.shape_cast %171 : vector<1x1x128xf32> to vector<1x128xf32>
    %173 = vector.broadcast %172 : vector<1x128xf32> to vector<48x128xf32>
    %174 = arith.addf %170, %173 : vector<48x128xf32>
    %175 = arith.mulf %174, %174 : vector<48x128xf32>
    %176 = arith.mulf %174, %175 : vector<48x128xf32>
    %cst_95 = arith.constant 4.471500e-02 : f32
    %177 = vector.broadcast %cst_95 : f32 to vector<48x128xf32>
    %178 = arith.mulf %177, %176 : vector<48x128xf32>
    %179 = arith.addf %174, %178 : vector<48x128xf32>
    %cst_96 = arith.constant 0.797884583 : f32
    %180 = vector.broadcast %cst_96 : f32 to vector<48x128xf32>
    %181 = arith.mulf %180, %179 : vector<48x128xf32>
    %182 = math.tanh %181 : vector<48x128xf32>
    %cst_97 = arith.constant 1.000000e+00 : f32
    %183 = vector.broadcast %cst_97 : f32 to vector<48x128xf32>
    %184 = arith.addf %183, %182 : vector<48x128xf32>
    %cst_98 = arith.constant 5.000000e-01 : f32
    %185 = vector.broadcast %cst_98 : f32 to vector<48x128xf32>
    %186 = arith.mulf %185, %184 : vector<48x128xf32>
    %187 = arith.mulf %174, %186 : vector<48x128xf32>
    %c0_99 = arith.constant 0 : index
    %c0_100 = arith.constant 0 : index
    %c0_101 = arith.constant 0 : index
    %188 = vector.load %arg17[%c0_99, %c0_100, %c0_101] : memref<2x128x32xf32, #tpu.memory_space<vmem>>, vector<1x128x32xf32>
    %189 = vector.shape_cast %188 : vector<1x128x32xf32> to vector<128x32xf32>
    %cst_102 = arith.constant dense<0.000000e+00> : vector<48x32xf32>
    %190 = tpu.matmul %187, %189, %cst_102 {dimension_numbers = #tpu.dot_dimension_numbers<[1], [0], [0], [1], [0, 0, 1, 1], [], []>} : vector<48x128xf32>, vector<128x32xf32>, vector<48x32xf32> -> vector<48x32xf32>
    %c0_103 = arith.constant 0 : index
    %c0_104 = arith.constant 0 : index
    %c0_105 = arith.constant 0 : index
    %191 = vector.load %arg18[%c0_103, %c0_104, %c0_105] : memref<2x1x32xf32, #tpu.memory_space<vmem>>, vector<1x1x32xf32>
    %192 = vector.shape_cast %191 : vector<1x1x32xf32> to vector<1x32xf32>
    %193 = vector.broadcast %192 : vector<1x32xf32> to vector<48x32xf32>
    %194 = arith.addf %190, %193 : vector<48x32xf32>
    %c0_106 = arith.constant 0 : index
    %c0_107 = arith.constant 0 : index
    %c0_108 = arith.constant 0 : index
    %195 = vector.load %arg19[%c0_106, %c0_107, %c0_108] : memref<2x1x32xf32, #tpu.memory_space<vmem>>, vector<1x1x32xf32>
    %196 = vector.shape_cast %195 : vector<1x1x32xf32> to vector<1x32xf32>
    %197 = vector.broadcast %196 : vector<1x32xf32> to vector<48x32xf32>
    %198 = arith.mulf %197, %194 : vector<48x32xf32>
    %199 = arith.addf %141, %198 : vector<48x32xf32>
    %c1_109 = arith.constant 1 : index
    %c0_110 = arith.constant 0 : index
    %c0_111 = arith.constant 0 : index
    %200 = vector.load %arg5[%c1_109, %c0_110, %c0_111] : memref<2x1x32xf32, #tpu.memory_space<vmem>>, vector<1x1x32xf32>
    %201 = vector.shape_cast %200 : vector<1x1x32xf32> to vector<1x32xf32>
    %c1_112 = arith.constant 1 : index
    %c0_113 = arith.constant 0 : index
    %c0_114 = arith.constant 0 : index
    %202 = vector.load %arg6[%c1_112, %c0_113, %c0_114] : memref<2x1x32xf32, #tpu.memory_space<vmem>>, vector<1x1x32xf32>
    %203 = vector.shape_cast %202 : vector<1x1x32xf32> to vector<1x32xf32>
    %cst_115 = arith.constant dense<0.000000e+00> : vector<48xf32>
    %204 = vector.multi_reduction <add>, %199, %cst_115 [1] : vector<48x32xf32> to vector<48xf32>
    %205 = vector.shape_cast %204 : vector<48xf32> to vector<48x1xf32>
    %cst_116 = arith.constant 3.200000e+01 : f32
    %206 = vector.broadcast %cst_116 : f32 to vector<48x1xf32>
    %207 = arith.divf %205, %206 : vector<48x1xf32>
    %208 = vector.broadcast %207 : vector<48x1xf32> to vector<48x32xf32>
    %209 = arith.subf %199, %208 : vector<48x32xf32>
    %210 = arith.mulf %209, %209 : vector<48x32xf32>
    %cst_117 = arith.constant dense<0.000000e+00> : vector<48xf32>
    %211 = vector.multi_reduction <add>, %210, %cst_117 [1] : vector<48x32xf32> to vector<48xf32>
    %212 = vector.shape_cast %211 : vector<48xf32> to vector<48x1xf32>
    %cst_118 = arith.constant 3.200000e+01 : f32
    %213 = vector.broadcast %cst_118 : f32 to vector<48x1xf32>
    %214 = arith.divf %212, %213 : vector<48x1xf32>
    %215 = vector.broadcast %207 : vector<48x1xf32> to vector<48x32xf32>
    %216 = arith.subf %199, %215 : vector<48x32xf32>
    %cst_119 = arith.constant 9.99999996E-13 : f32
    %217 = vector.broadcast %cst_119 : f32 to vector<48x1xf32>
    %218 = arith.addf %214, %217 : vector<48x1xf32>
    %219 = math.rsqrt %218 : vector<48x1xf32>
    %220 = vector.broadcast %219 : vector<48x1xf32> to vector<48x32xf32>
    %221 = arith.mulf %216, %220 : vector<48x32xf32>
    %222 = vector.broadcast %201 : vector<1x32xf32> to vector<48x32xf32>
    %223 = arith.mulf %221, %222 : vector<48x32xf32>
    %224 = vector.broadcast %203 : vector<1x32xf32> to vector<48x32xf32>
    %225 = arith.addf %223, %224 : vector<48x32xf32>
    %c1_120 = arith.constant 1 : index
    %c0_121 = arith.constant 0 : index
    %c0_122 = arith.constant 0 : index
    %226 = vector.load %arg7[%c1_120, %c0_121, %c0_122] : memref<2x32x96xf32, #tpu.memory_space<vmem>>, vector<1x32x96xf32>
    %227 = vector.shape_cast %226 : vector<1x32x96xf32> to vector<32x96xf32>
    %cst_123 = arith.constant dense<0.000000e+00> : vector<48x96xf32>
    %228 = tpu.matmul %225, %227, %cst_123 {dimension_numbers = #tpu.dot_dimension_numbers<[1], [0], [0], [1], [0, 0, 1, 1], [], []>} : vector<48x32xf32>, vector<32x96xf32>, vector<48x96xf32> -> vector<48x96xf32>
    %c1_124 = arith.constant 1 : index
    %c0_125 = arith.constant 0 : index
    %c0_126 = arith.constant 0 : index
    %229 = vector.load %arg8[%c1_124, %c0_125, %c0_126] : memref<2x1x96xf32, #tpu.memory_space<vmem>>, vector<1x1x96xf32>
    %230 = vector.shape_cast %229 : vector<1x1x96xf32> to vector<1x96xf32>
    %231 = vector.broadcast %230 : vector<1x96xf32> to vector<48x96xf32>
    %232 = arith.addf %228, %231 : vector<48x96xf32>
    %c1_127 = arith.constant 1 : index
    %c0_128 = arith.constant 0 : index
    %c0_129 = arith.constant 0 : index
    %233 = vector.load %arg10[%c1_127, %c0_128, %c0_129] : memref<2x32x32xf32, #tpu.memory_space<vmem>>, vector<1x32x32xf32>
    %234 = vector.shape_cast %233 : vector<1x32x32xf32> to vector<32x32xf32>
    %cst_130 = arith.constant 0.000000e+00 : f32
    %235 = vector.broadcast %cst_130 : f32 to vector<48x32xf32>
    %236 = vector.extract_strided_slice %232 {offsets = [0, 0], sizes = [48, 8], strides = [1, 1]} : vector<48x96xf32> to vector<48x8xf32>
    %237 = vector.extract_strided_slice %232 {offsets = [0, 8], sizes = [48, 8], strides = [1, 1]} : vector<48x96xf32> to vector<48x8xf32>
    %238 = vector.extract_strided_slice %232 {offsets = [0, 16], sizes = [48, 8], strides = [1, 1]} : vector<48x96xf32> to vector<48x8xf32>
    %cst_131 = arith.constant dense<0.000000e+00> : vector<48x48xf32>
    %239 = tpu.matmul %236, %237, %cst_131 {dimension_numbers = #tpu.dot_dimension_numbers<[1], [1], [0], [0], [0, 0, 1, 0], [], []>} : vector<48x8xf32>, vector<48x8xf32>, vector<48x48xf32> -> vector<48x48xf32>
    %c4 = arith.constant 4 : index
    %c0_132 = arith.constant 0 : index
    %c0_133 = arith.constant 0 : index
    %240 = vector.load %arg9[%c4, %c0_132, %c0_133] : memref<8x48x48xf32, #tpu.memory_space<vmem>>, vector<1x48x48xf32>
    %241 = vector.shape_cast %240 : vector<1x48x48xf32> to vector<48x48xf32>
    %242 = arith.addf %239, %241 : vector<48x48xf32>
    %cst_134 = arith.constant dense<0xFF800000> : vector<48xf32>
    %243 = vector.multi_reduction <maximumf>, %242, %cst_134 [1] : vector<48x48xf32> to vector<48xf32>
    %244 = vector.shape_cast %243 : vector<48xf32> to vector<48x1xf32>
    %245 = vector.broadcast %244 : vector<48x1xf32> to vector<48x48xf32>
    %246 = arith.subf %242, %245 : vector<48x48xf32>
    %247 = math.exp %246 : vector<48x48xf32>
    %cst_135 = arith.constant dense<0.000000e+00> : vector<48xf32>
    %248 = vector.multi_reduction <add>, %247, %cst_135 [1] : vector<48x48xf32> to vector<48xf32>
    %249 = vector.shape_cast %248 : vector<48xf32> to vector<48x1xf32>
    %250 = vector.broadcast %249 : vector<48x1xf32> to vector<48x48xf32>
    %251 = arith.divf %247, %250 : vector<48x48xf32>
    %cst_136 = arith.constant dense<0.000000e+00> : vector<48x8xf32>
    %252 = tpu.matmul %251, %238, %cst_136 {dimension_numbers = #tpu.dot_dimension_numbers<[1], [0], [0], [1], [0, 0, 1, 1], [], []>} : vector<48x48xf32>, vector<48x8xf32>, vector<48x8xf32> -> vector<48x8xf32>
    %253 = vector.extract_strided_slice %234 {offsets = [0, 0], sizes = [8, 32], strides = [1, 1]} : vector<32x32xf32> to vector<8x32xf32>
    %cst_137 = arith.constant dense<0.000000e+00> : vector<48x32xf32>
    %254 = tpu.matmul %252, %253, %cst_137 {dimension_numbers = #tpu.dot_dimension_numbers<[1], [0], [0], [1], [0, 0, 1, 1], [], []>} : vector<48x8xf32>, vector<8x32xf32>, vector<48x32xf32> -> vector<48x32xf32>
    %255 = arith.addf %235, %254 : vector<48x32xf32>
    %256 = vector.extract_strided_slice %232 {offsets = [0, 24], sizes = [48, 8], strides = [1, 1]} : vector<48x96xf32> to vector<48x8xf32>
    %257 = vector.extract_strided_slice %232 {offsets = [0, 32], sizes = [48, 8], strides = [1, 1]} : vector<48x96xf32> to vector<48x8xf32>
    %258 = vector.extract_strided_slice %232 {offsets = [0, 40], sizes = [48, 8], strides = [1, 1]} : vector<48x96xf32> to vector<48x8xf32>
    %cst_138 = arith.constant dense<0.000000e+00> : vector<48x48xf32>
    %259 = tpu.matmul %256, %257, %cst_138 {dimension_numbers = #tpu.dot_dimension_numbers<[1], [1], [0], [0], [0, 0, 1, 0], [], []>} : vector<48x8xf32>, vector<48x8xf32>, vector<48x48xf32> -> vector<48x48xf32>
    %c5 = arith.constant 5 : index
    %c0_139 = arith.constant 0 : index
    %c0_140 = arith.constant 0 : index
    %260 = vector.load %arg9[%c5, %c0_139, %c0_140] : memref<8x48x48xf32, #tpu.memory_space<vmem>>, vector<1x48x48xf32>
    %261 = vector.shape_cast %260 : vector<1x48x48xf32> to vector<48x48xf32>
    %262 = arith.addf %259, %261 : vector<48x48xf32>
    %cst_141 = arith.constant dense<0xFF800000> : vector<48xf32>
    %263 = vector.multi_reduction <maximumf>, %262, %cst_141 [1] : vector<48x48xf32> to vector<48xf32>
    %264 = vector.shape_cast %263 : vector<48xf32> to vector<48x1xf32>
    %265 = vector.broadcast %264 : vector<48x1xf32> to vector<48x48xf32>
    %266 = arith.subf %262, %265 : vector<48x48xf32>
    %267 = math.exp %266 : vector<48x48xf32>
    %cst_142 = arith.constant dense<0.000000e+00> : vector<48xf32>
    %268 = vector.multi_reduction <add>, %267, %cst_142 [1] : vector<48x48xf32> to vector<48xf32>
    %269 = vector.shape_cast %268 : vector<48xf32> to vector<48x1xf32>
    %270 = vector.broadcast %269 : vector<48x1xf32> to vector<48x48xf32>
    %271 = arith.divf %267, %270 : vector<48x48xf32>
    %cst_143 = arith.constant dense<0.000000e+00> : vector<48x8xf32>
    %272 = tpu.matmul %271, %258, %cst_143 {dimension_numbers = #tpu.dot_dimension_numbers<[1], [0], [0], [1], [0, 0, 1, 1], [], []>} : vector<48x48xf32>, vector<48x8xf32>, vector<48x8xf32> -> vector<48x8xf32>
    %273 = vector.extract_strided_slice %234 {offsets = [8, 0], sizes = [8, 32], strides = [1, 1]} : vector<32x32xf32> to vector<8x32xf32>
    %cst_144 = arith.constant dense<0.000000e+00> : vector<48x32xf32>
    %274 = tpu.matmul %272, %273, %cst_144 {dimension_numbers = #tpu.dot_dimension_numbers<[1], [0], [0], [1], [0, 0, 1, 1], [], []>} : vector<48x8xf32>, vector<8x32xf32>, vector<48x32xf32> -> vector<48x32xf32>
    %275 = arith.addf %255, %274 : vector<48x32xf32>
    %276 = vector.extract_strided_slice %232 {offsets = [0, 48], sizes = [48, 8], strides = [1, 1]} : vector<48x96xf32> to vector<48x8xf32>
    %277 = vector.extract_strided_slice %232 {offsets = [0, 56], sizes = [48, 8], strides = [1, 1]} : vector<48x96xf32> to vector<48x8xf32>
    %278 = vector.extract_strided_slice %232 {offsets = [0, 64], sizes = [48, 8], strides = [1, 1]} : vector<48x96xf32> to vector<48x8xf32>
    %cst_145 = arith.constant dense<0.000000e+00> : vector<48x48xf32>
    %279 = tpu.matmul %276, %277, %cst_145 {dimension_numbers = #tpu.dot_dimension_numbers<[1], [1], [0], [0], [0, 0, 1, 0], [], []>} : vector<48x8xf32>, vector<48x8xf32>, vector<48x48xf32> -> vector<48x48xf32>
    %c6 = arith.constant 6 : index
    %c0_146 = arith.constant 0 : index
    %c0_147 = arith.constant 0 : index
    %280 = vector.load %arg9[%c6, %c0_146, %c0_147] : memref<8x48x48xf32, #tpu.memory_space<vmem>>, vector<1x48x48xf32>
    %281 = vector.shape_cast %280 : vector<1x48x48xf32> to vector<48x48xf32>
    %282 = arith.addf %279, %281 : vector<48x48xf32>
    %cst_148 = arith.constant dense<0xFF800000> : vector<48xf32>
    %283 = vector.multi_reduction <maximumf>, %282, %cst_148 [1] : vector<48x48xf32> to vector<48xf32>
    %284 = vector.shape_cast %283 : vector<48xf32> to vector<48x1xf32>
    %285 = vector.broadcast %284 : vector<48x1xf32> to vector<48x48xf32>
    %286 = arith.subf %282, %285 : vector<48x48xf32>
    %287 = math.exp %286 : vector<48x48xf32>
    %cst_149 = arith.constant dense<0.000000e+00> : vector<48xf32>
    %288 = vector.multi_reduction <add>, %287, %cst_149 [1] : vector<48x48xf32> to vector<48xf32>
    %289 = vector.shape_cast %288 : vector<48xf32> to vector<48x1xf32>
    %290 = vector.broadcast %289 : vector<48x1xf32> to vector<48x48xf32>
    %291 = arith.divf %287, %290 : vector<48x48xf32>
    %cst_150 = arith.constant dense<0.000000e+00> : vector<48x8xf32>
    %292 = tpu.matmul %291, %278, %cst_150 {dimension_numbers = #tpu.dot_dimension_numbers<[1], [0], [0], [1], [0, 0, 1, 1], [], []>} : vector<48x48xf32>, vector<48x8xf32>, vector<48x8xf32> -> vector<48x8xf32>
    %293 = vector.extract_strided_slice %234 {offsets = [16, 0], sizes = [8, 32], strides = [1, 1]} : vector<32x32xf32> to vector<8x32xf32>
    %cst_151 = arith.constant dense<0.000000e+00> : vector<48x32xf32>
    %294 = tpu.matmul %292, %293, %cst_151 {dimension_numbers = #tpu.dot_dimension_numbers<[1], [0], [0], [1], [0, 0, 1, 1], [], []>} : vector<48x8xf32>, vector<8x32xf32>, vector<48x32xf32> -> vector<48x32xf32>
    %295 = arith.addf %275, %294 : vector<48x32xf32>
    %296 = vector.extract_strided_slice %232 {offsets = [0, 72], sizes = [48, 8], strides = [1, 1]} : vector<48x96xf32> to vector<48x8xf32>
    %297 = vector.extract_strided_slice %232 {offsets = [0, 80], sizes = [48, 8], strides = [1, 1]} : vector<48x96xf32> to vector<48x8xf32>
    %298 = vector.extract_strided_slice %232 {offsets = [0, 88], sizes = [48, 8], strides = [1, 1]} : vector<48x96xf32> to vector<48x8xf32>
    %cst_152 = arith.constant dense<0.000000e+00> : vector<48x48xf32>
    %299 = tpu.matmul %296, %297, %cst_152 {dimension_numbers = #tpu.dot_dimension_numbers<[1], [1], [0], [0], [0, 0, 1, 0], [], []>} : vector<48x8xf32>, vector<48x8xf32>, vector<48x48xf32> -> vector<48x48xf32>
    %c7 = arith.constant 7 : index
    %c0_153 = arith.constant 0 : index
    %c0_154 = arith.constant 0 : index
    %300 = vector.load %arg9[%c7, %c0_153, %c0_154] : memref<8x48x48xf32, #tpu.memory_space<vmem>>, vector<1x48x48xf32>
    %301 = vector.shape_cast %300 : vector<1x48x48xf32> to vector<48x48xf32>
    %302 = arith.addf %299, %301 : vector<48x48xf32>
    %cst_155 = arith.constant dense<0xFF800000> : vector<48xf32>
    %303 = vector.multi_reduction <maximumf>, %302, %cst_155 [1] : vector<48x48xf32> to vector<48xf32>
    %304 = vector.shape_cast %303 : vector<48xf32> to vector<48x1xf32>
    %305 = vector.broadcast %304 : vector<48x1xf32> to vector<48x48xf32>
    %306 = arith.subf %302, %305 : vector<48x48xf32>
    %307 = math.exp %306 : vector<48x48xf32>
    %cst_156 = arith.constant dense<0.000000e+00> : vector<48xf32>
    %308 = vector.multi_reduction <add>, %307, %cst_156 [1] : vector<48x48xf32> to vector<48xf32>
    %309 = vector.shape_cast %308 : vector<48xf32> to vector<48x1xf32>
    %310 = vector.broadcast %309 : vector<48x1xf32> to vector<48x48xf32>
    %311 = arith.divf %307, %310 : vector<48x48xf32>
    %cst_157 = arith.constant dense<0.000000e+00> : vector<48x8xf32>
    %312 = tpu.matmul %311, %298, %cst_157 {dimension_numbers = #tpu.dot_dimension_numbers<[1], [0], [0], [1], [0, 0, 1, 1], [], []>} : vector<48x48xf32>, vector<48x8xf32>, vector<48x8xf32> -> vector<48x8xf32>
    %313 = vector.extract_strided_slice %234 {offsets = [24, 0], sizes = [8, 32], strides = [1, 1]} : vector<32x32xf32> to vector<8x32xf32>
    %cst_158 = arith.constant dense<0.000000e+00> : vector<48x32xf32>
    %314 = tpu.matmul %312, %313, %cst_158 {dimension_numbers = #tpu.dot_dimension_numbers<[1], [0], [0], [1], [0, 0, 1, 1], [], []>} : vector<48x8xf32>, vector<8x32xf32>, vector<48x32xf32> -> vector<48x32xf32>
    %315 = arith.addf %295, %314 : vector<48x32xf32>
    %c1_159 = arith.constant 1 : index
    %c0_160 = arith.constant 0 : index
    %c0_161 = arith.constant 0 : index
    %316 = vector.load %arg12[%c1_159, %c0_160, %c0_161] : memref<2x1x32xf32, #tpu.memory_space<vmem>>, vector<1x1x32xf32>
    %317 = vector.shape_cast %316 : vector<1x1x32xf32> to vector<1x32xf32>
    %c1_162 = arith.constant 1 : index
    %c0_163 = arith.constant 0 : index
    %c0_164 = arith.constant 0 : index
    %318 = vector.load %arg11[%c1_162, %c0_163, %c0_164] : memref<2x1x32xf32, #tpu.memory_space<vmem>>, vector<1x1x32xf32>
    %319 = vector.shape_cast %318 : vector<1x1x32xf32> to vector<1x32xf32>
    %320 = vector.broadcast %319 : vector<1x32xf32> to vector<48x32xf32>
    %321 = arith.addf %315, %320 : vector<48x32xf32>
    %322 = vector.broadcast %317 : vector<1x32xf32> to vector<48x32xf32>
    %323 = arith.mulf %322, %321 : vector<48x32xf32>
    %324 = arith.addf %199, %323 : vector<48x32xf32>
    %c1_165 = arith.constant 1 : index
    %c0_166 = arith.constant 0 : index
    %c0_167 = arith.constant 0 : index
    %325 = vector.load %arg13[%c1_165, %c0_166, %c0_167] : memref<2x1x32xf32, #tpu.memory_space<vmem>>, vector<1x1x32xf32>
    %326 = vector.shape_cast %325 : vector<1x1x32xf32> to vector<1x32xf32>
    %c1_168 = arith.constant 1 : index
    %c0_169 = arith.constant 0 : index
    %c0_170 = arith.constant 0 : index
    %327 = vector.load %arg14[%c1_168, %c0_169, %c0_170] : memref<2x1x32xf32, #tpu.memory_space<vmem>>, vector<1x1x32xf32>
    %328 = vector.shape_cast %327 : vector<1x1x32xf32> to vector<1x32xf32>
    %cst_171 = arith.constant dense<0.000000e+00> : vector<48xf32>
    %329 = vector.multi_reduction <add>, %324, %cst_171 [1] : vector<48x32xf32> to vector<48xf32>
    %330 = vector.shape_cast %329 : vector<48xf32> to vector<48x1xf32>
    %cst_172 = arith.constant 3.200000e+01 : f32
    %331 = vector.broadcast %cst_172 : f32 to vector<48x1xf32>
    %332 = arith.divf %330, %331 : vector<48x1xf32>
    %333 = vector.broadcast %332 : vector<48x1xf32> to vector<48x32xf32>
    %334 = arith.subf %324, %333 : vector<48x32xf32>
    %335 = arith.mulf %334, %334 : vector<48x32xf32>
    %cst_173 = arith.constant dense<0.000000e+00> : vector<48xf32>
    %336 = vector.multi_reduction <add>, %335, %cst_173 [1] : vector<48x32xf32> to vector<48xf32>
    %337 = vector.shape_cast %336 : vector<48xf32> to vector<48x1xf32>
    %cst_174 = arith.constant 3.200000e+01 : f32
    %338 = vector.broadcast %cst_174 : f32 to vector<48x1xf32>
    %339 = arith.divf %337, %338 : vector<48x1xf32>
    %340 = vector.broadcast %332 : vector<48x1xf32> to vector<48x32xf32>
    %341 = arith.subf %324, %340 : vector<48x32xf32>
    %cst_175 = arith.constant 9.99999996E-13 : f32
    %342 = vector.broadcast %cst_175 : f32 to vector<48x1xf32>
    %343 = arith.addf %339, %342 : vector<48x1xf32>
    %344 = math.rsqrt %343 : vector<48x1xf32>
    %345 = vector.broadcast %344 : vector<48x1xf32> to vector<48x32xf32>
    %346 = arith.mulf %341, %345 : vector<48x32xf32>
    %347 = vector.broadcast %326 : vector<1x32xf32> to vector<48x32xf32>
    %348 = arith.mulf %346, %347 : vector<48x32xf32>
    %349 = vector.broadcast %328 : vector<1x32xf32> to vector<48x32xf32>
    %350 = arith.addf %348, %349 : vector<48x32xf32>
    %c1_176 = arith.constant 1 : index
    %c0_177 = arith.constant 0 : index
    %c0_178 = arith.constant 0 : index
    %351 = vector.load %arg15[%c1_176, %c0_177, %c0_178] : memref<2x32x128xf32, #tpu.memory_space<vmem>>, vector<1x32x128xf32>
    %352 = vector.shape_cast %351 : vector<1x32x128xf32> to vector<32x128xf32>
    %cst_179 = arith.constant dense<0.000000e+00> : vector<48x128xf32>
    %353 = tpu.matmul %350, %352, %cst_179 {dimension_numbers = #tpu.dot_dimension_numbers<[1], [0], [0], [1], [0, 0, 1, 1], [], []>} : vector<48x32xf32>, vector<32x128xf32>, vector<48x128xf32> -> vector<48x128xf32>
    %c1_180 = arith.constant 1 : index
    %c0_181 = arith.constant 0 : index
    %c0_182 = arith.constant 0 : index
    %354 = vector.load %arg16[%c1_180, %c0_181, %c0_182] : memref<2x1x128xf32, #tpu.memory_space<vmem>>, vector<1x1x128xf32>
    %355 = vector.shape_cast %354 : vector<1x1x128xf32> to vector<1x128xf32>
    %356 = vector.broadcast %355 : vector<1x128xf32> to vector<48x128xf32>
    %357 = arith.addf %353, %356 : vector<48x128xf32>
    %358 = arith.mulf %357, %357 : vector<48x128xf32>
    %359 = arith.mulf %357, %358 : vector<48x128xf32>
    %cst_183 = arith.constant 4.471500e-02 : f32
    %360 = vector.broadcast %cst_183 : f32 to vector<48x128xf32>
    %361 = arith.mulf %360, %359 : vector<48x128xf32>
    %362 = arith.addf %357, %361 : vector<48x128xf32>
    %cst_184 = arith.constant 0.797884583 : f32
    %363 = vector.broadcast %cst_184 : f32 to vector<48x128xf32>
    %364 = arith.mulf %363, %362 : vector<48x128xf32>
    %365 = math.tanh %364 : vector<48x128xf32>
    %cst_185 = arith.constant 1.000000e+00 : f32
    %366 = vector.broadcast %cst_185 : f32 to vector<48x128xf32>
    %367 = arith.addf %366, %365 : vector<48x128xf32>
    %cst_186 = arith.constant 5.000000e-01 : f32
    %368 = vector.broadcast %cst_186 : f32 to vector<48x128xf32>
    %369 = arith.mulf %368, %367 : vector<48x128xf32>
    %370 = arith.mulf %357, %369 : vector<48x128xf32>
    %c1_187 = arith.constant 1 : index
    %c0_188 = arith.constant 0 : index
    %c0_189 = arith.constant 0 : index
    %371 = vector.load %arg17[%c1_187, %c0_188, %c0_189] : memref<2x128x32xf32, #tpu.memory_space<vmem>>, vector<1x128x32xf32>
    %372 = vector.shape_cast %371 : vector<1x128x32xf32> to vector<128x32xf32>
    %cst_190 = arith.constant dense<0.000000e+00> : vector<48x32xf32>
    %373 = tpu.matmul %370, %372, %cst_190 {dimension_numbers = #tpu.dot_dimension_numbers<[1], [0], [0], [1], [0, 0, 1, 1], [], []>} : vector<48x128xf32>, vector<128x32xf32>, vector<48x32xf32> -> vector<48x32xf32>
    %c1_191 = arith.constant 1 : index
    %c0_192 = arith.constant 0 : index
    %c0_193 = arith.constant 0 : index
    %374 = vector.load %arg18[%c1_191, %c0_192, %c0_193] : memref<2x1x32xf32, #tpu.memory_space<vmem>>, vector<1x1x32xf32>
    %375 = vector.shape_cast %374 : vector<1x1x32xf32> to vector<1x32xf32>
    %376 = vector.broadcast %375 : vector<1x32xf32> to vector<48x32xf32>
    %377 = arith.addf %373, %376 : vector<48x32xf32>
    %c1_194 = arith.constant 1 : index
    %c0_195 = arith.constant 0 : index
    %c0_196 = arith.constant 0 : index
    %378 = vector.load %arg19[%c1_194, %c0_195, %c0_196] : memref<2x1x32xf32, #tpu.memory_space<vmem>>, vector<1x1x32xf32>
    %379 = vector.shape_cast %378 : vector<1x1x32xf32> to vector<1x32xf32>
    %380 = vector.broadcast %379 : vector<1x32xf32> to vector<48x32xf32>
    %381 = arith.mulf %380, %377 : vector<48x32xf32>
    %382 = arith.addf %324, %381 : vector<48x32xf32>
    %c0_197 = arith.constant 0 : index
    %c0_198 = arith.constant 0 : index
    %383 = vector.load %arg20[%c0_197, %c0_198] : memref<2x48xf32, #tpu.memory_space<vmem>>, vector<2x48xf32>
    %cst_199 = arith.constant dense<0.000000e+00> : vector<2x32xf32>
    %384 = tpu.matmul %383, %382, %cst_199 {dimension_numbers = #tpu.dot_dimension_numbers<[1], [0], [0], [1], [0, 0, 1, 1], [], []>} : vector<2x48xf32>, vector<48x32xf32>, vector<2x32xf32> -> vector<2x32xf32>
    %c0_200 = arith.constant 0 : index
    %c0_201 = arith.constant 0 : index
    %385 = vector.load %arg21[%c0_200, %c0_201] : memref<1x32xf32, #tpu.memory_space<vmem>>, vector<1x32xf32>
    %c0_202 = arith.constant 0 : index
    %c0_203 = arith.constant 0 : index
    %386 = vector.load %arg22[%c0_202, %c0_203] : memref<1x32xf32, #tpu.memory_space<vmem>>, vector<1x32xf32>
    %cst_204 = arith.constant dense<0.000000e+00> : vector<2xf32>
    %387 = vector.multi_reduction <add>, %384, %cst_204 [1] : vector<2x32xf32> to vector<2xf32>
    %388 = vector.shape_cast %387 : vector<2xf32> to vector<2x1xf32>
    %cst_205 = arith.constant 3.200000e+01 : f32
    %389 = vector.broadcast %cst_205 : f32 to vector<2x1xf32>
    %390 = arith.divf %388, %389 : vector<2x1xf32>
    %391 = vector.broadcast %390 : vector<2x1xf32> to vector<2x32xf32>
    %392 = arith.subf %384, %391 : vector<2x32xf32>
    %393 = arith.mulf %392, %392 : vector<2x32xf32>
    %cst_206 = arith.constant dense<0.000000e+00> : vector<2xf32>
    %394 = vector.multi_reduction <add>, %393, %cst_206 [1] : vector<2x32xf32> to vector<2xf32>
    %395 = vector.shape_cast %394 : vector<2xf32> to vector<2x1xf32>
    %cst_207 = arith.constant 3.200000e+01 : f32
    %396 = vector.broadcast %cst_207 : f32 to vector<2x1xf32>
    %397 = arith.divf %395, %396 : vector<2x1xf32>
    %398 = vector.broadcast %390 : vector<2x1xf32> to vector<2x32xf32>
    %399 = arith.subf %384, %398 : vector<2x32xf32>
    %cst_208 = arith.constant 9.99999996E-13 : f32
    %400 = vector.broadcast %cst_208 : f32 to vector<2x1xf32>
    %401 = arith.addf %397, %400 : vector<2x1xf32>
    %402 = math.rsqrt %401 : vector<2x1xf32>
    %403 = vector.broadcast %402 : vector<2x1xf32> to vector<2x32xf32>
    %404 = arith.mulf %399, %403 : vector<2x32xf32>
    %405 = vector.broadcast %385 : vector<1x32xf32> to vector<2x32xf32>
    %406 = arith.mulf %404, %405 : vector<2x32xf32>
    %407 = vector.broadcast %386 : vector<1x32xf32> to vector<2x32xf32>
    %408 = arith.addf %406, %407 : vector<2x32xf32>
    %c0_209 = arith.constant 0 : index
    %c0_210 = arith.constant 0 : index
    %409 = vector.load %arg23[%c0_209, %c0_210] : memref<32x8xf32, #tpu.memory_space<vmem>>, vector<32x8xf32>
    %cst_211 = arith.constant dense<0.000000e+00> : vector<2x8xf32>
    %410 = tpu.matmul %408, %409, %cst_211 {dimension_numbers = #tpu.dot_dimension_numbers<[1], [0], [0], [1], [0, 0, 1, 1], [], []>} : vector<2x32xf32>, vector<32x8xf32>, vector<2x8xf32> -> vector<2x8xf32>
    %c0_212 = arith.constant 0 : index
    %c0_213 = arith.constant 0 : index
    %411 = vector.load %arg24[%c0_212, %c0_213] : memref<1x8xf32, #tpu.memory_space<vmem>>, vector<1x8xf32>
    %412 = vector.broadcast %411 : vector<1x8xf32> to vector<2x8xf32>
    %413 = arith.addf %410, %412 : vector<2x8xf32>
    %c0_214 = arith.constant 0 : index
    %c0_215 = arith.constant 0 : index
    %414 = vector.load %arg25[%c0_214, %c0_215] : memref<2x8xf32, #tpu.memory_space<vmem>>, vector<2x8xf32>
    tpu.vector_store %arg25[%c0_214, %c0_215], %413 {strides = array<i32>} : memref<2x8xf32, #tpu.memory_space<vmem>>, vector<2x8xf32>,
    return
  }
  func.func @transform_0(%arg0: i32) -> (i32, i32) {
    %c0_i32 = arith.constant 0 : i32
    %c0_i32_0 = arith.constant 0 : i32
    %c0_i32_1 = arith.constant 0 : i32
    return %c0_i32, %c0_i32_0 : i32, i32
  }
  func.func @transform_1(%arg0: i32) -> (i32, i32) {
    %c0_i32 = arith.constant 0 : i32
    %c0_i32_0 = arith.constant 0 : i32
    %c0_i32_1 = arith.constant 0 : i32
    return %c0_i32, %c0_i32_0 : i32, i32
  }
  func.func @transform_2(%arg0: i32) -> (i32, i32) {
    %c0_i32 = arith.constant 0 : i32
    %c0_i32_0 = arith.constant 0 : i32
    %c0_i32_1 = arith.constant 0 : i32
    return %c0_i32, %c0_i32_0 : i32, i32
  }
  func.func @transform_3(%arg0: i32) -> (i32, i32) {
    %c0_i32 = arith.constant 0 : i32
    %c0_i32_0 = arith.constant 0 : i32
    %c0_i32_1 = arith.constant 0 : i32
    return %c0_i32, %c0_i32_0 : i32, i32
  }
  func.func @transform_4(%arg0: i32) -> (i32, i32, i32) {
    %c0_i32 = arith.constant 0 : i32
    %c0_i32_0 = arith.constant 0 : i32
    %c0_i32_1 = arith.constant 0 : i32
    %c0_i32_2 = arith.constant 0 : i32
    return %c0_i32, %c0_i32_0, %c0_i32_1 : i32, i32, i32
  }
  func.func @transform_5(%arg0: i32) -> (i32, i32, i32) {
    %c0_i32 = arith.constant 0 : i32
    %c0_i32_0 = arith.constant 0 : i32
    %c0_i32_1 = arith.constant 0 : i32
    %c0_i32_2 = arith.constant 0 : i32
    return %c0_i32, %c0_i32_0, %c0_i32_1 : i32, i32, i32
  }
  func.func @transform_6(%arg0: i32) -> (i32, i32, i32) {
    %c0_i32 = arith.constant 0 : i32
    %c0_i32_0 = arith.constant 0 : i32
    %c0_i32_1 = arith.constant 0 : i32
    %c0_i32_2 = arith.constant 0 : i32
    return %c0_i32, %c0_i32_0, %c0_i32_1 : i32, i32, i32
  }
  func.func @transform_7(%arg0: i32) -> (i32, i32, i32) {
    %c0_i32 = arith.constant 0 : i32
    %c0_i32_0 = arith.constant 0 : i32
    %c0_i32_1 = arith.constant 0 : i32
    %c0_i32_2 = arith.constant 0 : i32
    return %c0_i32, %c0_i32_0, %c0_i32_1 : i32, i32, i32
  }
  func.func @transform_8(%arg0: i32) -> (i32, i32, i32) {
    %c0_i32 = arith.constant 0 : i32
    %c0_i32_0 = arith.constant 0 : i32
    %c0_i32_1 = arith.constant 0 : i32
    %c0_i32_2 = arith.constant 0 : i32
    return %c0_i32, %c0_i32_0, %c0_i32_1 : i32, i32, i32
  }
  func.func @transform_9(%arg0: i32) -> (i32, i32, i32) {
    %c0_i32 = arith.constant 0 : i32
    %c0_i32_0 = arith.constant 0 : i32
    %c0_i32_1 = arith.constant 0 : i32
    %c0_i32_2 = arith.constant 0 : i32
    return %c0_i32, %c0_i32_0, %c0_i32_1 : i32, i32, i32
  }
  func.func @transform_10(%arg0: i32) -> (i32, i32, i32) {
    %c0_i32 = arith.constant 0 : i32
    %c0_i32_0 = arith.constant 0 : i32
    %c0_i32_1 = arith.constant 0 : i32
    %c0_i32_2 = arith.constant 0 : i32
    return %c0_i32, %c0_i32_0, %c0_i32_1 : i32, i32, i32
  }
  func.func @transform_11(%arg0: i32) -> (i32, i32, i32) {
    %c0_i32 = arith.constant 0 : i32
    %c0_i32_0 = arith.constant 0 : i32
    %c0_i32_1 = arith.constant 0 : i32
    %c0_i32_2 = arith.constant 0 : i32
    return %c0_i32, %c0_i32_0, %c0_i32_1 : i32, i32, i32
  }
  func.func @transform_12(%arg0: i32) -> (i32, i32, i32) {
    %c0_i32 = arith.constant 0 : i32
    %c0_i32_0 = arith.constant 0 : i32
    %c0_i32_1 = arith.constant 0 : i32
    %c0_i32_2 = arith.constant 0 : i32
    return %c0_i32, %c0_i32_0, %c0_i32_1 : i32, i32, i32
  }
  func.func @transform_13(%arg0: i32) -> (i32, i32, i32) {
    %c0_i32 = arith.constant 0 : i32
    %c0_i32_0 = arith.constant 0 : i32
    %c0_i32_1 = arith.constant 0 : i32
    %c0_i32_2 = arith.constant 0 : i32
    return %c0_i32, %c0_i32_0, %c0_i32_1 : i32, i32, i32
  }
  func.func @transform_14(%arg0: i32) -> (i32, i32, i32) {
    %c0_i32 = arith.constant 0 : i32
    %c0_i32_0 = arith.constant 0 : i32
    %c0_i32_1 = arith.constant 0 : i32
    %c0_i32_2 = arith.constant 0 : i32
    return %c0_i32, %c0_i32_0, %c0_i32_1 : i32, i32, i32
  }
  func.func @transform_15(%arg0: i32) -> (i32, i32, i32) {
    %c0_i32 = arith.constant 0 : i32
    %c0_i32_0 = arith.constant 0 : i32
    %c0_i32_1 = arith.constant 0 : i32
    %c0_i32_2 = arith.constant 0 : i32
    return %c0_i32, %c0_i32_0, %c0_i32_1 : i32, i32, i32
  }
  func.func @transform_16(%arg0: i32) -> (i32, i32, i32) {
    %c0_i32 = arith.constant 0 : i32
    %c0_i32_0 = arith.constant 0 : i32
    %c0_i32_1 = arith.constant 0 : i32
    %c0_i32_2 = arith.constant 0 : i32
    return %c0_i32, %c0_i32_0, %c0_i32_1 : i32, i32, i32
  }
  func.func @transform_17(%arg0: i32) -> (i32, i32, i32) {
    %c0_i32 = arith.constant 0 : i32
    %c0_i32_0 = arith.constant 0 : i32
    %c0_i32_1 = arith.constant 0 : i32
    %c0_i32_2 = arith.constant 0 : i32
    return %c0_i32, %c0_i32_0, %c0_i32_1 : i32, i32, i32
  }
  func.func @transform_18(%arg0: i32) -> (i32, i32, i32) {
    %c0_i32 = arith.constant 0 : i32
    %c0_i32_0 = arith.constant 0 : i32
    %c0_i32_1 = arith.constant 0 : i32
    %c0_i32_2 = arith.constant 0 : i32
    return %c0_i32, %c0_i32_0, %c0_i32_1 : i32, i32, i32
  }
  func.func @transform_19(%arg0: i32) -> (i32, i32) {
    %c0_i32 = arith.constant 0 : i32
    %c0_i32_0 = arith.constant 0 : i32
    %c0_i32_1 = arith.constant 0 : i32
    return %c0_i32, %c0_i32_0 : i32, i32
  }
  func.func @transform_20(%arg0: i32) -> (i32, i32) {
    %c0_i32 = arith.constant 0 : i32
    %c0_i32_0 = arith.constant 0 : i32
    %c0_i32_1 = arith.constant 0 : i32
    return %c0_i32, %c0_i32_0 : i32, i32
  }
  func.func @transform_21(%arg0: i32) -> (i32, i32) {
    %c0_i32 = arith.constant 0 : i32
    %c0_i32_0 = arith.constant 0 : i32
    %c0_i32_1 = arith.constant 0 : i32
    return %c0_i32, %c0_i32_0 : i32, i32
  }
  func.func @transform_22(%arg0: i32) -> (i32, i32) {
    %c0_i32 = arith.constant 0 : i32
    %c0_i32_0 = arith.constant 0 : i32
    %c0_i32_1 = arith.constant 0 : i32
    return %c0_i32, %c0_i32_0 : i32, i32
  }
  func.func @transform_23(%arg0: i32) -> (i32, i32) {
    %c0_i32 = arith.constant 0 : i32
    %c0_i32_0 = arith.constant 0 : i32
    %c0_i32_1 = arith.constant 0 : i32
    return %c0_i32, %c0_i32_0 : i32, i32
  }
  func.func @transform_24(%arg0: i32) -> (i32, i32) {
    %c0_i32 = arith.constant 0 : i32
    %c0_i32_0 = arith.constant 0 : i32
    %c0_i32_1 = arith.constant 0 : i32
    return %c0_i32, %c0_i32_0 : i32, i32
  }
}

</mosaic_0001>

<bundles_post_ra>
// kernel: beit_seq_clf_forward.1
= control target key start
LH: loop header
LB: loop body
LE: loop exit
PB: predicated region body
PF: predicated region fallthrough
CT: control target
= control target key end

     0   :  { %s8905_s0 = inlined_call_operand.vmem [shape: f32[32,48], index: 0, kind: input, shape index: {}]   ;;  %s8906_s1 = inlined_call_operand.vmem [shape: f32[48,32], index: 1, kind: input, shape index: {}]   ;;  %s8907_s2 = inlined_call_operand.vmem [shape: f32[1,32], index: 2, kind: input, shape index: {}]   ;;  %s8908_s3 = inlined_call_operand.vmem [shape: f32[1,32], index: 3, kind: input, shape index: {}]   ;;  %s8909_s4 = inlined_call_operand.vmem [shape: f32[2,1,32], index: 4, kind: input, shape index: {}]   ;;  %s8910_s5 = inlined_call_operand.vmem [shape: f32[2,1,32], index: 5, kind: input, shape index: {}]   ;;  %s8911_s6 = inlined_call_operand.vmem [shape: f32[2,32,96], index: 6, kind: input, shape index: {}]   ;;  %s8912_s7 = inlined_call_operand.vmem [shape: f32[2,1,96], index: 7, kind: input, shape index: {}]   ;;  %s8913_s8 = inlined_call_operand.vmem [shape: f32[8,48,48], index: 8, kind: input, shape index: {}]   ;;  %s8914_s9 = inlined_call_operand.vmem [shape: f32[2,32,32], index: 9, kind: input, shape index: {}]   ;;  %s8915_s10 = inlined_call_operand.vmem [shape: f32[2,1,32], index: 10, kind: input, shape index: {}]   ;;  %s8916_s11 = inlined_call_operand.vmem [shape: f32[2,1,32], index: 11, kind: input, shape index: {}]   ;;  %s8917_s12 = inlined_call_operand.vmem [shape: f32[2,1,32], index: 12, kind: input, shape index: {}]   ;;  %s8918_s13 = inlined_call_operand.vmem [shape: f32[2,1,32], index: 13, kind: input, shape index: {}]   ;;  %s8919_s14 = inlined_call_operand.vmem [shape: f32[2,32,128], index: 14, kind: input, shape index: {}]   ;;  %s8920_s15 = inlined_call_operand.vmem [shape: f32[2,1,128], index: 15, kind: input, shape index: {}]   ;;  %s8921_s16 = inlined_call_operand.vmem [shape: f32[2,128,32], index: 16, kind: input, shape index: {}]   ;;  %s8922_s17 = inlined_call_operand.vmem [shape: f32[2,1,32], index: 17, kind: input, shape index: {}]   ;;  %s8923_s18 = inlined_call_operand.vmem [shape: f32[2,1,32], index: 18, kind: input, shape index: {}]   ;;  %s8924_s19 = inlined_call_operand.vmem [shape: f32[2,48], index: 19, kind: input, shape index: {}]   ;;  %s8925_s20 = inlined_call_operand.vmem [shape: f32[1,32], index: 20, kind: input, shape index: {}]   ;;  %s8926_s21 = inlined_call_operand.vmem [shape: f32[1,32], index: 21, kind: input, shape index: {}]   ;;  %s8927_s22 = inlined_call_operand.vmem [shape: f32[32,8], index: 22, kind: input, shape index: {}]   ;;  %s8928_s23 = inlined_call_operand.vmem [shape: f32[1,8], index: 23, kind: input, shape index: {}]   ;;  %s8929_s24 = inlined_call_operand.hbm [shape: f32[2,8], index: 24, kind: output, shape index: {}]  }
   0x1   :  { %8956 = sst [smem:[#allocation6_spill]] %s8905_s0 }
   0x2   :  { %8957 = sst [smem:[#allocation7_spill]] %s8906_s1 }
   0x3   :  { %8958 = sst [smem:[#allocation8_spill]] %s8907_s2 }
   0x4   :  { %8959 = sst [smem:[#allocation9_spill]] %s8908_s3 }
   0x5   :  { %8960 = sst [smem:[#allocation10_spill]] %s8909_s4 }
   0x6   :  { %8961 = sst [smem:[#allocation11_spill]] %s8910_s5 }
   0x7   :  { %8962 = sst [smem:[#allocation12_spill]] %s8911_s6 }
   0x8   :  { %8963 = sst [smem:[#allocation13_spill]] %s8912_s7 }
   0x9   :  { %8964 = sst [smem:[#allocation14_spill]] %s8913_s8 }
   0xa   :  { %s8965_s27 = sld [smem:[#allocation7_spill]]  ;;  %vm95_vm0 = vcmask 392192  }
   0xb   :  { %s8966_s30 = sld [smem:[#allocation6_spill]] }
  0x10   :  { %v87_v0 = vld [vmem:[%s8965_s27 + $0x28] sm:$0xff]  ;;  %v86_v1 = vld [vmem:[%s8965_s27 + $0x20] sm:$0xff]  ;;  %v85_v2 = vld [vmem:[%s8965_s27 + $0x18] sm:$0xff] }
  0x11   :  { %6172 = vmatprep.subr.mxu1 %v87_v0  ;;  %v78_v3 = vld [vmem:[%s8966_s30] sm:$0xff] }
  0x12   :  { %6173 = vmatpush3.msra.mxu1 %v87_v0  ;;  %6184 = vmatprep.mubr.msk.f32.mxu1 %vm95_vm0, %v78_v3 }
  0x13   :  { %6174 = vmatprep.subr.mxu1 %v86_v1 }
  0x14   :  { %29 = vsyncpa [#allocation4], 0  ;;  %6175 = vmatpush3.msra.mxu1 %v86_v1  ;;  %v84_v4 = vld [vmem:[%s8965_s27 + $0x10] sm:$0xff]  ;;  %v83_v5 = vld [vmem:[%s8965_s27 + $0x8] sm:$0xff]  ;;  %vm193_vm1 = vcmask 261120   ;;  %v7098_v10 = vmov 0.0  }
  0x15   :  { %6176 = vmatprep.subr.mxu1 %v85_v2  ;;  %v82_v6 = vld [vmem:[%s8965_s27] sm:$0xff]  ;;  %v79_v7 = vld [vmem:[%s8966_s30 + $0x8] sm:$0xff]  ;;  %v80_v8 = vld [vmem:[%s8966_s30 + $0x10] sm:$0xff]  ;;  %195 = vst.msk [vmem:[#allocation2 + $0x8] sm:$0xff] %vm193_vm1, %v7098_v10  ;;  %vm201_vm2 = vcmask 253952   ;;  %s8968_s1 = sld [smem:[#allocation8_spill]] }
  0x16   :  { %6177 = vmatpush3.msra.mxu1 %v85_v2  ;;  %v81_v9 = vld [vmem:[%s8966_s30 + $0x18] sm:$0xff]  ;;  %196 = vst.msk [vmem:[#allocation2 + $0x10] sm:$0xff] %vm193_vm1, %v7098_v10  ;;  %194 = vst.msk [vmem:[#allocation2] sm:$0xff] %vm193_vm1, %v7098_v10  ;;  %s8967_s30 = sld [smem:[#allocation9_spill]]  ;;  %vm472_vm3 = vcmask 64512   ;;  %s7099_s2 = smov 120  }
  0x17   :  { %6178 = vmatprep.subr.mxu1 %v84_v4  ;;  %197 = vst.msk [vmem:[#allocation2 + $0x18] sm:$0xff] %vm193_vm1, %v7098_v10  ;;  %198 = vst.msk [vmem:[#allocation2 + $0x20] sm:$0xff] %vm193_vm1, %v7098_v10  ;;  %s8969_s28 = sld [smem:[#allocation12_spill]]  ;;  %s7100_s29 = smov 112   ;;  %vm7110_vm4 = vmmov 0   ;;  %vm5364_vm5 = vcmask 254976  }
  0x18   :  { %6179 = vmatpush3.msra.mxu1 %v84_v4  ;;  %199 = vst.msk [vmem:[#allocation2 + $0x28] sm:$0xff] %vm193_vm1, %v7098_v10  ;;  %s8970_s25 = sld [smem:[#allocation10_spill]]  ;;  %s8952_s0 = smov 96   ;;  %vm5476_vm6 = vcmask 58368  }
  0x19   :  { %6180 = vmatprep.subr.mxu1 %v83_v5  ;;  %s8972_s6 = sld [smem:[#allocation13_spill]]  ;;  %s8948_s5 = smov 104  }
  0x1a   :  { %6181 = vmatpush3.msra.mxu1 %v83_v5  ;;  %s8946_s7 = smov 88   ;;  %s8944_s3 = smov 72  }
  0x1b   :  { %6182 = vmatprep.subr.mxu1 %v82_v6  ;;  %v5492_v13 = vld [vmem:[%s8968_s1] ss:$0 sm:$0xff]  ;;  %s8971_s1 = sld [smem:[#allocation11_spill]]  ;;  %s8942_s8 = smov 80  }
  0x1c   :  { %6183 = vmatpush3.msra.mxu1 %v82_v6  ;;  %v200_v11 = vld [vmem:[%s8967_s30] sm:$0x1]  ;;  %s8940_s4 = smov 48   ;;  %s8938_s26 = smov 56  }
  0x1d   :  { %6185 = vmatmul.mubr.msk.f32.vlgmr.msra.gmra.mxu1 %vm95_vm0, %v79_v7  ;;  %202 = vst.msk [vmem:[#allocation2] sm:$0x1] %vm201_vm2, %v200_v11  ;;  %v205_v12 = vld [vmem:[%s8967_s30] sm:$0x1]  ;;  %v323_v0 = vld [vmem:[%s8969_s28 + $0x18] sm:$0xff]  ;;  %v322_v1 = vld [vmem:[%s8969_s28 + $0x10] sm:$0xff] }
  0x1e   :  { %6187 = vmatprep.mubr.msk.f32.mxu1 %vm95_vm0, %v80_v8  ;;  %206 = vst.msk [vmem:[#allocation2 + $0x18] sm:$0x1] %vm201_vm2, %v205_v12  ;;  %6190 = vmatprep.subr.mxu1 %v323_v0  ;;  %v321_v2 = vld [vmem:[%s8969_s28 + $0x8] sm:$0xff]  ;;  %v320_v3 = vld [vmem:[%s8969_s28] sm:$0xff]  ;;  %s8973_s30 = sld [smem:[#allocation14_spill]]  ;;  %s8954_s27 = smov 40  }
  0x1f   :  { %6191 = vmatpush3.msra.mxu1 %v323_v0 }
  0x20   :  { %6192 = vmatprep.subr.mxu1 %v322_v1 }
  0x21   :  { %6188 = vmatmul.mubr.msk.f32.gmra.mxu1 %vm95_vm0, %v81_v9 }
  0x22   :  { %6193 = vmatpush3.msra.mxu1 %v322_v1 }
  0x23   :  { %6194 = vmatprep.subr.mxu1 %v321_v2 }
  0x24   :  { %6195 = vmatpush3.msra.mxu1 %v321_v2 }
  0x25   :  { %6196 = vmatprep.subr.mxu1 %v320_v3 }
  0x26   :  { %6197 = vmatpush3.msra.mxu1 %v320_v3 }
  0xdd   :  { %v6186_v14 = vpop.f32.mrf.mxu1 }
  0xde   :  { %v180_v15 = vadd.f32 %v6186_v14, %v5492_v13 }
  0xdf   :  { %v174_v16 = vpop.f32.mrf.mxu1 }
  0xe0   :  { %204 = vst.msk [vmem:[#allocation2 + $0x9] sm:$0xff] %vm193_vm1, %v180_v15  ;;  %v175_v17 = vadd.f32 %v5492_v13, %v174_v16 }
  0xe1   :  { %v6189_v18 = vpop.f32.mrf.mxu1 }
  0xe2   :  { %203 = vst.msk [vmem:[#allocation2 + $0x1] sm:$0xff] %vm193_vm1, %v175_v17  ;;  %v190_v19 = vadd.f32 %v6189_v18, %v5492_v13 }
  0xe3   :  { %v184_v20 = vpop.f32.mrf.mxu1 }
  0xe4   :  { %208 = vst.msk [vmem:[#allocation2 + $0x21] sm:$0xff] %vm193_vm1, %v190_v19  ;;  %v185_v21 = vadd.f32 %v5492_v13, %v184_v20 }
  0xe6   :  { %207 = vst.msk [vmem:[#allocation2 + $0x19] sm:$0xff] %vm193_vm1, %v185_v21 }
  0xe7   :  { %v211_v22 = vld [vmem:[#allocation2 + $0x10] sm:$0xff] }
  0xe8   :  { %v223_v23 = vsel %vm193_vm1, %v211_v22, 0.0 }
  0xe9   :  { %224 = vadd.xlane.f32.xlu1 %v223_v23  ;;  %v209_v24 = vld [vmem:[#allocation2] sm:$0xff]  ;;  %v210_v26 = vld [vmem:[#allocation2 + $0x8] sm:$0xff] }
  0xea   :  { %v217_v25 = vsel %vm193_vm1, %v209_v24, 0.0  ;;  %v220_v29 = vsel %vm193_vm1, %v210_v26, 0.0 }
  0xeb   :  { %218 = vadd.xlane.f32.xlu0 %v217_v25  ;;  %v214_v30 = vld [vmem:[#allocation2 + $0x28] sm:$0xff] }
  0xec   :  { %v232_v32 = vsel %vm193_vm1, %v214_v30, 0.0 }
  0xed   :  { %v212_v27 = vld [vmem:[#allocation2 + $0x18] sm:$0xff]  ;;  %v213_v31 = vld [vmem:[#allocation2 + $0x20] sm:$0xff] }
  0xee   :  { %v226_v28 = vsel %vm193_vm1, %v212_v27, 0.0  ;;  %v229_v33 = vsel %vm193_vm1, %v213_v31, 0.0 }
  0xef   :  { %227 = vadd.xlane.f32.xlu1 %v226_v28  ;;  %221 = vadd.xlane.f32.xlu0 %v220_v29 }
  0xf3   :  { %233 = vadd.xlane.f32.xlu1 %v232_v32  ;;  %230 = vadd.xlane.f32.xlu0 %v229_v33 }
 0x172   :  { %v225_v34 = vpop.xlane.xlu1 %224 }
 0x173   :  { %v238_v35 = vmul.f32 0.03125, %v225_v34 }
 0x174   :  { %v219_v36 = vpop.xlane.xlu0 %218 }
 0x175   :  { %v236_v37 = vmul.f32 0.03125, %v219_v36  ;;  %v7302_v38 = vsub.f32 %v211_v22, %v238_v35 }
 0x177   :  { %v7304_v39 = vsub.f32 %v209_v24, %v236_v37  ;;  %v250_v45 = vmul.f32 %v7302_v38, %v7302_v38  ;;  %v5497_v24 = vld [vmem:[%s8970_s25] ss:$0 sm:$0xff] }
 0x178   :  { %v228_v40 = vpop.xlane.xlu1 %227  ;;  %v222_v41 = vpop.xlane.xlu0 %221 }
 0x179   :  { %v239_v42 = vmul.f32 0.03125, %v228_v40  ;;  %v237_v43 = vmul.f32 0.03125, %v222_v41  ;;  %v248_v44 = vmul.f32 %v7304_v39, %v7304_v39  ;;  %v260_v54 = vsel %vm193_vm1, %v250_v45, 0.0 }
 0x17b   :  { %v7310_v46 = vsub.f32 %v212_v27, %v239_v42  ;;  %v7312_v47 = vsub.f32 %v210_v26, %v237_v43  ;;  %v254_v48 = vsel %vm193_vm1, %v248_v44, 0.0  ;;  %v5498_v26 = vld [vmem:[%s8971_s1] ss:$0 sm:$0xff] }
 0x17c   :  { %v234_v49 = vpop.xlane.xlu1 %233  ;;  %255 = vadd.xlane.f32.xlu0 %v254_v48  ;;  %v231_v50 = vpop.xlane.xlu0 %230 }
 0x17d   :  { %v241_v51 = vmul.f32 0.03125, %v234_v49  ;;  %v240_v52 = vmul.f32 0.03125, %v231_v50  ;;  %v249_v53 = vmul.f32 %v7312_v47, %v7312_v47  ;;  %v251_v58 = vmul.f32 %v7310_v46, %v7310_v46  ;;  %v5499_v50 = vld [vmem:[%s8972_s6] ss:$0 sm:$0xff] }
 0x17f   :  { %v7318_v55 = vsub.f32 %v214_v30, %v241_v51  ;;  %v7320_v56 = vsub.f32 %v213_v31, %v240_v52  ;;  %v257_v57 = vsel %vm193_vm1, %v249_v53, 0.0  ;;  %v263_v60 = vsel %vm193_vm1, %v251_v58, 0.0 }
 0x180   :  { %261 = vadd.xlane.f32.xlu0 %v260_v54  ;;  %258 = vadd.xlane.f32.xlu1 %v257_v57 }
 0x181   :  { %v252_v59 = vmul.f32 %v7320_v56, %v7320_v56  ;;  %v253_v62 = vmul.f32 %v7318_v55, %v7318_v55 }
 0x183   :  { %v266_v61 = vsel %vm193_vm1, %v252_v59, 0.0  ;;  %v269_v63 = vsel %vm193_vm1, %v253_v62, 0.0 }
 0x184   :  { %264 = vadd.xlane.f32.xlu1 %v263_v60  ;;  %267 = vadd.xlane.f32.xlu0 %v266_v61 }
 0x188   :  { %270 = vadd.xlane.f32.xlu1 %v269_v63 }
 0x205   :  { %v256_v4 = vpop.xlane.xlu0 %255 }
 0x206   :  { %v272_v5 = vmul.f32 0.03125, %v256_v4 }
 0x208   :  { %v278_v6 = vadd.f32 1e-12, %v272_v5 }
 0x209   :  { %v259_v7 = vpop.xlane.xlu1 %258  ;;  %v262_v8 = vpop.xlane.xlu0 %261 }
 0x20a   :  { %6804 = vrsqrt.f32 %v278_v6  ;;  %v273_v9 = vmul.f32 0.03125, %v259_v7  ;;  %v274_v11 = vmul.f32 0.03125, %v262_v8 }
 0x20c   :  { %v279_v12 = vadd.f32 1e-12, %v273_v9  ;;  %v280_v13 = vadd.f32 1e-12, %v274_v11 }
 0x20d   :  { %v265_v14 = vpop.xlane.xlu1 %264  ;;  %v268_v15 = vpop.xlane.xlu0 %267 }
 0x20e   :  { %6806 = vrsqrt.f32 %v279_v12  ;;  %v275_v16 = vmul.f32 0.03125, %v265_v14  ;;  %v276_v17 = vmul.f32 0.03125, %v268_v15  ;;  %v449_v12 = vld [vmem:[%s8973_s30 + $0x8] sm:$0xff]  ;;  %v448_v14 = vld [vmem:[%s8973_s30] sm:$0xff] }
 0x20f   :  { %6808 = vrsqrt.f32 %v280_v13 }
 0x210   :  { %v281_v18 = vadd.f32 1e-12, %v275_v16  ;;  %v282_v19 = vadd.f32 1e-12, %v276_v17  ;;  %v451_v17 = vld [vmem:[%s8973_s30 + $0x18] sm:$0xff] }
 0x211   :  { %v271_v20 = vpop.xlane.xlu1 %270 }
 0x212   :  { %6810 = vrsqrt.f32 %v281_v18  ;;  %v277_v21 = vmul.f32 0.03125, %v271_v20 }
 0x213   :  { %6812 = vrsqrt.f32 %v282_v19 }
 0x214   :  { %v283_v22 = vadd.f32 1e-12, %v277_v21 }
 0x216   :  { %6814 = vrsqrt.f32 %v283_v22 }
 0x217   :  { %v6805_v23 = vpop.eup %6804 }
 0x218   :  { %v290_v25 = vmul.f32 %v6805_v23, %v7304_v39 }
 0x21a   :  { %v302_v27 = vmul.f32 %v5497_v24, %v290_v25  ;;  %v453_v25 = vld [vmem:[%s8973_s30 + $0x28] sm:$0xff] }
 0x21b   :  { %v6807_v28 = vpop.eup %6806 }
 0x21c   :  { %v6809_v29 = vpop.eup %6808  ;;  %v291_v30 = vmul.f32 %v6807_v28, %v7312_v47  ;;  %v314_v31 = vadd.f32 %v5498_v26, %v302_v27 }
 0x21d   :  { %v292_v32 = vmul.f32 %v6809_v29, %v7302_v38 }
 0x21e   :  { %6198 = vmatprep.mubr.msk.f32.mxu1 %vm193_vm1, %v314_v31  ;;  %v303_v33 = vmul.f32 %v5497_v24, %v291_v30  ;;  %v452_v31 = vld [vmem:[%s8973_s30 + $0x20] sm:$0xff] }
 0x21f   :  { %v6811_v34 = vpop.eup %6810  ;;  %v304_v35 = vmul.f32 %v5497_v24, %v292_v32 }
 0x220   :  { %v6813_v36 = vpop.eup %6812  ;;  %v315_v37 = vadd.f32 %v5498_v26, %v303_v33  ;;  %v293_v39 = vmul.f32 %v6811_v34, %v7310_v46 }
 0x221   :  { %v316_v40 = vadd.f32 %v5498_v26, %v304_v35  ;;  %v294_v41 = vmul.f32 %v6813_v36, %v7320_v56 }
 0x222   :  { %6199 = vmatmul.mubr.msk.f32.vlgmr.msra.gmra.mxu1 %vm193_vm1, %v315_v37  ;;  %v305_v42 = vmul.f32 %v5497_v24, %v293_v39 }
 0x223   :  { %v6815_v43 = vpop.eup %6814  ;;  %6201 = vmatprep.mubr.msk.f32.mxu1 %vm193_vm1, %v316_v40  ;;  %v306_v44 = vmul.f32 %v5497_v24, %v294_v41 }
 0x224   :  { %v317_v38 = vadd.f32 %v5498_v26, %v305_v42  ;;  %v295_v45 = vmul.f32 %v6815_v43, %v7318_v55 }
 0x225   :  { %v318_v47 = vadd.f32 %v5498_v26, %v306_v44 }
 0x226   :  { %6202 = vmatmul.mubr.msk.f32.gmra.mxu1 %vm193_vm1, %v317_v38  ;;  %v307_v48 = vmul.f32 %v5497_v24, %v295_v45  ;;  %v450_v24 = vld [vmem:[%s8973_s30 + $0x10] sm:$0xff] }
 0x227   :  { %6204 = vmatprep.mubr.msk.f32.mxu1 %vm193_vm1, %v318_v47 }
 0x228   :  { %v319_v46 = vadd.f32 %v5498_v26, %v307_v48 }
 0x22a   :  { %6205 = vmatmul.mubr.msk.f32.gmra.mxu1 %vm193_vm1, %v319_v46 }
 0x2e2   :  { %v6200_v49 = vpop.f32.mrf.mxu1 }
 0x2e3   :  { %v7375_v59 = vadd.f32 %v6200_v49, %v5499_v50 }
 0x2e4   :  { %v415_v51 = vpop.f32.mrf.mxu1 }
 0x2e5   :  { %v7365_v52 = vadd.f32 %v5499_v50, %v415_v51 }
 0x2e6   :  { %v6203_v53 = vpop.f32.mrf.mxu1 }
 0x2e7   :  { %6219 = vmatprep.mubr.msk.f32.mxu1 %vm472_vm3, %v7365_v52  ;;  %v7379_v60 = vadd.f32 %v6203_v53, %v5499_v50 }
 0x2e8   :  { %v425_v54 = vpop.f32.mrf.mxu1 }
 0x2e9   :  { %v7385_v61 = vadd.f32 %v5499_v50, %v425_v54 }
 0x2ea   :  { %v6206_v55 = vpop.f32.mrf.mxu1 }
 0x2eb   :  { %v7369_v56 = vadd.f32 %v6206_v55, %v5499_v50 }
 0x2ec   :  { %v435_v57 = vpop.f32.mrf.mxu1 }
 0x2ed   :  { %v7371_v58 = vadd.f32 %v5499_v50, %v435_v57  ;;  %470 = vrot.lane.b32.xlu0 %v7369_v56, %s7099_s2 }
 0x2ef   :  { %468 = vrot.lane.b32.xlu1 %v7371_v58, %s7099_s2 }
 0x2f1   :  { %462 = vrot.lane.b32.xlu0 %v7375_v59, %s7099_s2 }
 0x2f3   :  { %466 = vrot.lane.b32.xlu1 %v7379_v60, %s7099_s2 }
 0x2f5   :  { %668 = vrot.lane.b32.xlu0 %v7369_v56, %s7100_s29 }
 0x2f7   :  { %464 = vrot.lane.b32.xlu1 %v7385_v61, %s7099_s2 }
 0x2f9   :  { %664 = vrot.lane.b32.xlu0 %v7379_v60, %s7100_s29 }
 0x2fb   :  { %460 = vrot.lane.b32.xlu1 %v7365_v52, %s7099_s2 }
 0x2fd   :  { %818 = vrot.lane.b32.xlu0 %v7369_v56, %s8952_s0 }
 0x2ff   :  { %662 = vrot.lane.b32.xlu1 %v7385_v61, %s7100_s29 }
 0x303   :  { %660 = vrot.lane.b32.xlu1 %v7375_v59, %s7100_s29 }
 0x307   :  { %658 = vrot.lane.b32.xlu1 %v7365_v52, %s7100_s29 }
 0x30b   :  { %666 = vrot.lane.b32.xlu1 %v7371_v58, %s7100_s29 }
 0x30f   :  { %816 = vrot.lane.b32.xlu1 %v7371_v58, %s8952_s0 }
 0x35f   :  { %v471_v62 = vpop.permute.xlu0 %470 }
 0x360   :  { %6207 = vmatprep.subr.msk.mxu1 %vm472_vm3, %v471_v62 }
 0x361   :  { %6208 = vmatpush3.xpose.msk.msra.mxu1 %vm472_vm3, %v471_v62  ;;  %v469_v63 = vpop.permute.xlu1 %468 }
 0x362   :  { %6209 = vmatprep.subr.msk.mxu1 %vm472_vm3, %v469_v63 }
 0x363   :  { %v463_v0 = vpop.permute.xlu0 %462 }
 0x365   :  { %6210 = vmatpush3.xpose.msk.msra.mxu1 %vm472_vm3, %v469_v63  ;;  %v467_v1 = vpop.permute.xlu1 %466 }
 0x366   :  { %6211 = vmatprep.subr.msk.mxu1 %vm472_vm3, %v467_v1 }
 0x367   :  { %v669_v2 = vpop.permute.xlu0 %668 }
 0x368   :  { %6228 = vmatprep.subr.mxu0 %v669_v2 }
 0x369   :  { %6212 = vmatpush3.xpose.msk.msra.mxu1 %vm472_vm3, %v467_v1  ;;  %6229 = vmatpush3.msra.mxu0 %v669_v2  ;;  %v465_v3 = vpop.permute.xlu1 %464 }
 0x36a   :  { %6213 = vmatprep.subr.msk.mxu1 %vm472_vm3, %v465_v3 }
 0x36b   :  { %v665_v9 = vpop.permute.xlu0 %664 }
 0x36d   :  { %6214 = vmatpush3.xpose.msk.msra.mxu1 %vm472_vm3, %v465_v3  ;;  %v461_v4 = vpop.permute.xlu1 %460 }
 0x36e   :  { %6215 = vmatprep.subr.msk.mxu1 %vm472_vm3, %v463_v0 }
 0x36f   :  { %v7429_v11 = vpop.permute.xlu0 %818 }
 0x371   :  { %6216 = vmatpush3.xpose.msk.msra.mxu1 %vm472_vm3, %v463_v0  ;;  %v663_v5 = vpop.permute.xlu1 %662 }
 0x372   :  { %6217 = vmatprep.subr.msk.mxu1 %vm472_vm3, %v461_v4 }
 0x375   :  { %6218 = vmatpush3.xpose.msk.msra.mxu1 %vm472_vm3, %v461_v4  ;;  %v661_v6 = vpop.permute.xlu1 %660 }
 0x378   :  { %6220 = vmatmul.mubr.msk.f32.vlgmr.msra.gmra.mxu1 %vm472_vm3, %v7375_v59 }
 0x379   :  { %6222 = vmatprep.mubr.msk.f32.mxu1 %vm472_vm3, %v7385_v61  ;;  %v659_v7 = vpop.permute.xlu1 %658 }
 0x37c   :  { %6223 = vmatmul.mubr.msk.f32.gmra.mxu1 %vm472_vm3, %v7379_v60 }
 0x37d   :  { %6225 = vmatprep.mubr.msk.f32.mxu1 %vm472_vm3, %v7371_v58  ;;  %v667_v8 = vpop.permute.xlu1 %666 }
 0x37e   :  { %6230 = vmatprep.subr.mxu0 %v667_v8 }
 0x37f   :  { %6231 = vmatpush3.msra.mxu0 %v667_v8 }
 0x380   :  { %6226 = vmatmul.mubr.msk.f32.gmra.mxu1 %vm472_vm3, %v7369_v56  ;;  %6232 = vmatprep.subr.mxu0 %v665_v9 }
 0x381   :  { %6233 = vmatpush3.msra.mxu0 %v665_v9  ;;  %v7461_v36 = vpop.permute.xlu1 %816 }
 0x382   :  { %6234 = vmatprep.subr.mxu0 %v663_v5 }
 0x383   :  { %6235 = vmatpush3.msra.mxu0 %v663_v5 }
 0x384   :  { %6236 = vmatprep.subr.mxu0 %v661_v6 }
 0x385   :  { %6237 = vmatpush3.msra.mxu0 %v661_v6 }
 0x386   :  { %6238 = vmatprep.subr.mxu0 %v659_v7 }
 0x387   :  { %6239 = vmatpush3.msra.mxu0 %v659_v7 }
 0x388   :  { %6249 = vmatprep.subr.msk.mxu0 %vm472_vm3, %v7429_v11 }
 0x438   :  { %v6221_v13 = vpop.f32.mrf.mxu1 }
 0x439   :  { %v569_v15 = vadd.f32 %v6221_v13, %v449_v12 }
 0x43a   :  { %v563_v16 = vpop.f32.mrf.mxu1 }
 0x43b   :  { %v564_v18 = vadd.f32 %v563_v16, %v448_v14  ;;  %v595_v19 = vsel %vm95_vm0, %v569_v15, -inf }
 0x43c   :  { %596 = vmax.xlane.f32.xlu1 %v595_v19  ;;  %v6224_v20 = vpop.f32.mrf.mxu1 }
 0x43d   :  { %v579_v21 = vadd.f32 %v6224_v20, %v451_v17  ;;  %v592_v22 = vsel %vm95_vm0, %v564_v18, -inf }
 0x43e   :  { %v573_v23 = vpop.f32.mrf.mxu1  ;;  %593 = vmax.xlane.f32.xlu0 %v592_v22 }
 0x43f   :  { %v574_v27 = vadd.f32 %v573_v23, %v450_v24  ;;  %v601_v29 = vsel %vm95_vm0, %v579_v21, -inf }
 0x440   :  { %v6227_v26 = vpop.f32.mrf.mxu1 }
 0x441   :  { %v589_v28 = vadd.f32 %v6227_v26, %v453_v25  ;;  %v598_v34 = vsel %vm95_vm0, %v574_v27, -inf }
 0x442   :  { %v583_v30 = vpop.f32.mrf.mxu1  ;;  %602 = vmax.xlane.f32.xlu0 %v601_v29 }
 0x443   :  { %v607_v32 = vsel %vm95_vm0, %v589_v28, -inf  ;;  %v584_v33 = vadd.f32 %v583_v30, %v452_v31 }
 0x444   :  { %608 = vmax.xlane.f32.xlu1 %v607_v32 }
 0x445   :  { %v604_v35 = vsel %vm95_vm0, %v584_v33, -inf }
 0x446   :  { %599 = vmax.xlane.f32.xlu0 %v598_v34 }
 0x44a   :  { %605 = vmax.xlane.f32.xlu0 %v604_v35 }
 0x455   :  { %812 = vrot.lane.b32.xlu1 %v7385_v61, %s8952_s0 }
 0x460   :  { %814 = vrot.lane.b32.xlu0 %v7379_v60, %s8952_s0 }
 0x4c5   :  { %v597_v37 = vpop.xlane.xlu1 %596 }
 0x4c6   :  { %v611_v39 = vsub.f32 %v569_v15, %v597_v37 }
 0x4c7   :  { %v594_v40 = vpop.xlane.xlu0 %593 }
 0x4c8   :  { %v618_v41 = vmul.f32 1.442695, %v611_v39  ;;  %v610_v42 = vsub.f32 %v564_v18, %v594_v40 }
 0x4ca   :  { %6816 = vpow2.f32 %v618_v41  ;;  %v616_v43 = vmul.f32 1.442695, %v610_v42 }
 0x4cb   :  { %v603_v44 = vpop.xlane.xlu0 %602 }
 0x4cc   :  { %6818 = vpow2.f32 %v616_v43  ;;  %v613_v38 = vsub.f32 %v579_v21, %v603_v44 }
 0x4cd   :  { %v609_v1 = vpop.xlane.xlu1 %608 }
 0x4ce   :  { %v622_v45 = vmul.f32 1.442695, %v613_v38  ;;  %v615_v2 = vsub.f32 %v589_v28, %v609_v1 }
 0x4cf   :  { %v600_v47 = vpop.xlane.xlu0 %599 }
 0x4d0   :  { %6820 = vpow2.f32 %v622_v45  ;;  %v612_v48 = vsub.f32 %v574_v27, %v600_v47  ;;  %v626_v4 = vmul.f32 1.442695, %v615_v2  ;;  %v5525_v45 = vld [vmem:[%s8973_s30 + $0x38] sm:$0xff] }
 0x4d1   :  { %v813_v9 = vpop.permute.xlu1 %812 }
 0x4d2   :  { %v620_v46 = vmul.f32 1.442695, %v612_v48  ;;  %v5524_v48 = vld [vmem:[%s8973_s30 + $0x30] sm:$0xff] }
 0x4d3   :  { %v606_v63 = vpop.xlane.xlu0 %605 }
 0x4d4   :  { %6822 = vpow2.f32 %v620_v46  ;;  %v614_v0 = vsub.f32 %v584_v33, %v606_v63  ;;  %v5526_v63 = vld [vmem:[%s8973_s30 + $0x40] sm:$0xff] }
 0x4d6   :  { %v624_v3 = vmul.f32 1.442695, %v614_v0  ;;  %v5529_v0 = vld [vmem:[%s8973_s30 + $0x58] sm:$0xff] }
 0x4d7   :  { %v6817_v49 = vpop.eup %6816  ;;  %v815_v12 = vpop.permute.xlu0 %814 }
 0x4d8   :  { %v631_v50 = vsel %vm95_vm0, %v6817_v49, 0.0  ;;  %6824 = vpow2.f32 %v624_v3 }
 0x4d9   :  { %v6819_v51 = vpop.eup %6818  ;;  %632 = vadd.xlane.f32.xlu1 %v631_v50  ;;  %6826 = vpow2.f32 %v626_v4  ;;  %v5527_v50 = vld [vmem:[%s8973_s30 + $0x48] sm:$0xff] }
 0x4da   :  { %v628_v53 = vsel %vm95_vm0, %v6819_v51, 0.0 }
 0x4db   :  { %629 = vadd.xlane.f32.xlu0 %v628_v53 }
 0x4dd   :  { %v6821_v54 = vpop.eup %6820 }
 0x4de   :  { %v637_v55 = vsel %vm95_vm0, %v6821_v54, 0.0 }
 0x4df   :  { %638 = vadd.xlane.f32.xlu1 %v637_v55 }
 0x4e1   :  { %v6823_v57 = vpop.eup %6822 }
 0x4e2   :  { %v634_v62 = vsel %vm95_vm0, %v6823_v57, 0.0 }
 0x4e3   :  { %635 = vadd.xlane.f32.xlu0 %v634_v62 }
 0x4e5   :  { %v6825_v5 = vpop.eup %6824 }
 0x4e6   :  { %v640_v6 = vsel %vm95_vm0, %v6825_v5, 0.0  ;;  %v6827_v7 = vpop.eup %6826 }
 0x4e7   :  { %v643_v8 = vsel %vm95_vm0, %v6827_v7, 0.0 }
 0x4f0   :  { %808 = vrot.lane.b32.xlu1 %v7365_v52, %s8952_s0 }
 0x4f9   :  { %810 = vrot.lane.b32.xlu0 %v7375_v59, %s8952_s0  ;;  %s8979_s0 = smov 48  }
 0x514   :  { %641 = vadd.xlane.f32.xlu1 %v640_v6  ;;  %v5528_v6 = vld [vmem:[%s8973_s30 + $0x50] sm:$0xff] }
 0x518   :  { %644 = vadd.xlane.f32.xlu0 %v643_v8 }
 0x525   :  { %798 = vrot.lane.b32.xlu1 %v7375_v59, %s8948_s5 }
 0x529   :  { %802 = vrot.lane.b32.xlu1 %v7379_v60, %s8948_s5 }
 0x52d   :  { %806 = vrot.lane.b32.xlu1 %v7369_v56, %s8948_s5 }
 0x52e   :  { %796 = vrot.lane.b32.xlu0 %v7365_v52, %s8948_s5 }
 0x532   :  { %800 = vrot.lane.b32.xlu0 %v7385_v61, %s8948_s5 }
 0x536   :  { %804 = vrot.lane.b32.xlu0 %v7371_v58, %s8948_s5 }
 0x562   :  { %v633_v13 = vpop.xlane.xlu1 %632 }
 0x563   :  { %6828 = vrcp.f32 %v633_v13 }
 0x564   :  { %v630_v14 = vpop.xlane.xlu0 %629 }
 0x565   :  { %6830 = vrcp.f32 %v630_v14 }
 0x568   :  { %v639_v15 = vpop.xlane.xlu1 %638 }
 0x569   :  { %6832 = vrcp.f32 %v639_v15 }
 0x56c   :  { %v636_v16 = vpop.xlane.xlu0 %635  ;;  %v809_v25 = vpop.permute.xlu1 %808 }
 0x56d   :  { %6834 = vrcp.f32 %v636_v16 }
 0x570   :  { %v6829_v17 = vpop.eup %6828 }
 0x571   :  { %v649_v20 = vmul.f32 %v6829_v17, %v6817_v49 }
 0x572   :  { %v6831_v18 = vpop.eup %6830 }
 0x573   :  { %v647_v19 = vmul.f32 %v6831_v18, %v6819_v51 }
 0x575   :  { %6240 = vmatprep.mubr.msk.f32.mxu0 %vm95_vm0, %v647_v19 }
 0x576   :  { %6241 = vmatmul.mubr.msk.f32.vlgmr.msra.gmra.mxu0 %vm95_vm0, %v649_v20  ;;  %v6833_v21 = vpop.eup %6832 }
 0x577   :  { %6250 = vmatpush3.xpose.msk.msra.mxu0 %vm472_vm3, %v7429_v11  ;;  %v653_v24 = vmul.f32 %v6833_v21, %v6821_v54  ;;  %v811_v11 = vpop.permute.xlu0 %810 }
 0x578   :  { %6251 = vmatprep.subr.msk.mxu0 %vm472_vm3, %v7461_v36 }
 0x57a   :  { %v6835_v22 = vpop.eup %6834 }
 0x57b   :  { %6252 = vmatpush3.xpose.msk.msra.mxu0 %vm472_vm3, %v7461_v36  ;;  %v651_v23 = vmul.f32 %v6835_v22, %v6823_v57  ;;  %v444_v36 = vld [vmem:[%s8914_s9] sm:$0xff] }
 0x57c   :  { %6253 = vmatprep.subr.msk.mxu0 %vm472_vm3, %v815_v12 }
 0x57d   :  { %6243 = vmatprep.mubr.msk.f32.mxu0 %vm95_vm0, %v651_v23 }
 0x57e   :  { %6244 = vmatmul.mubr.msk.f32.gmra.mxu0 %vm95_vm0, %v653_v24 }
 0x57f   :  { %6254 = vmatpush3.xpose.msk.msra.mxu0 %vm472_vm3, %v815_v12 }
 0x580   :  { %6255 = vmatprep.subr.msk.mxu0 %vm472_vm3, %v813_v9 }
 0x583   :  { %6256 = vmatpush3.xpose.msk.msra.mxu0 %vm472_vm3, %v813_v9 }
 0x584   :  { %6257 = vmatprep.subr.msk.mxu0 %vm472_vm3, %v811_v11 }
 0x587   :  { %6258 = vmatpush3.xpose.msk.msra.mxu0 %vm472_vm3, %v811_v11 }
 0x588   :  { %6259 = vmatprep.subr.msk.mxu0 %vm472_vm3, %v809_v25 }
 0x58b   :  { %6260 = vmatpush3.xpose.msk.msra.mxu0 %vm472_vm3, %v809_v25 }
 0x58c   :  { %6302 = vmatprep.subr.mxu0 %v444_v36 }
 0x59d   :  { %v642_v26 = vpop.xlane.xlu1 %641 }
 0x59e   :  { %6836 = vrcp.f32 %v642_v26 }
 0x5a1   :  { %v645_v27 = vpop.xlane.xlu0 %644  ;;  %v799_v33 = vpop.permute.xlu1 %798 }
 0x5a2   :  { %6838 = vrcp.f32 %v645_v27 }
 0x5a5   :  { %v797_v30 = vpop.permute.xlu0 %796  ;;  %v803_v35 = vpop.permute.xlu1 %802 }
 0x5a9   :  { %v801_v34 = vpop.permute.xlu0 %800  ;;  %v807_v39 = vpop.permute.xlu1 %806 }
 0x5ab   :  { %v6837_v28 = vpop.eup %6836 }
 0x5ac   :  { %v655_v29 = vmul.f32 %v6837_v28, %v6825_v5 }
 0x5ad   :  { %v805_v37 = vpop.permute.xlu0 %804 }
 0x5ae   :  { %6246 = vmatprep.mubr.msk.f32.mxu0 %vm95_vm0, %v655_v29 }
 0x5af   :  { %v6839_v31 = vpop.eup %6838 }
 0x5b0   :  { %v657_v32 = vmul.f32 %v6839_v31, %v6827_v7 }
 0x5b2   :  { %6247 = vmatmul.mubr.msk.f32.gmra.mxu0 %vm95_vm0, %v657_v32 }
 0x5b3   :  { %6261 = vmatprep.mubr.msk.f32.mxu0 %vm472_vm3, %v797_v30 }
 0x5b6   :  { %6262 = vmatmul.mubr.msk.f32.vlgmr.msra.gmra.mxu0 %vm472_vm3, %v799_v33 }
 0x5b7   :  { %6264 = vmatprep.mubr.msk.f32.mxu0 %vm472_vm3, %v801_v34  ;;  %6303 = vmatpush3.msra.mxu0 %v444_v36 }
 0x5ba   :  { %6265 = vmatmul.mubr.msk.f32.gmra.mxu0 %vm472_vm3, %v803_v35 }
 0x5bb   :  { %6267 = vmatprep.mubr.msk.f32.mxu0 %vm472_vm3, %v805_v37 }
 0x5be   :  { %6268 = vmatmul.mubr.msk.f32.gmra.mxu0 %vm472_vm3, %v807_v39 }
 0x636   :  { %v6242_v40 = vpop.f32.mrf.mxu0 }
 0x638   :  { %v760_v41 = vpop.f32.mrf.mxu0 }
 0x639   :  { %6304 = vmatprep.mubr.msk.f32.mxu0 %vm472_vm3, %v760_v41 }
 0x63a   :  { %6305 = vmatmul.mubr.msk.f32.vlgmr.msra.gmra.mxu0 %vm472_vm3, %v6242_v40 }
 0x63e   :  { %v6245_v42 = vpop.f32.mrf.mxu0 }
 0x640   :  { %v770_v43 = vpop.f32.mrf.mxu0 }
 0x641   :  { %6307 = vmatprep.mubr.msk.f32.mxu0 %vm472_vm3, %v770_v43 }
 0x642   :  { %6308 = vmatmul.mubr.msk.f32.gmra.mxu0 %vm472_vm3, %v6245_v42 }
 0x672   :  { %v6248_v44 = vpop.f32.mrf.mxu0 }
 0x674   :  { %v780_v38 = vpop.f32.mrf.mxu0 }
 0x675   :  { %6310 = vmatprep.mubr.msk.f32.mxu0 %vm472_vm3, %v780_v38 }
 0x676   :  { %v6263_v47 = vpop.f32.mrf.mxu0  ;;  %6311 = vmatmul.mubr.msk.f32.gmra.mxu0 %vm472_vm3, %v6248_v44 }
 0x677   :  { %v916_v46 = vadd.f32 %v6263_v47, %v5525_v45 }
 0x678   :  { %v910_v49 = vpop.f32.mrf.mxu0 }
 0x679   :  { %v911_v51 = vadd.f32 %v5524_v48, %v910_v49  ;;  %v942_v53 = vsel %vm95_vm0, %v916_v46, -inf }
 0x67a   :  { %943 = vmax.xlane.f32.xlu1 %v942_v53  ;;  %v6266_v54 = vpop.f32.mrf.mxu0 }
 0x67b   :  { %v926_v55 = vadd.f32 %v6266_v54, %v5527_v50  ;;  %v939_v57 = vsel %vm95_vm0, %v911_v51, -inf }
 0x67c   :  { %940 = vmax.xlane.f32.xlu0 %v939_v57  ;;  %v920_v62 = vpop.f32.mrf.mxu0  ;;  %v445_v57 = vld [vmem:[%s8914_s9 + $0x8] sm:$0xff] }
 0x67d   :  { %v921_v2 = vadd.f32 %v5526_v63, %v920_v62  ;;  %v948_v4 = vsel %vm95_vm0, %v926_v55, -inf }
 0x67e   :  { %v6269_v1 = vpop.f32.mrf.mxu0 }
 0x67f   :  { %v936_v3 = vadd.f32 %v6269_v1, %v5529_v0  ;;  %v945_v9 = vsel %vm95_vm0, %v921_v2, -inf }
 0x680   :  { %949 = vmax.xlane.f32.xlu0 %v948_v4  ;;  %v930_v5 = vpop.f32.mrf.mxu0 }
 0x681   :  { %v954_v7 = vsel %vm95_vm0, %v936_v3, -inf  ;;  %v931_v8 = vadd.f32 %v5528_v6, %v930_v5 }
 0x682   :  { %955 = vmax.xlane.f32.xlu1 %v954_v7 }
 0x683   :  { %v951_v12 = vsel %vm95_vm0, %v931_v8, -inf }
 0x684   :  { %946 = vmax.xlane.f32.xlu0 %v945_v9 }
 0x688   :  { %952 = vmax.xlane.f32.xlu0 %v951_v12 }
 0x69e   :  { %1015 = vrot.lane.b32.xlu0 %v7369_v56, %s8946_s7 }
 0x703   :  { %v944_v13 = vpop.xlane.xlu1 %943 }
 0x704   :  { %v958_v14 = vsub.f32 %v916_v46, %v944_v13 }
 0x705   :  { %v941_v15 = vpop.xlane.xlu0 %940 }
 0x706   :  { %v965_v16 = vmul.f32 1.442695, %v958_v14  ;;  %v957_v17 = vsub.f32 %v911_v51, %v941_v15 }
 0x708   :  { %6840 = vpow2.f32 %v965_v16  ;;  %v963_v18 = vmul.f32 1.442695, %v957_v17 }
 0x709   :  { %v950_v19 = vpop.xlane.xlu0 %949 }
 0x70a   :  { %6842 = vpow2.f32 %v963_v18  ;;  %v960_v30 = vsub.f32 %v926_v55, %v950_v19 }
 0x70b   :  { %v956_v33 = vpop.xlane.xlu1 %955 }
 0x70c   :  { %v969_v31 = vmul.f32 1.442695, %v960_v30  ;;  %v962_v34 = vsub.f32 %v936_v3, %v956_v33 }
 0x70d   :  { %v947_v20 = vpop.xlane.xlu0 %946 }
 0x70e   :  { %v959_v21 = vsub.f32 %v921_v2, %v947_v20  ;;  %v973_v36 = vmul.f32 1.442695, %v962_v34 }
 0x710   :  { %v967_v22 = vmul.f32 1.442695, %v959_v21 }
 0x711   :  { %v953_v23 = vpop.xlane.xlu0 %952 }
 0x712   :  { %6844 = vpow2.f32 %v967_v22  ;;  %v961_v32 = vsub.f32 %v931_v8, %v953_v23 }
 0x713   :  { %6846 = vpow2.f32 %v969_v31 }
 0x714   :  { %v971_v35 = vmul.f32 1.442695, %v961_v32 }
 0x715   :  { %v7546_v24 = vpop.eup %6840  ;;  %v1016_v11 = vpop.permute.xlu0 %1015 }
 0x716   :  { %6270 = vmatprep.subr.mxu1 %v1016_v11  ;;  %v978_v25 = vsel %vm95_vm0, %v7546_v24, 0.0  ;;  %6848 = vpow2.f32 %v971_v35 }
 0x717   :  { %v7550_v26 = vpop.eup %6842  ;;  %6271 = vmatpush3.msra.mxu1 %v1016_v11  ;;  %979 = vadd.xlane.f32.xlu1 %v978_v25  ;;  %6850 = vpow2.f32 %v973_v36 }
 0x718   :  { %v975_v27 = vsel %vm95_vm0, %v7550_v26, 0.0 }
 0x719   :  { %976 = vadd.xlane.f32.xlu0 %v975_v27 }
 0x71f   :  { %v7554_v28 = vpop.eup %6844 }
 0x720   :  { %v981_v29 = vsel %vm95_vm0, %v7554_v28, 0.0  ;;  %v7570_v37 = vpop.eup %6846 }
 0x721   :  { %982 = vadd.xlane.f32.xlu0 %v981_v29  ;;  %v984_v39 = vsel %vm95_vm0, %v7570_v37, 0.0 }
 0x723   :  { %v7576_v40 = vpop.eup %6848 }
 0x724   :  { %v987_v41 = vsel %vm95_vm0, %v7576_v40, 0.0  ;;  %v7582_v42 = vpop.eup %6850 }
 0x725   :  { %v990_v43 = vsel %vm95_vm0, %v7582_v42, 0.0 }
 0x728   :  { %1013 = vrot.lane.b32.xlu1 %v7371_v58, %s8946_s7 }
 0x737   :  { %1011 = vrot.lane.b32.xlu0 %v7379_v60, %s8946_s7 }
 0x73b   :  { %1009 = vrot.lane.b32.xlu0 %v7385_v61, %s8946_s7 }
 0x73f   :  { %1007 = vrot.lane.b32.xlu0 %v7375_v59, %s8946_s7 }
 0x743   :  { %1005 = vrot.lane.b32.xlu0 %v7365_v52, %s8946_s7 }
 0x747   :  { %1391 = vrot.lane.b32.xlu0 %v7369_v56, %s8944_s3 }
 0x74b   :  { %1389 = vrot.lane.b32.xlu0 %v7371_v58, %s8944_s3 }
 0x74c   :  { %985 = vadd.xlane.f32.xlu1 %v984_v39 }
 0x74f   :  { %1387 = vrot.lane.b32.xlu0 %v7379_v60, %s8944_s3 }
 0x750   :  { %988 = vadd.xlane.f32.xlu1 %v987_v41 }
 0x753   :  { %1385 = vrot.lane.b32.xlu0 %v7385_v61, %s8944_s3 }
 0x754   :  { %991 = vadd.xlane.f32.xlu1 %v990_v43 }
 0x757   :  { %1383 = vrot.lane.b32.xlu0 %v7375_v59, %s8944_s3 }
 0x75b   :  { %1369 = vrot.lane.b32.xlu0 %v7365_v52, %s8942_s8 }
 0x75f   :  { %1371 = vrot.lane.b32.xlu0 %v7375_v59, %s8942_s8 }
 0x763   :  { %1373 = vrot.lane.b32.xlu0 %v7385_v61, %s8942_s8 }
 0x765   :  { %1381 = vrot.lane.b32.xlu1 %v7365_v52, %s8944_s3  ;;  %s8950_s3 = smov 64  }
 0x767   :  { %1375 = vrot.lane.b32.xlu0 %v7379_v60, %s8942_s8 }
 0x769   :  { %1379 = vrot.lane.b32.xlu1 %v7369_v56, %s8942_s8 }
 0x76b   :  { %1377 = vrot.lane.b32.xlu0 %v7371_v58, %s8942_s8  ;;  %s8981_s8 = smov 64  }
 0x76d   :  { %1855 = vrot.lane.b32.xlu1 %v7371_v58, %s8940_s4 }
 0x76f   :  { %1857 = vrot.lane.b32.xlu0 %v7369_v56, %s8940_s4 }
 0x771   :  { %1851 = vrot.lane.b32.xlu1 %v7385_v61, %s8940_s4 }
 0x773   :  { %1853 = vrot.lane.b32.xlu0 %v7379_v60, %s8940_s4 }
 0x775   :  { %1847 = vrot.lane.b32.xlu1 %v7365_v52, %s8940_s4 }
 0x777   :  { %1849 = vrot.lane.b32.xlu0 %v7375_v59, %s8940_s4 }
 0x779   :  { %1837 = vrot.lane.b32.xlu1 %v7375_v59, %s8938_s26 }
 0x77b   :  { %1835 = vrot.lane.b32.xlu0 %v7365_v52, %s8938_s26 }
 0x77d   :  { %1841 = vrot.lane.b32.xlu1 %v7379_v60, %s8938_s26 }
 0x77f   :  { %1839 = vrot.lane.b32.xlu0 %v7385_v61, %s8938_s26 }
 0x781   :  { %1845 = vrot.lane.b32.xlu1 %v7369_v56, %s8938_s26 }
 0x783   :  { %1843 = vrot.lane.b32.xlu0 %v7371_v58, %s8938_s26 }
 0x7a0   :  { %v980_v44 = vpop.xlane.xlu1 %979 }
 0x7a2   :  { %v977_v38 = vpop.xlane.xlu0 %976 }
 0x7a3   :  { %6852 = vrcp.f32 %v977_v38 }
 0x7a4   :  { %v1014_v45 = vpop.permute.xlu1 %1013  ;;  %6854 = vrcp.f32 %v980_v44 }
 0x7a5   :  { %6272 = vmatprep.subr.mxu1 %v1014_v45 }
 0x7a6   :  { %6273 = vmatpush3.msra.mxu1 %v1014_v45 }
 0x7aa   :  { %v983_v47 = vpop.xlane.xlu0 %982 }
 0x7ab   :  { %6856 = vrcp.f32 %v983_v47  ;;  %v5561_v47 = vld [vmem:[%s8973_s30 + $0x68] sm:$0xff] }
 0x7ae   :  { %v1012_v48 = vpop.permute.xlu0 %1011 }
 0x7af   :  { %6274 = vmatprep.subr.mxu1 %v1012_v48 }
 0x7b0   :  { %v6853_v46 = vpop.eup %6852  ;;  %6275 = vmatpush3.msra.mxu1 %v1012_v48 }
 0x7b1   :  { %v994_v49 = vmul.f32 %v6853_v46, %v7550_v26  ;;  %v6855_v53 = vpop.eup %6854  ;;  %v5560_v46 = vld [vmem:[%s8973_s30 + $0x60] sm:$0xff] }
 0x7b2   :  { %v1010_v50 = vpop.permute.xlu0 %1009  ;;  %v996_v62 = vmul.f32 %v6855_v53, %v7546_v24 }
 0x7b3   :  { %6276 = vmatprep.subr.mxu1 %v1010_v50  ;;  %6282 = vmatprep.mubr.msk.f32.mxu1 %vm95_vm0, %v994_v49 }
 0x7b4   :  { %6277 = vmatpush3.msra.mxu1 %v1010_v50 }
 0x7b6   :  { %v1008_v51 = vpop.permute.xlu0 %1007 }
 0x7b7   :  { %6278 = vmatprep.subr.mxu1 %v1008_v51 }
 0x7b8   :  { %6279 = vmatpush3.msra.mxu1 %v1008_v51  ;;  %v6857_v54 = vpop.eup %6856 }
 0x7b9   :  { %v998_v63 = vmul.f32 %v6857_v54, %v7554_v28 }
 0x7ba   :  { %v1006_v55 = vpop.permute.xlu0 %1005 }
 0x7bb   :  { %6280 = vmatprep.subr.mxu1 %v1006_v55 }
 0x7bc   :  { %6281 = vmatpush3.msra.mxu1 %v1006_v55  ;;  %v5562_v55 = vld [vmem:[%s8973_s30 + $0x70] sm:$0xff] }
 0x7bd   :  { %6283 = vmatmul.mubr.msk.f32.vlgmr.msra.gmra.mxu1 %vm95_vm0, %v996_v62  ;;  %6291 = vmatprep.subr.mxu1 %v445_v57  ;;  %v5563_v62 = vld [vmem:[%s8973_s30 + $0x78] sm:$0xff] }
 0x7be   :  { %v1392_v0 = vpop.permute.xlu0 %1391  ;;  %6285 = vmatprep.mubr.msk.f32.mxu1 %vm95_vm0, %v998_v63  ;;  %6292 = vmatpush3.msra.mxu1 %v445_v57 }
 0x7bf   :  { %6313 = vmatprep.subr.msk.mxu1 %vm472_vm3, %v1392_v0 }
 0x7c2   :  { %v1390_v12 = vpop.permute.xlu0 %1389 }
 0x7c6   :  { %v1388_v13 = vpop.permute.xlu0 %1387 }
 0x7ca   :  { %v1386_v14 = vpop.permute.xlu0 %1385 }
 0x7ce   :  { %v1384_v15 = vpop.permute.xlu0 %1383 }
 0x7d2   :  { %v1370_v16 = vpop.permute.xlu0 %1369 }
 0x7d5   :  { %v986_v1 = vpop.xlane.xlu1 %985 }
 0x7d6   :  { %6858 = vrcp.f32 %v986_v1  ;;  %v1372_v18 = vpop.permute.xlu0 %1371 }
 0x7d9   :  { %v989_v2 = vpop.xlane.xlu1 %988 }
 0x7da   :  { %6860 = vrcp.f32 %v989_v2  ;;  %v1374_v20 = vpop.permute.xlu0 %1373  ;;  %v5564_v2 = vld [vmem:[%s8973_s30 + $0x80] sm:$0xff] }
 0x7dd   :  { %v992_v3 = vpop.xlane.xlu1 %991 }
 0x7de   :  { %6862 = vrcp.f32 %v992_v3  ;;  %v1376_v21 = vpop.permute.xlu0 %1375 }
 0x7e1   :  { %v1382_v23 = vpop.permute.xlu1 %1381 }
 0x7e2   :  { %v1378_v22 = vpop.permute.xlu0 %1377 }
 0x7e3   :  { %v6859_v4 = vpop.eup %6858 }
 0x7e4   :  { %v1000_v5 = vmul.f32 %v6859_v4, %v7570_v37 }
 0x7e5   :  { %v1380_v28 = vpop.permute.xlu1 %1379 }
 0x7e6   :  { %6286 = vmatmul.mubr.msk.f32.gmra.mxu1 %vm95_vm0, %v1000_v5  ;;  %v1858_v24 = vpop.permute.xlu0 %1857  ;;  %v5565_v5 = vld [vmem:[%s8973_s30 + $0x88] sm:$0xff] }
 0x7e7   :  { %v6861_v6 = vpop.eup %6860 }
 0x7e8   :  { %v1002_v7 = vmul.f32 %v6861_v6, %v7576_v40 }
 0x7e9   :  { %v1856_v30 = vpop.permute.xlu1 %1855 }
 0x7ea   :  { %6288 = vmatprep.mubr.msk.f32.mxu1 %vm95_vm0, %v1002_v7  ;;  %v1854_v29 = vpop.permute.xlu0 %1853 }
 0x7eb   :  { %v6863_v8 = vpop.eup %6862 }
 0x7ec   :  { %v1004_v9 = vmul.f32 %v6863_v8, %v7582_v42 }
 0x7ed   :  { %v1852_v32 = vpop.permute.xlu1 %1851 }
 0x7ee   :  { %6289 = vmatmul.mubr.msk.f32.gmra.mxu1 %vm95_vm0, %v1004_v9  ;;  %v1850_v31 = vpop.permute.xlu0 %1849 }
 0x7f1   :  { %v1848_v34 = vpop.permute.xlu1 %1847 }
 0x7f2   :  { %v1836_v33 = vpop.permute.xlu0 %1835 }
 0x7f5   :  { %v1838_v35 = vpop.permute.xlu1 %1837 }
 0x7f6   :  { %v1840_v36 = vpop.permute.xlu0 %1839 }
 0x7f9   :  { %v1842_v37 = vpop.permute.xlu1 %1841 }
 0x7fa   :  { %v1844_v39 = vpop.permute.xlu0 %1843 }
 0x7fd   :  { %v1846_v40 = vpop.permute.xlu1 %1845 }
 0x87d   :  { %v6284_v17 = vpop.f32.mrf.mxu1 }
 0x87f   :  { %v1107_v19 = vpop.f32.mrf.mxu1 }
 0x880   :  { %6293 = vmatprep.mubr.msk.f32.mxu1 %vm472_vm3, %v1107_v19 }
 0x881   :  { %6294 = vmatmul.mubr.msk.f32.vlgmr.msra.gmra.mxu1 %vm472_vm3, %v6284_v17 }
 0x882   :  { %6314 = vmatpush3.xpose.msk.msra.mxu1 %vm472_vm3, %v1392_v0 }
 0x883   :  { %6315 = vmatprep.subr.msk.mxu1 %vm472_vm3, %v1390_v12 }
 0x886   :  { %6316 = vmatpush3.xpose.msk.msra.mxu1 %vm472_vm3, %v1390_v12 }
 0x887   :  { %6317 = vmatprep.subr.msk.mxu1 %vm472_vm3, %v1388_v13 }
 0x88a   :  { %6318 = vmatpush3.xpose.msk.msra.mxu1 %vm472_vm3, %v1388_v13 }
 0x88b   :  { %6319 = vmatprep.subr.msk.mxu1 %vm472_vm3, %v1386_v14 }
 0x88e   :  { %6320 = vmatpush3.xpose.msk.msra.mxu1 %vm472_vm3, %v1386_v14 }
 0x88f   :  { %6321 = vmatprep.subr.msk.mxu1 %vm472_vm3, %v1384_v15 }
 0x892   :  { %6322 = vmatpush3.xpose.msk.msra.mxu1 %vm472_vm3, %v1384_v15 }
 0x893   :  { %6323 = vmatprep.subr.msk.mxu1 %vm472_vm3, %v1382_v23 }
 0x896   :  { %6324 = vmatpush3.xpose.msk.msra.mxu1 %vm472_vm3, %v1382_v23 }
 0x897   :  { %6366 = vmatprep.subr.msk.mxu1 %vm472_vm3, %v1858_v24 }
 0x8a6   :  { %v6287_v11 = vpop.f32.mrf.mxu1 }
 0x8a8   :  { %v1117_v25 = vpop.f32.mrf.mxu1 }
 0x8a9   :  { %6296 = vmatprep.mubr.msk.f32.mxu1 %vm472_vm3, %v1117_v25 }
 0x8aa   :  { %6297 = vmatmul.mubr.msk.f32.gmra.mxu1 %vm472_vm3, %v6287_v11 }
 0x8ae   :  { %v6290_v26 = vpop.f32.mrf.mxu1 }
 0x8b0   :  { %v1127_v27 = vpop.f32.mrf.mxu1 }
 0x8b1   :  { %6299 = vmatprep.mubr.msk.f32.mxu1 %vm472_vm3, %v1127_v27 }
 0x8b2   :  { %6300 = vmatmul.mubr.msk.f32.gmra.mxu1 %vm472_vm3, %v6290_v26 }
 0x8b3   :  { %6325 = vmatprep.mubr.msk.f32.mxu1 %vm472_vm3, %v1370_v16 }
 0x8b6   :  { %6326 = vmatmul.mubr.msk.f32.vlgmr.msra.gmra.mxu1 %vm472_vm3, %v1372_v18 }
 0x8b7   :  { %6367 = vmatpush3.xpose.msk.msra.mxu1 %vm472_vm3, %v1858_v24  ;;  %6328 = vmatprep.mubr.msk.f32.mxu1 %vm472_vm3, %v1374_v20 }
 0x8b8   :  { %6368 = vmatprep.subr.msk.mxu1 %vm472_vm3, %v1856_v30 }
 0x8ba   :  { %6329 = vmatmul.mubr.msk.f32.gmra.mxu1 %vm472_vm3, %v1376_v21 }
 0x8bb   :  { %6369 = vmatpush3.xpose.msk.msra.mxu1 %vm472_vm3, %v1856_v30  ;;  %6331 = vmatprep.mubr.msk.f32.mxu1 %vm472_vm3, %v1378_v22 }
 0x8bc   :  { %6370 = vmatprep.subr.msk.mxu1 %vm472_vm3, %v1854_v29 }
 0x8be   :  { %6332 = vmatmul.mubr.msk.f32.gmra.mxu1 %vm472_vm3, %v1380_v28 }
 0x8bf   :  { %6371 = vmatpush3.xpose.msk.msra.mxu1 %vm472_vm3, %v1854_v29  ;;  %6378 = vmatprep.mubr.msk.f32.mxu1 %vm472_vm3, %v1836_v33 }
 0x8c0   :  { %6372 = vmatprep.subr.msk.mxu1 %vm472_vm3, %v1852_v32 }
 0x8c3   :  { %6373 = vmatpush3.xpose.msk.msra.mxu1 %vm472_vm3, %v1852_v32 }
 0x8c4   :  { %6374 = vmatprep.subr.msk.mxu1 %vm472_vm3, %v1850_v31 }
 0x8c7   :  { %6375 = vmatpush3.xpose.msk.msra.mxu1 %vm472_vm3, %v1850_v31 }
 0x8c8   :  { %6376 = vmatprep.subr.msk.mxu1 %vm472_vm3, %v1848_v34 }
 0x8cb   :  { %6377 = vmatpush3.xpose.msk.msra.mxu1 %vm472_vm3, %v1848_v34 }
 0x8ce   :  { %6379 = vmatmul.mubr.msk.f32.vlgmr.msra.gmra.mxu1 %vm472_vm3, %v1838_v35 }
 0x8cf   :  { %6381 = vmatprep.mubr.msk.f32.mxu1 %vm472_vm3, %v1840_v36 }
 0x8d2   :  { %6382 = vmatmul.mubr.msk.f32.gmra.mxu1 %vm472_vm3, %v1842_v37 }
 0x8d3   :  { %6384 = vmatprep.mubr.msk.f32.mxu1 %vm472_vm3, %v1844_v39 }
 0x8d6   :  { %6385 = vmatmul.mubr.msk.f32.gmra.mxu1 %vm472_vm3, %v1846_v40 }
 0x941   :  { %v7685_v41 = vpop.f32.mrf.mxu1 }
 0x943   :  { %v7687_v42 = vpop.f32.mrf.mxu1 }
 0x96a   :  { %v7689_v43 = vpop.f32.mrf.mxu1 }
 0x96c   :  { %v7691_v44 = vpop.f32.mrf.mxu1 }
 0x972   :  { %v7693_v38 = vpop.f32.mrf.mxu1 }
 0x974   :  { %v7695_v45 = vpop.f32.mrf.mxu1 }
 0x976   :  { %v6327_v48 = vpop.f32.mrf.mxu1 }
 0x977   :  { %v1489_v49 = vadd.f32 %v6327_v48, %v5561_v47 }
 0x978   :  { %v1483_v50 = vpop.f32.mrf.mxu1 }
 0x979   :  { %v1484_v51 = vadd.f32 %v5560_v46, %v1483_v50  ;;  %v1515_v53 = vsel %vm95_vm0, %v1489_v49, -inf }
 0x97a   :  { %1516 = vmax.xlane.f32.xlu1 %v1515_v53  ;;  %v6330_v54 = vpop.f32.mrf.mxu1 }
 0x97b   :  { %v1512_v57 = vsel %vm95_vm0, %v1484_v51, -inf  ;;  %v1499_v3 = vadd.f32 %v6330_v54, %v5563_v62 }
 0x97c   :  { %v1493_v63 = vpop.f32.mrf.mxu1  ;;  %1513 = vmax.xlane.f32.xlu0 %v1512_v57 }
 0x97d   :  { %v1494_v0 = vadd.f32 %v5562_v55, %v1493_v63  ;;  %v1521_v9 = vsel %vm95_vm0, %v1499_v3, -inf  ;;  %v5591_v63 = vld [vmem:[%s8973_s30 + $0x98] sm:$0xff] }
 0x97e   :  { %v6333_v1 = vpop.f32.mrf.mxu1 }
 0x97f   :  { %v1518_v4 = vsel %vm95_vm0, %v1494_v0, -inf  ;;  %v1509_v8 = vadd.f32 %v6333_v1, %v5565_v5 }
 0x980   :  { %1519 = vmax.xlane.f32.xlu0 %v1518_v4  ;;  %v1503_v6 = vpop.f32.mrf.mxu1  ;;  %v5594_v4 = vld [vmem:[%s8973_s30 + $0xb0] sm:$0xff] }
 0x981   :  { %v1504_v7 = vadd.f32 %v5564_v2, %v1503_v6  ;;  %v1527_v13 = vsel %vm95_vm0, %v1509_v8, -inf  ;;  %v5590_v2 = vld [vmem:[%s8973_s30 + $0x90] sm:$0xff]  ;;  %v5592_v6 = vld [vmem:[%s8973_s30 + $0xa0] sm:$0xff] }
 0x983   :  { %v1524_v12 = vsel %vm95_vm0, %v1504_v7, -inf }
 0x984   :  { %1522 = vmax.xlane.f32.xlu0 %v1521_v9  ;;  %1525 = vmax.xlane.f32.xlu1 %v1524_v12 }
 0x988   :  { %1528 = vmax.xlane.f32.xlu0 %v1527_v13  ;;  %v5593_v13 = vld [vmem:[%s8973_s30 + $0xa8] sm:$0xff] }
 0x98e   :  { %v6380_v54 = vpop.f32.mrf.mxu1 }
 0x98f   :  { %v7760_v1 = vadd.f32 %v6380_v54, %v5591_v63 }
 0x990   :  { %v1949_v55 = vpop.f32.mrf.mxu1 }
 0x991   :  { %v7768_v5 = vadd.f32 %v5590_v2, %v1949_v55 }
 0x992   :  { %v6383_v57 = vpop.f32.mrf.mxu1 }
 0x993   :  { %v1978_v12 = vsel %vm95_vm0, %v7768_v5, -inf }
 0x994   :  { %v1959_v62 = vpop.f32.mrf.mxu1 }
 0x995   :  { %1588 = vrot.lane.b32.xlu1 %v7369_v56, %s8950_s3  ;;  %v7777_v9 = vadd.f32 %v5592_v6, %v1959_v62 }
 0x999   :  { %1584 = vrot.lane.b32.xlu1 %v7379_v60, %s8950_s3 }
 0x99d   :  { %1582 = vrot.lane.b32.xlu1 %v7385_v61, %s8950_s3 }
 0x99e   :  { %1586 = vrot.lane.b32.xlu0 %v7371_v58, %s8950_s3 }
 0xa03   :  { %v1517_v14 = vpop.xlane.xlu1 %1516 }
 0xa04   :  { %v1531_v15 = vsub.f32 %v1489_v49, %v1517_v14 }
 0xa05   :  { %v1514_v16 = vpop.xlane.xlu0 %1513 }
 0xa06   :  { %v1538_v17 = vmul.f32 1.442695, %v1531_v15  ;;  %v1530_v18 = vsub.f32 %v1484_v51, %v1514_v16  ;;  %v7786_v15 = vadd.f32 %v6383_v57, %v5593_v13  ;;  %v1984_v16 = vsel %vm95_vm0, %v7777_v9, -inf }
 0xa08   :  { %6864 = vpow2.f32 %v1538_v17  ;;  %v1536_v19 = vmul.f32 1.442695, %v1530_v18  ;;  %v5595_v17 = vld [vmem:[%s8973_s30 + $0xb8] sm:$0xff] }
 0xa09   :  { %v1520_v20 = vpop.xlane.xlu0 %1519 }
 0xa0a   :  { %6866 = vpow2.f32 %v1536_v19  ;;  %v1532_v21 = vsub.f32 %v1494_v0, %v1520_v20  ;;  %v6386_v0 = vpop.f32.mrf.mxu1  ;;  %v1987_v19 = vsel %vm95_vm0, %v7786_v15, -inf }
 0xa0b   :  { %v7793_v18 = vadd.f32 %v6386_v0, %v5595_v17 }
 0xa0c   :  { %v1540_v22 = vmul.f32 1.442695, %v1532_v21 }
 0xa0d   :  { %v1523_v23 = vpop.xlane.xlu0 %1522  ;;  %v1526_v24 = vpop.xlane.xlu1 %1525  ;;  %v1993_v20 = vsel %vm95_vm0, %v7793_v18, -inf }
 0xa0e   :  { %6868 = vpow2.f32 %v1540_v22  ;;  %v1533_v11 = vsub.f32 %v1499_v3, %v1523_v23  ;;  %v1534_v25 = vsub.f32 %v1504_v7, %v1526_v24  ;;  %v1969_v3 = vpop.f32.mrf.mxu1 }
 0xa0f   :  { %v7773_v7 = vadd.f32 %v5594_v4, %v1969_v3 }
 0xa10   :  { %v1542_v26 = vmul.f32 1.442695, %v1533_v11  ;;  %v1544_v27 = vmul.f32 1.442695, %v1534_v25 }
 0xa11   :  { %v1529_v28 = vpop.xlane.xlu0 %1528  ;;  %v1589_v29 = vpop.permute.xlu1 %1588  ;;  %v1990_v14 = vsel %vm95_vm0, %v7773_v7, -inf }
 0xa12   :  { %6870 = vpow2.f32 %v1542_v26  ;;  %v1535_v30 = vsub.f32 %v1509_v8, %v1529_v28  ;;  %6334 = vmatprep.subr.mxu0 %v1589_v29  ;;  %v1981_v8 = vsel %vm95_vm0, %v7760_v1, -inf  ;;  %v446_v28 = vld [vmem:[%s8914_s9 + $0x10] sm:$0xff] }
 0xa13   :  { %6872 = vpow2.f32 %v1544_v27  ;;  %6335 = vmatpush3.msra.mxu0 %v1589_v29 }
 0xa14   :  { %v1546_v31 = vmul.f32 1.442695, %v1535_v30 }
 0xa15   :  { %v7729_v32 = vpop.eup %6864  ;;  %v1587_v33 = vpop.permute.xlu0 %1586 }
 0xa16   :  { %v1585_v34 = vpop.permute.xlu1 %1584  ;;  %6874 = vpow2.f32 %v1546_v31  ;;  %6336 = vmatprep.subr.mxu0 %v1587_v33  ;;  %v1551_v35 = vsel %vm95_vm0, %v7729_v32, 0.0 }
 0xa17   :  { %v7733_v36 = vpop.eup %6866  ;;  %1552 = vadd.xlane.f32.xlu0 %v1551_v35  ;;  %6337 = vmatpush3.msra.mxu0 %v1587_v33 }
 0xa18   :  { %6338 = vmatprep.subr.mxu0 %v1585_v34  ;;  %v1548_v37 = vsel %vm95_vm0, %v7733_v36, 0.0 }
 0xa19   :  { %1549 = vadd.xlane.f32.xlu1 %v1548_v37  ;;  %6339 = vmatpush3.msra.mxu0 %v1585_v34 }
 0xa1a   :  { %v1583_v39 = vpop.permute.xlu1 %1582 }
 0xa1b   :  { %6340 = vmatprep.subr.mxu0 %v1583_v39  ;;  %v7737_v40 = vpop.eup %6868 }
 0xa1c   :  { %6341 = vmatpush3.msra.mxu0 %v1583_v39  ;;  %v1554_v47 = vsel %vm95_vm0, %v7737_v40, 0.0 }
 0xa1d   :  { %1555 = vadd.xlane.f32.xlu1 %v1554_v47 }
 0xa1f   :  { %v7741_v48 = vpop.eup %6870 }
 0xa20   :  { %v7743_v46 = vpop.eup %6872  ;;  %v1557_v49 = vsel %vm95_vm0, %v7741_v48, 0.0 }
 0xa21   :  { %1558 = vadd.xlane.f32.xlu0 %v1557_v49  ;;  %v1560_v50 = vsel %vm95_vm0, %v7743_v46, 0.0 }
 0xa22   :  { %1561 = vadd.xlane.f32.xlu1 %v1560_v50 }
 0xa23   :  { %v7749_v51 = vpop.eup %6874 }
 0xa24   :  { %v1563_v53 = vsel %vm95_vm0, %v7749_v51, 0.0 }
 0xa25   :  { %1564 = vadd.xlane.f32.xlu0 %v1563_v53 }
 0xa33   :  { %1578 = vrot.lane.b32.xlu1 %v7365_v52, %s8950_s3 }
 0xa3b   :  { %1580 = vrot.lane.b32.xlu0 %v7375_v59, %s8950_s3  ;;  %s8980_s3 = smov 56  }
 0xa57   :  { %1982 = vmax.xlane.f32.xlu1 %v1981_v8 }
 0xa5a   :  { %1979 = vmax.xlane.f32.xlu0 %v1978_v12 }
 0xa5b   :  { %1991 = vmax.xlane.f32.xlu1 %v1990_v14 }
 0xa5e   :  { %1985 = vmax.xlane.f32.xlu0 %v1984_v16 }
 0xa62   :  { %1988 = vmax.xlane.f32.xlu0 %v1987_v19 }
 0xa66   :  { %1994 = vmax.xlane.f32.xlu0 %v1993_v20 }
 0xa6c   :  { %2054 = vrot.lane.b32.xlu1 %v7369_v56, %s8954_s27 }
 0xa70   :  { %2050 = vrot.lane.b32.xlu1 %v7379_v60, %s8954_s27 }
 0xa74   :  { %2048 = vrot.lane.b32.xlu1 %v7385_v61, %s8954_s27 }
 0xa7c   :  { %2052 = vrot.lane.b32.xlu0 %v7371_v58, %s8954_s27 }
 0xaa0   :  { %v1553_v21 = vpop.xlane.xlu0 %1552 }
 0xaa2   :  { %v1550_v22 = vpop.xlane.xlu1 %1549 }
 0xaa3   :  { %6876 = vrcp.f32 %v1550_v22 }
 0xaa4   :  { %6878 = vrcp.f32 %v1553_v21 }
 0xaa6   :  { %v1556_v23 = vpop.xlane.xlu1 %1555 }
 0xaa7   :  { %6880 = vrcp.f32 %v1556_v23 }
 0xaaa   :  { %v1559_v24 = vpop.xlane.xlu0 %1558 }
 0xaab   :  { %6882 = vrcp.f32 %v1559_v24  ;;  %v1562_v11 = vpop.xlane.xlu1 %1561 }
 0xaac   :  { %6884 = vrcp.f32 %v1562_v11 }
 0xaae   :  { %v1565_v56 = vpop.xlane.xlu0 %1564 }
 0xaaf   :  { %6886 = vrcp.f32 %v1565_v56  ;;  %v1579_v27 = vpop.permute.xlu1 %1578 }
 0xab0   :  { %v6877_v25 = vpop.eup %6876 }
 0xab1   :  { %v1567_v60 = vmul.f32 %v6877_v25, %v7733_v36  ;;  %v6879_v26 = vpop.eup %6878 }
 0xab2   :  { %v1581_v61 = vpop.permute.xlu0 %1580  ;;  %v1569_v29 = vmul.f32 %v6879_v26, %v7729_v32 }
 0xab3   :  { %6342 = vmatprep.subr.mxu0 %v1581_v61  ;;  %6346 = vmatprep.mubr.msk.f32.mxu0 %vm95_vm0, %v1567_v60 }
 0xab4   :  { %v6881_v58 = vpop.eup %6880  ;;  %6343 = vmatpush3.msra.mxu0 %v1581_v61 }
 0xab5   :  { %6344 = vmatprep.subr.mxu0 %v1579_v27  ;;  %v1571_v30 = vmul.f32 %v6881_v58, %v7737_v40 }
 0xab6   :  { %6345 = vmatpush3.msra.mxu0 %v1579_v27 }
 0xab7   :  { %6347 = vmatmul.mubr.msk.f32.vlgmr.msra.gmra.mxu0 %vm95_vm0, %v1569_v29  ;;  %6355 = vmatprep.subr.mxu0 %v446_v28 }
 0xab8   :  { %v6883_v31 = vpop.eup %6882  ;;  %6349 = vmatprep.mubr.msk.f32.mxu0 %vm95_vm0, %v1571_v30  ;;  %6356 = vmatpush3.msra.mxu0 %v446_v28 }
 0xab9   :  { %v6885_v33 = vpop.eup %6884  ;;  %v1573_v34 = vmul.f32 %v6883_v31, %v7741_v48 }
 0xaba   :  { %v1575_v35 = vmul.f32 %v6885_v33, %v7743_v46 }
 0xabb   :  { %6350 = vmatmul.mubr.msk.f32.gmra.mxu0 %vm95_vm0, %v1573_v34 }
 0xabc   :  { %v6887_v36 = vpop.eup %6886  ;;  %6352 = vmatprep.mubr.msk.f32.mxu0 %vm95_vm0, %v1575_v35 }
 0xabd   :  { %v1577_v32 = vmul.f32 %v6887_v36, %v7749_v51 }
 0xabf   :  { %6353 = vmatmul.mubr.msk.f32.gmra.mxu0 %vm95_vm0, %v1577_v32 }
 0xae0   :  { %v1983_v37 = vpop.xlane.xlu1 %1982 }
 0xae1   :  { %v1997_v39 = vsub.f32 %v7760_v1, %v1983_v37 }
 0xae3   :  { %v2004_v40 = vmul.f32 1.442695, %v1997_v39  ;;  %v1980_v47 = vpop.xlane.xlu0 %1979 }
 0xae4   :  { %v1996_v49 = vsub.f32 %v7768_v5, %v1980_v47  ;;  %v1992_v50 = vpop.xlane.xlu1 %1991 }
 0xae5   :  { %6888 = vpow2.f32 %v2004_v40  ;;  %v2000_v46 = vsub.f32 %v7773_v7, %v1992_v50 }
 0xae6   :  { %v2002_v48 = vmul.f32 1.442695, %v1996_v49 }
 0xae7   :  { %v1986_v53 = vpop.xlane.xlu0 %1985  ;;  %v2010_v51 = vmul.f32 1.442695, %v2000_v46 }
 0xae8   :  { %6890 = vpow2.f32 %v2002_v48  ;;  %v1998_v54 = vsub.f32 %v7777_v9, %v1986_v53  ;;  %v2055_v55 = vpop.permute.xlu1 %2054 }
 0xae9   :  { %6387 = vmatprep.subr.mxu0 %v2055_v55 }
 0xaea   :  { %v2006_v57 = vmul.f32 1.442695, %v1998_v54  ;;  %v447_v54 = vld [vmem:[%s8914_s9 + $0x18] sm:$0xff] }
 0xaeb   :  { %v1989_v62 = vpop.xlane.xlu0 %1988 }
 0xaec   :  { %6892 = vpow2.f32 %v2006_v57  ;;  %v1999_v63 = vsub.f32 %v7786_v15, %v1989_v62  ;;  %v2051_v24 = vpop.permute.xlu1 %2050 }
 0xaed   :  { %6894 = vpow2.f32 %v2010_v51 }
 0xaee   :  { %v2008_v0 = vmul.f32 1.442695, %v1999_v63 }
 0xaef   :  { %v1995_v1 = vpop.xlane.xlu0 %1994 }
 0xaf0   :  { %6896 = vpow2.f32 %v2008_v0  ;;  %v2001_v2 = vsub.f32 %v7793_v18, %v1995_v1  ;;  %v7853_v18 = vpop.f32.mrf.mxu0 }
 0xaf2   :  { %v7828_v3 = vpop.eup %6888  ;;  %v2012_v4 = vmul.f32 1.442695, %v2001_v2  ;;  %v7855_v19 = vpop.f32.mrf.mxu0 }
 0xaf3   :  { %v2017_v5 = vsel %vm95_vm0, %v7828_v3, 0.0  ;;  %v2053_v25 = vpop.permute.xlu0 %2052  ;;  %v1334_v57 = vadd.f32 %v7855_v19, %v7687_v42 }
 0xaf4   :  { %6898 = vpow2.f32 %v2012_v4  ;;  %2018 = vadd.xlane.f32.xlu0 %v2017_v5  ;;  %v7857_v20 = vpop.f32.mrf.mxu0 }
 0xaf5   :  { %v6891_v6 = vpop.eup %6890  ;;  %v1349_v0 = vadd.f32 %v7857_v20, %v7689_v43 }
 0xaf6   :  { %v2014_v7 = vsel %vm95_vm0, %v6891_v6, 0.0  ;;  %v7859_v21 = vpop.f32.mrf.mxu0 }
 0xaf7   :  { %2015 = vadd.xlane.f32.xlu1 %v2014_v7 }
 0xaf8   :  { %v7861_v22 = vpop.f32.mrf.mxu0 }
 0xaf9   :  { %v7833_v8 = vpop.eup %6892 }
 0xafa   :  { %v2020_v9 = vsel %vm95_vm0, %v7833_v8, 0.0  ;;  %v7837_v12 = vpop.eup %6894  ;;  %v7863_v23 = vpop.f32.mrf.mxu0 }
 0xafb   :  { %2021 = vadd.xlane.f32.xlu1 %v2020_v9  ;;  %v2026_v15 = vsel %vm95_vm0, %v7837_v12, 0.0  ;;  %v1354_v42 = vadd.f32 %v7863_v23, %v7695_v45 }
 0xafd   :  { %v7839_v13 = vpop.eup %6896 }
 0xafe   :  { %v2023_v14 = vsel %vm95_vm0, %v7839_v13, 0.0 }
 0xaff   :  { %2024 = vadd.xlane.f32.xlu0 %v2023_v14  ;;  %2027 = vadd.xlane.f32.xlu1 %v2026_v15 }
 0xb01   :  { %v7845_v16 = vpop.eup %6898 }
 0xb02   :  { %v2029_v17 = vsel %vm95_vm0, %v7845_v16, 0.0 }
 0xb03   :  { %2030 = vadd.xlane.f32.xlu0 %v2029_v17 }
 0xb10   :  { %2044 = vrot.lane.b32.xlu1 %v7365_v52, %s8954_s27 }
 0xb19   :  { %2046 = vrot.lane.b32.xlu0 %v7375_v59, %s8954_s27  ;;  %v2049_v59 = vpop.permute.xlu1 %2048 }
 0xb77   :  { %v6348_v11 = vpop.f32.mrf.mxu0 }
 0xb79   :  { %v1680_v56 = vpop.f32.mrf.mxu0 }
 0xb7a   :  { %6357 = vmatprep.mubr.msk.f32.mxu0 %vm472_vm3, %v1680_v56 }
 0xb7b   :  { %v6351_v52 = vpop.f32.mrf.mxu0  ;;  %6358 = vmatmul.mubr.msk.f32.vlgmr.msra.gmra.mxu0 %vm472_vm3, %v6348_v11 }
 0xb7c   :  { %6388 = vmatpush3.msra.mxu0 %v2055_v55  ;;  %v1339_v55 = vadd.f32 %v7853_v18, %v7685_v41  ;;  %v5621_v18 = vld [vmem:[%s8916_s11] ss:$0 sm:$0xff] }
 0xb7d   :  { %6389 = vmatprep.subr.mxu0 %v2053_v25  ;;  %v1690_v60 = vpop.f32.mrf.mxu0  ;;  %v2019_v61 = vpop.xlane.xlu0 %2018 }
 0xb7e   :  { %6390 = vmatpush3.msra.mxu0 %v2053_v25  ;;  %6360 = vmatprep.mubr.msk.f32.mxu0 %vm472_vm3, %v1690_v60  ;;  %v7070_v25 = vld [vmem:[#allocation2 + $0x8] sm:$0xff] }
 0xb7f   :  { %6391 = vmatprep.subr.mxu0 %v2051_v24  ;;  %v6354_v26 = vpop.f32.mrf.mxu0  ;;  %6361 = vmatmul.mubr.msk.f32.gmra.mxu0 %vm472_vm3, %v6351_v52 }
 0xb80   :  { %6392 = vmatpush3.msra.mxu0 %v2051_v24  ;;  %v2016_v58 = vpop.xlane.xlu1 %2015 }
 0xb81   :  { %6393 = vmatprep.subr.mxu0 %v2049_v59  ;;  %6900 = vrcp.f32 %v2016_v58  ;;  %v1700_v27 = vpop.f32.mrf.mxu0 }
 0xb82   :  { %6394 = vmatpush3.msra.mxu0 %v2049_v59  ;;  %6363 = vmatprep.mubr.msk.f32.mxu0 %vm472_vm3, %v1700_v27  ;;  %6902 = vrcp.f32 %v2019_v61 }
 0xb83   :  { %6364 = vmatmul.mubr.msk.f32.gmra.mxu0 %vm472_vm3, %v6354_v26 }
 0xb84   :  { %v2022_v28 = vpop.xlane.xlu1 %2021 }
 0xb85   :  { %6904 = vrcp.f32 %v2022_v28 }
 0xb88   :  { %v2025_v29 = vpop.xlane.xlu0 %2024  ;;  %v2028_v30 = vpop.xlane.xlu1 %2027 }
 0xb89   :  { %6906 = vrcp.f32 %v2025_v29 }
 0xb8a   :  { %6908 = vrcp.f32 %v2028_v30  ;;  %v7071_v30 = vld [vmem:[#allocation2] sm:$0xff] }
 0xb8c   :  { %v2031_v31 = vpop.xlane.xlu0 %2030  ;;  %v2045_v37 = vpop.permute.xlu1 %2044 }
 0xb8d   :  { %6910 = vrcp.f32 %v2031_v31 }
 0xb8e   :  { %v6901_v33 = vpop.eup %6900 }
 0xb8f   :  { %v2033_v34 = vmul.f32 %v6901_v33, %v6891_v6  ;;  %v6903_v35 = vpop.eup %6902  ;;  %v1359_v6 = vadd.f32 %v7861_v22, %v7693_v38 }
 0xb90   :  { %v2047_v36 = vpop.permute.xlu0 %2046  ;;  %v2035_v39 = vmul.f32 %v6903_v35, %v7828_v3  ;;  %v1344_v3 = vadd.f32 %v7859_v21, %v7691_v44 }
 0xb91   :  { %6395 = vmatprep.subr.mxu0 %v2047_v36  ;;  %6399 = vmatprep.mubr.msk.f32.mxu0 %vm95_vm0, %v2033_v34 }
 0xb92   :  { %v6905_v32 = vpop.eup %6904  ;;  %6396 = vmatpush3.msra.mxu0 %v2047_v36 }
 0xb93   :  { %6397 = vmatprep.subr.mxu0 %v2045_v37  ;;  %v2037_v40 = vmul.f32 %v6905_v32, %v7833_v8 }
 0xb94   :  { %6398 = vmatpush3.msra.mxu0 %v2045_v37 }
 0xb95   :  { %6400 = vmatmul.mubr.msk.f32.vlgmr.msra.gmra.mxu0 %vm95_vm0, %v2035_v39  ;;  %6408 = vmatprep.subr.mxu0 %v447_v54  ;;  %v7072_v39 = vld [vmem:[#allocation2 + $0x10] sm:$0xff] }
 0xb96   :  { %v6907_v47 = vpop.eup %6906  ;;  %6402 = vmatprep.mubr.msk.f32.mxu0 %vm95_vm0, %v2037_v40  ;;  %6409 = vmatpush3.msra.mxu0 %v447_v54 }
 0xb97   :  { %v6909_v49 = vpop.eup %6908  ;;  %v2039_v50 = vmul.f32 %v6907_v47, %v7839_v13 }
 0xb98   :  { %v2041_v48 = vmul.f32 %v6909_v49, %v7837_v12 }
 0xb99   :  { %6403 = vmatmul.mubr.msk.f32.gmra.mxu0 %vm95_vm0, %v2039_v50 }
 0xb9a   :  { %v6911_v46 = vpop.eup %6910  ;;  %6405 = vmatprep.mubr.msk.f32.mxu0 %vm95_vm0, %v2041_v48  ;;  %v7073_v48 = vld [vmem:[#allocation2 + $0x18] sm:$0xff] }
 0xb9b   :  { %v2043_v53 = vmul.f32 %v6911_v46, %v7845_v16  ;;  %v5620_v16 = vld [vmem:[%s8915_s10] ss:$0 sm:$0xff] }
 0xb9d   :  { %6406 = vmatmul.mubr.msk.f32.gmra.mxu0 %vm95_vm0, %v2043_v53  ;;  %v7074_v53 = vld [vmem:[#allocation2 + $0x20] sm:$0xff] }
 0xc3b   :  { %v6359_v51 = vpop.f32.mrf.mxu0 }
 0xc3c   :  { %v1823_v62 = vadd.f32 %v6359_v51, %v1339_v55 }
 0xc3d   :  { %v1793_v63 = vpop.f32.mrf.mxu0 }
 0xc3e   :  { %v1822_v1 = vadd.f32 %v1793_v63, %v1334_v57  ;;  %v7075_v57 = vld [vmem:[#allocation2 + $0x28] sm:$0xff] }
 0xc3f   :  { %v6362_v2 = vpop.f32.mrf.mxu0 }
 0xc40   :  { %v1825_v4 = vadd.f32 %v6362_v2, %v1349_v0 }
 0xc41   :  { %v1803_v5 = vpop.f32.mrf.mxu0 }
 0xc42   :  { %v1824_v41 = vadd.f32 %v1803_v5, %v1344_v3 }
 0xc43   :  { %v6365_v7 = vpop.f32.mrf.mxu0 }
 0xc44   :  { %v1827_v8 = vadd.f32 %v6365_v7, %v1359_v6 }
 0xc45   :  { %v1813_v9 = vpop.f32.mrf.mxu0 }
 0xc46   :  { %v1826_v12 = vadd.f32 %v1813_v9, %v1354_v42 }
 0xc55   :  { %v6401_v13 = vpop.f32.mrf.mxu0 }
 0xc57   :  { %v2146_v43 = vpop.f32.mrf.mxu0 }
 0xc58   :  { %6410 = vmatprep.mubr.msk.f32.mxu0 %vm472_vm3, %v2146_v43 }
 0xc59   :  { %v6404_v14 = vpop.f32.mrf.mxu0  ;;  %6411 = vmatmul.mubr.msk.f32.vlgmr.msra.gmra.mxu0 %vm472_vm3, %v6401_v13 }
 0xc5b   :  { %v2156_v44 = vpop.f32.mrf.mxu0 }
 0xc5c   :  { %6413 = vmatprep.mubr.msk.f32.mxu0 %vm472_vm3, %v2156_v44 }
 0xc5d   :  { %v6407_v15 = vpop.f32.mrf.mxu0  ;;  %6414 = vmatmul.mubr.msk.f32.gmra.mxu0 %vm472_vm3, %v6404_v14 }
 0xc5f   :  { %v2166_v38 = vpop.f32.mrf.mxu0 }
 0xc60   :  { %6416 = vmatprep.mubr.msk.f32.mxu0 %vm472_vm3, %v2166_v38 }
 0xc61   :  { %6417 = vmatmul.mubr.msk.f32.gmra.mxu0 %vm472_vm3, %v6407_v15 }
 0xd19   :  { %v6412_v45 = vpop.f32.mrf.mxu0 }
 0xd1a   :  { %v2289_v17 = vadd.f32 %v6412_v45, %v1823_v62 }
 0xd1b   :  { %v2259_v19 = vpop.f32.mrf.mxu0 }
 0xd1c   :  { %v2303_v20 = vadd.f32 %v5620_v16, %v2289_v17  ;;  %v2288_v21 = vadd.f32 %v2259_v19, %v1822_v1 }
 0xd1d   :  { %v6415_v22 = vpop.f32.mrf.mxu0 }
 0xd1e   :  { %v2315_v23 = vmul.f32 %v5621_v18, %v2303_v20  ;;  %v2302_v24 = vadd.f32 %v5620_v16, %v2288_v21  ;;  %v2291_v11 = vadd.f32 %v6415_v22, %v1825_v4 }
 0xd1f   :  { %v2269_v56 = vpop.f32.mrf.mxu0 }
 0xd20   :  { %v2314_v52 = vmul.f32 %v5621_v18, %v2302_v24  ;;  %v2290_v59 = vadd.f32 %v2269_v56, %v1824_v41  ;;  %v7909_v60 = vadd.f32 %v7070_v25, %v2315_v23  ;;  %v2305_v26 = vadd.f32 %v5620_v16, %v2291_v11  ;;  %v2433_v56 = vld [vmem:[%s8919_s14 + $0x18] sm:$0xff]  ;;  %v2430_v25 = vld [vmem:[%s8919_s14] sm:$0xff] }
 0xd21   :  { %v6418_v61 = vpop.f32.mrf.mxu0  ;;  %6419 = vmatprep.subr.mxu1 %v2433_v56 }
 0xd22   :  { %v2304_v58 = vadd.f32 %v5620_v16, %v2290_v59  ;;  %v2293_v27 = vadd.f32 %v6418_v61, %v1827_v8  ;;  %v2331_v28 = vsel %vm193_vm1, %v7909_v60, 0.0  ;;  %v7913_v31 = vadd.f32 %v7071_v30, %v2314_v52  ;;  %v2432_v52 = vld [vmem:[%s8919_s14 + $0x10] sm:$0xff]  ;;  %6420 = vmatpush3.msra.mxu1 %v2433_v56  ;;  %v2431_v59 = vld [vmem:[%s8919_s14 + $0x8] sm:$0xff] }
 0xd23   :  { %2332 = vadd.xlane.f32.xlu1 %v2331_v28  ;;  %v2279_v29 = vpop.f32.mrf.mxu0  ;;  %v2317_v35 = vmul.f32 %v5621_v18, %v2305_v26  ;;  %6421 = vmatprep.subr.mxu1 %v2432_v52  ;;  %v2614_v56 = vld [vmem:[%s8921_s16 + $0x30] sm:$0xff] }
 0xd24   :  { %v2316_v33 = vmul.f32 %v5621_v18, %v2304_v58  ;;  %v2292_v34 = vadd.f32 %v2279_v29, %v1826_v12  ;;  %v2307_v36 = vadd.f32 %v5620_v16, %v2293_v27  ;;  %v2328_v32 = vsel %vm193_vm1, %v7913_v31, 0.0  ;;  %6422 = vmatpush3.msra.mxu1 %v2432_v52  ;;  %v2613_v52 = vld [vmem:[%s8921_s16 + $0x28] sm:$0xff] }
 0xd25   :  { %2329 = vadd.xlane.f32.xlu0 %v2328_v32  ;;  %v7921_v46 = vadd.f32 %v7073_v48, %v2317_v35  ;;  %6423 = vmatprep.subr.mxu1 %v2431_v59 }
 0xd26   :  { %v2306_v37 = vadd.f32 %v5620_v16, %v2292_v34  ;;  %v7917_v40 = vadd.f32 %v7072_v39, %v2316_v33  ;;  %v2319_v50 = vmul.f32 %v5621_v18, %v2307_v36  ;;  %6424 = vmatpush3.msra.mxu1 %v2431_v59  ;;  %v2612_v59 = vld [vmem:[%s8921_s16 + $0x20] sm:$0xff] }
 0xd27   :  { %v2337_v51 = vsel %vm193_vm1, %v7921_v46, 0.0  ;;  %6425 = vmatprep.subr.mxu1 %v2430_v25 }
 0xd28   :  { %v2318_v47 = vmul.f32 %v5621_v18, %v2306_v37  ;;  %v2334_v49 = vsel %vm193_vm1, %v7917_v40, 0.0  ;;  %v7929_v62 = vadd.f32 %v7075_v57, %v2319_v50  ;;  %6426 = vmatpush3.msra.mxu1 %v2430_v25  ;;  %v2611_v25 = vld [vmem:[%s8921_s16 + $0x18] sm:$0xff] }
 0xd29   :  { %2335 = vadd.xlane.f32.xlu0 %v2334_v49 }
 0xd2a   :  { %v7923_v54 = vadd.f32 %v7074_v53, %v2318_v47  ;;  %v2343_v63 = vsel %vm193_vm1, %v7929_v62, 0.0 }
 0xd2c   :  { %v2340_v55 = vsel %vm193_vm1, %v7923_v54, 0.0 }
 0xd2d   :  { %2341 = vadd.xlane.f32.xlu1 %v2340_v55  ;;  %2338 = vadd.xlane.f32.xlu0 %v2337_v51  ;;  %v5622_v51 = vld [vmem:[%s8917_s12] ss:$0 sm:$0xff] }
 0xd31   :  { %2344 = vadd.xlane.f32.xlu0 %v2343_v63 }
 0xdac   :  { %v2333_v0 = vpop.xlane.xlu1 %2332 }
 0xdad   :  { %v2347_v1 = vmul.f32 0.03125, %v2333_v0 }
 0xdae   :  { %v2330_v3 = vpop.xlane.xlu0 %2329 }
 0xdaf   :  { %v7934_v2 = vsub.f32 %v7909_v60, %v2347_v1  ;;  %v2346_v4 = vmul.f32 0.03125, %v2330_v3  ;;  %v5623_v1 = vld [vmem:[%s8918_s13] ss:$0 sm:$0xff] }
 0xdb1   :  { %v2359_v5 = vmul.f32 %v7934_v2, %v7934_v2  ;;  %v7939_v6 = vsub.f32 %v7913_v31, %v2346_v4 }
 0xdb2   :  { %v2336_v41 = vpop.xlane.xlu0 %2335 }
 0xdb3   :  { %v2367_v7 = vsel %vm193_vm1, %v2359_v5, 0.0  ;;  %v2348_v42 = vmul.f32 0.03125, %v2336_v41  ;;  %v2358_v8 = vmul.f32 %v7939_v6, %v7939_v6 }
 0xdb4   :  { %2368 = vadd.xlane.f32.xlu0 %v2367_v7 }
 0xdb5   :  { %v7945_v9 = vsub.f32 %v7917_v40, %v2348_v42  ;;  %v2364_v12 = vsel %vm193_vm1, %v2358_v8, 0.0 }
 0xdb6   :  { %v2342_v13 = vpop.xlane.xlu1 %2341  ;;  %v2339_v43 = vpop.xlane.xlu0 %2338  ;;  %2365 = vadd.xlane.f32.xlu1 %v2364_v12 }
 0xdb7   :  { %v2350_v14 = vmul.f32 0.03125, %v2342_v13  ;;  %v2349_v44 = vmul.f32 0.03125, %v2339_v43  ;;  %v2360_v15 = vmul.f32 %v7945_v9, %v7945_v9 }
 0xdb9   :  { %v7951_v38 = vsub.f32 %v7923_v54, %v2350_v14  ;;  %v7954_v45 = vsub.f32 %v7921_v46, %v2349_v44  ;;  %v2370_v16 = vsel %vm193_vm1, %v2360_v15, 0.0 }
 0xdba   :  { %v2345_v17 = vpop.xlane.xlu0 %2344  ;;  %2371 = vadd.xlane.f32.xlu1 %v2370_v16 }
 0xdbb   :  { %v2362_v18 = vmul.f32 %v7951_v38, %v7951_v38  ;;  %v2351_v19 = vmul.f32 0.03125, %v2345_v17  ;;  %v2361_v20 = vmul.f32 %v7954_v45, %v7954_v45 }
 0xdbd   :  { %v2376_v21 = vsel %vm193_vm1, %v2362_v18, 0.0  ;;  %v7963_v22 = vsub.f32 %v7929_v62, %v2351_v19  ;;  %v2373_v23 = vsel %vm193_vm1, %v2361_v20, 0.0  ;;  %v2621_v19 = vld [vmem:[%s8921_s16 + $0x68] sm:$0xff]  ;;  %v2620_v20 = vld [vmem:[%s8921_s16 + $0x60] sm:$0xff] }
 0xdbe   :  { %2374 = vadd.xlane.f32.xlu0 %v2373_v23  ;;  %2377 = vadd.xlane.f32.xlu1 %v2376_v21  ;;  %v2619_v21 = vld [vmem:[%s8921_s16 + $0x58] sm:$0xff]  ;;  %v2617_v23 = vld [vmem:[%s8921_s16 + $0x48] sm:$0xff] }
 0xdbf   :  { %v2363_v24 = vmul.f32 %v7963_v22, %v7963_v22 }
 0xdc1   :  { %v2379_v11 = vsel %vm193_vm1, %v2363_v24, 0.0  ;;  %v2616_v24 = vld [vmem:[%s8921_s16 + $0x40] sm:$0xff] }
 0xdc2   :  { %2380 = vadd.xlane.f32.xlu0 %v2379_v11  ;;  %v2615_v11 = vld [vmem:[%s8921_s16 + $0x38] sm:$0xff] }
 0xe3d   :  { %v2369_v26 = vpop.xlane.xlu0 %2368 }
 0xe3e   :  { %v2383_v61 = vmul.f32 0.03125, %v2369_v26  ;;  %v2610_v26 = vld [vmem:[%s8921_s16 + $0x10] sm:$0xff] }
 0xe3f   :  { %v2366_v27 = vpop.xlane.xlu1 %2365 }
 0xe40   :  { %v2389_v58 = vadd.f32 1e-12, %v2383_v61  ;;  %v2382_v28 = vmul.f32 0.03125, %v2366_v27  ;;  %v2609_v61 = vld [vmem:[%s8921_s16 + $0x8] sm:$0xff]  ;;  %v5624_v27 = vld [vmem:[%s8920_s15] ss:$0 sm:$0xff] }
 0xe42   :  { %6912 = vrsqrt.f32 %v2389_v58  ;;  %v2388_v29 = vadd.f32 1e-12, %v2382_v28  ;;  %v2608_v58 = vld [vmem:[%s8921_s16] sm:$0xff] }
 0xe43   :  { %v2372_v30 = vpop.xlane.xlu1 %2371 }
 0xe44   :  { %6914 = vrsqrt.f32 %v2388_v29  ;;  %v2384_v33 = vmul.f32 0.03125, %v2372_v30 }
 0xe46   :  { %v2390_v34 = vadd.f32 1e-12, %v2384_v33 }
 0xe47   :  { %v2375_v35 = vpop.xlane.xlu0 %2374  ;;  %v2378_v36 = vpop.xlane.xlu1 %2377 }
 0xe48   :  { %6916 = vrsqrt.f32 %v2390_v34  ;;  %v2385_v32 = vmul.f32 0.03125, %v2375_v35  ;;  %v2386_v37 = vmul.f32 0.03125, %v2378_v36 }
 0xe4a   :  { %v2391_v39 = vadd.f32 1e-12, %v2385_v32  ;;  %v2392_v47 = vadd.f32 1e-12, %v2386_v37 }
 0xe4b   :  { %v2381_v49 = vpop.xlane.xlu0 %2380 }
 0xe4c   :  { %6918 = vrsqrt.f32 %v2391_v39  ;;  %v2387_v50 = vmul.f32 0.03125, %v2381_v49 }
 0xe4d   :  { %6920 = vrsqrt.f32 %v2392_v47 }
 0xe4e   :  { %v2393_v53 = vadd.f32 1e-12, %v2387_v50 }
 0xe4f   :  { %v6913_v48 = vpop.eup %6912 }
 0xe50   :  { %v2401_v55 = vmul.f32 %v6913_v48, %v7934_v2  ;;  %6922 = vrsqrt.f32 %v2393_v53 }
 0xe51   :  { %v6915_v57 = vpop.eup %6914 }
 0xe52   :  { %v2400_v63 = vmul.f32 %v6915_v57, %v7939_v6  ;;  %v2413_v0 = vmul.f32 %v5622_v51, %v2401_v55 }
 0xe54   :  { %v2412_v3 = vmul.f32 %v5622_v51, %v2400_v63  ;;  %v2425_v7 = vadd.f32 %v5623_v1, %v2413_v0 }
 0xe55   :  { %v6917_v4 = vpop.eup %6916 }
 0xe56   :  { %v2424_v5 = vadd.f32 %v5623_v1, %v2412_v3  ;;  %v2402_v41 = vmul.f32 %v6917_v4, %v7945_v9 }
 0xe58   :  { %6427 = vmatprep.mubr.msk.f32.mxu1 %vm193_vm1, %v2424_v5  ;;  %v2414_v2 = vmul.f32 %v5622_v51, %v2402_v41 }
 0xe59   :  { %v6919_v42 = vpop.eup %6918  ;;  %6428 = vmatmul.mubr.msk.f32.vlgmr.msra.gmra.mxu1 %vm193_vm1, %v2425_v7 }
 0xe5a   :  { %v6921_v8 = vpop.eup %6920  ;;  %v2426_v12 = vadd.f32 %v5623_v1, %v2414_v2  ;;  %v2403_v6 = vmul.f32 %v6919_v42, %v7954_v45  ;;  %v2622_v45 = vld [vmem:[%s8921_s16 + $0x70] sm:$0xff] }
 0xe5b   :  { %v2404_v13 = vmul.f32 %v6921_v8, %v7951_v38  ;;  %v2623_v38 = vld [vmem:[%s8921_s16 + $0x78] sm:$0xff] }
 0xe5c   :  { %6430 = vmatprep.mubr.msk.f32.mxu1 %vm193_vm1, %v2426_v12  ;;  %v2415_v43 = vmul.f32 %v5622_v51, %v2403_v6  ;;  %6436 = vmatprep.subr.mxu0 %v2623_v38 }
 0xe5d   :  { %v6923_v14 = vpop.eup %6922  ;;  %v2416_v44 = vmul.f32 %v5622_v51, %v2404_v13  ;;  %6437 = vmatpush3.msra.mxu0 %v2623_v38 }
 0xe5e   :  { %v2427_v15 = vadd.f32 %v5623_v1, %v2415_v43  ;;  %v2405_v9 = vmul.f32 %v6923_v14, %v7963_v22  ;;  %6438 = vmatprep.subr.mxu0 %v2622_v45  ;;  %v2618_v22 = vld [vmem:[%s8921_s16 + $0x50] sm:$0xff] }
 0xe5f   :  { %v2428_v16 = vadd.f32 %v5623_v1, %v2416_v44  ;;  %6439 = vmatpush3.msra.mxu0 %v2622_v45 }
 0xe60   :  { %6431 = vmatmul.mubr.msk.f32.gmra.mxu1 %vm193_vm1, %v2427_v15  ;;  %v2417_v17 = vmul.f32 %v5622_v51, %v2405_v9  ;;  %6440 = vmatprep.subr.mxu0 %v2621_v19 }
 0xe61   :  { %6433 = vmatprep.mubr.msk.f32.mxu1 %vm193_vm1, %v2428_v16  ;;  %6441 = vmatpush3.msra.mxu0 %v2621_v19 }
 0xe62   :  { %v2429_v18 = vadd.f32 %v5623_v1, %v2417_v17  ;;  %6442 = vmatprep.subr.mxu0 %v2620_v20 }
 0xe63   :  { %6443 = vmatpush3.msra.mxu0 %v2620_v20 }
 0xe64   :  { %6434 = vmatmul.mubr.msk.f32.gmra.mxu1 %vm193_vm1, %v2429_v18  ;;  %6444 = vmatprep.subr.mxu0 %v2619_v21 }
 0xe65   :  { %6445 = vmatpush3.msra.mxu0 %v2619_v21 }
 0xe66   :  { %6446 = vmatprep.subr.mxu0 %v2618_v22 }
 0xe67   :  { %6447 = vmatpush3.msra.mxu0 %v2618_v22 }
 0xe68   :  { %6448 = vmatprep.subr.mxu0 %v2617_v23 }
 0xe69   :  { %6449 = vmatpush3.msra.mxu0 %v2617_v23 }
 0xe6a   :  { %6450 = vmatprep.subr.mxu0 %v2616_v24 }
 0xe6b   :  { %6451 = vmatpush3.msra.mxu0 %v2616_v24 }
 0xe6c   :  { %6452 = vmatprep.subr.mxu0 %v2615_v11 }
 0xe6d   :  { %6453 = vmatpush3.msra.mxu0 %v2615_v11 }
 0xe6e   :  { %6454 = vmatprep.subr.mxu0 %v2614_v56 }
 0xe6f   :  { %6455 = vmatpush3.msra.mxu0 %v2614_v56 }
 0xe70   :  { %6456 = vmatprep.subr.mxu0 %v2613_v52 }
 0xe71   :  { %6457 = vmatpush3.msra.mxu0 %v2613_v52 }
 0xe72   :  { %6458 = vmatprep.subr.mxu0 %v2612_v59 }
 0xe73   :  { %6459 = vmatpush3.msra.mxu0 %v2612_v59 }
 0xe74   :  { %6460 = vmatprep.subr.mxu0 %v2611_v25 }
 0xe75   :  { %6461 = vmatpush3.msra.mxu0 %v2611_v25 }
 0xe76   :  { %6462 = vmatprep.subr.mxu0 %v2610_v26 }
 0xe77   :  { %6463 = vmatpush3.msra.mxu0 %v2610_v26 }
 0xe78   :  { %6464 = vmatprep.subr.mxu0 %v2609_v61 }
 0xe79   :  { %6465 = vmatpush3.msra.mxu0 %v2609_v61 }
 0xe7a   :  { %6466 = vmatprep.subr.mxu0 %v2608_v58 }
 0xe7b   :  { %6467 = vmatpush3.msra.mxu0 %v2608_v58 }
 0xf19   :  { %v6429_v28 = vpop.f32.mrf.mxu1 }
 0xf1a   :  { %v2531_v29 = vadd.f32 %v6429_v28, %v5624_v27 }
 0xf1b   :  { %v2525_v30 = vpop.f32.mrf.mxu1 }
 0xf1c   :  { %v2555_v33 = vmul.f32 %v2531_v29, %v2531_v29  ;;  %v2526_v34 = vadd.f32 %v5624_v27, %v2525_v30 }
 0xf1e   :  { %v2561_v35 = vmul.f32 %v2555_v33, %v2531_v29  ;;  %v2554_v36 = vmul.f32 %v2526_v34, %v2526_v34 }
 0xf20   :  { %v2567_v32 = vmul.f32 0.044715, %v2561_v35  ;;  %v2560_v37 = vmul.f32 %v2554_v36, %v2526_v34  ;;  %v6432_v39 = vpop.f32.mrf.mxu1 }
 0xf21   :  { %v2541_v47 = vadd.f32 %v6432_v39, %v5624_v27 }
 0xf22   :  { %v2573_v49 = vadd.f32 %v2567_v32, %v2531_v29  ;;  %v2566_v50 = vmul.f32 0.044715, %v2560_v37  ;;  %v2535_v48 = vpop.f32.mrf.mxu1 }
 0xf23   :  { %v2557_v53 = vmul.f32 %v2541_v47, %v2541_v47  ;;  %v2536_v55 = vadd.f32 %v5624_v27, %v2535_v48 }
 0xf24   :  { %v2579_v51 = vmul.f32 0.7978846, %v2573_v49  ;;  %v2572_v57 = vadd.f32 %v2566_v50, %v2526_v34  ;;  %v6435_v63 = vpop.f32.mrf.mxu1  ;;  %v5632_v50 = vld [vmem:[%s8923_s18] ss:$0 sm:$0xff] }
 0xf25   :  { %v2563_v0 = vmul.f32 %v2557_v53, %v2541_v47  ;;  %v2556_v1 = vmul.f32 %v2536_v55, %v2536_v55  ;;  %v2551_v3 = vadd.f32 %v6435_v63, %v5624_v27 }
 0xf26   :  { %6924 = vtanh.f32 %v2579_v51  ;;  %v2578_v4 = vmul.f32 0.7978846, %v2572_v57  ;;  %v2545_v5 = vpop.f32.mrf.mxu1 }
 0xf27   :  { %v2569_v41 = vmul.f32 0.044715, %v2563_v0  ;;  %v2562_v7 = vmul.f32 %v2556_v1, %v2536_v55  ;;  %v2559_v2 = vmul.f32 %v2551_v3, %v2551_v3  ;;  %v2546_v42 = vadd.f32 %v5624_v27, %v2545_v5 }
 0xf28   :  { %6926 = vtanh.f32 %v2578_v4 }
 0xf29   :  { %v2575_v8 = vadd.f32 %v2569_v41, %v2541_v47  ;;  %v2568_v12 = vmul.f32 0.044715, %v2562_v7  ;;  %v2565_v6 = vmul.f32 %v2559_v2, %v2551_v3  ;;  %v2558_v13 = vmul.f32 %v2546_v42, %v2546_v42 }
 0xf2b   :  { %v2581_v43 = vmul.f32 0.7978846, %v2575_v8  ;;  %v2574_v14 = vadd.f32 %v2568_v12, %v2536_v55  ;;  %v2571_v44 = vmul.f32 0.044715, %v2565_v6  ;;  %v2564_v15 = vmul.f32 %v2558_v13, %v2546_v42 }
 0xf2d   :  { %6928 = vtanh.f32 %v2581_v43  ;;  %v2580_v9 = vmul.f32 0.7978846, %v2574_v14  ;;  %v2577_v16 = vadd.f32 %v2571_v44, %v2551_v3  ;;  %v2570_v17 = vmul.f32 0.044715, %v2564_v15 }
 0xf2f   :  { %6930 = vtanh.f32 %v2580_v9  ;;  %v2583_v18 = vmul.f32 0.7978846, %v2577_v16  ;;  %v2576_v38 = vadd.f32 %v2570_v17, %v2546_v42 }
 0xf31   :  { %6932 = vtanh.f32 %v2583_v18  ;;  %v2582_v45 = vmul.f32 0.7978846, %v2576_v38 }
 0xf33   :  { %v6925_v19 = vpop.eup %6924  ;;  %6934 = vtanh.f32 %v2582_v45 }
 0xf34   :  { %v2591_v20 = vadd.f32 1.0, %v6925_v19 }
 0xf35   :  { %v6927_v21 = vpop.eup %6926 }
 0xf36   :  { %v2590_v22 = vadd.f32 1.0, %v6927_v21  ;;  %v2597_v23 = vmul.f32 0.5, %v2591_v20 }
 0xf38   :  { %v2596_v24 = vmul.f32 0.5, %v2590_v22  ;;  %v2603_v52 = vmul.f32 %v2597_v23, %v2531_v29  ;;  %v5631_v29 = vld [vmem:[%s8922_s17] ss:$0 sm:$0xff] }
 0xf3a   :  { %v6929_v11 = vpop.eup %6928  ;;  %v2602_v56 = vmul.f32 %v2596_v24, %v2526_v34 }
 0xf3b   :  { %v2593_v59 = vadd.f32 1.0, %v6929_v11 }
 0xf3c   :  { %v6931_v25 = vpop.eup %6930  ;;  %6468 = vmatprep.mubr.f32.mxu0 %v2602_v56 }
 0xf3d   :  { %6469 = vmatmul.mubr.f32.vlgmr.msra.gmra.mxu0 %v2603_v52  ;;  %v2592_v26 = vadd.f32 1.0, %v6931_v25  ;;  %v2599_v58 = vmul.f32 0.5, %v2593_v59 }
 0xf3e   :  { %v6933_v61 = vpop.eup %6932 }
 0xf3f   :  { %v2598_v27 = vmul.f32 0.5, %v2592_v26  ;;  %v2595_v28 = vadd.f32 1.0, %v6933_v61  ;;  %v2605_v36 = vmul.f32 %v2599_v58, %v2541_v47 }
 0xf40   :  { %v6935_v30 = vpop.eup %6934 }
 0xf41   :  { %v2604_v33 = vmul.f32 %v2598_v27, %v2536_v55  ;;  %v2594_v35 = vadd.f32 1.0, %v6935_v30  ;;  %v2601_v32 = vmul.f32 0.5, %v2595_v28 }
 0xf43   :  { %6471 = vmatprep.mubr.f32.mxu0 %v2604_v33  ;;  %v2600_v37 = vmul.f32 0.5, %v2594_v35  ;;  %v2607_v34 = vmul.f32 %v2601_v32, %v2551_v3 }
 0xf44   :  { %6472 = vmatmul.mubr.f32.gmra.mxu0 %v2605_v36 }
 0xf45   :  { %v2606_v39 = vmul.f32 %v2600_v37, %v2546_v42 }
 0xf47   :  { %6474 = vmatprep.mubr.f32.mxu0 %v2606_v39 }
 0xf48   :  { %6475 = vmatmul.mubr.f32.gmra.mxu0 %v2607_v34  ;;  %v5640_v34 = vld [vmem:[%s8969_s28 + $0x38] sm:$0xff] }
 0xf49   :  { %6477 = vmatprep.subr.mxu1 %v5640_v34 }
 0xf4a   :  { %6478 = vmatpush3.msra.mxu1 %v5640_v34 }
 0xffd   :  { %v6470_v49 = vpop.f32.mrf.mxu0 }
 0xffe   :  { %v2703_v48 = vadd.f32 %v6470_v49, %v5631_v29  ;;  %v5638_v49 = vld [vmem:[%s8969_s28 + $0x28] sm:$0xff] }
 0xfff   :  { %v2697_v53 = vpop.f32.mrf.mxu0 }
0x1000   :  { %v2734_v47 = vmul.f32 %v5632_v50, %v2703_v48  ;;  %v2698_v55 = vadd.f32 %v5631_v29, %v2697_v53 }
0x1002   :  { %v8057_v51 = vadd.f32 %v2734_v47, %v7909_v60  ;;  %v2733_v57 = vmul.f32 %v5632_v50, %v2698_v55 }
0x1004   :  { %v8060_v63 = vadd.f32 %v2733_v57, %v7913_v31  ;;  %v6473_v0 = vpop.f32.mrf.mxu0  ;;  %v2752_v1 = vsel %vm193_vm1, %v8057_v51, 0.0 }
0x1005   :  { %v2713_v3 = vadd.f32 %v6473_v0, %v5631_v29  ;;  %2753 = vadd.xlane.f32.xlu0 %v2752_v1 }
0x1006   :  { %v2707_v4 = vpop.f32.mrf.mxu0  ;;  %v2749_v5 = vsel %vm193_vm1, %v8060_v63, 0.0 }
0x1007   :  { %v2736_v41 = vmul.f32 %v5632_v50, %v2713_v3  ;;  %v2708_v7 = vadd.f32 %v5631_v29, %v2707_v4  ;;  %2750 = vadd.xlane.f32.xlu1 %v2749_v5 }
0x1008   :  { %v6476_v2 = vpop.f32.mrf.mxu0 }
0x1009   :  { %v8067_v60 = vadd.f32 %v2736_v41, %v7921_v46  ;;  %v2735_v42 = vmul.f32 %v5632_v50, %v2708_v7  ;;  %v2723_v31 = vadd.f32 %v6476_v2, %v5631_v29 }
0x100a   :  { %v2717_v8 = vpop.f32.mrf.mxu0 }
0x100b   :  { %v8070_v12 = vadd.f32 %v2735_v42, %v7917_v40  ;;  %v2738_v6 = vmul.f32 %v5632_v50, %v2723_v31  ;;  %v2718_v13 = vadd.f32 %v5631_v29, %v2717_v8  ;;  %v2758_v43 = vsel %vm193_vm1, %v8067_v60, 0.0  ;;  %v5639_v29 = vld [vmem:[%s8969_s28 + $0x30] sm:$0xff] }
0x100c   :  { %2759 = vadd.xlane.f32.xlu0 %v2758_v43  ;;  %6479 = vmatprep.subr.mxu1 %v5639_v29 }
0x100d   :  { %v8075_v14 = vadd.f32 %v2738_v6, %v7929_v62  ;;  %v2737_v44 = vmul.f32 %v5632_v50, %v2718_v13  ;;  %v2755_v46 = vsel %vm193_vm1, %v8070_v12, 0.0  ;;  %6480 = vmatpush3.msra.mxu1 %v5639_v29  ;;  %v5637_v50 = vld [vmem:[%s8969_s28 + $0x20] sm:$0xff]  ;;  %s7111_s28 = smov [#allocation3]  }
0x100e   :  { %2756 = vadd.xlane.f32.xlu1 %v2755_v46  ;;  %6481 = vmatprep.subr.mxu1 %v5638_v49  ;;  %v5635_v46 = vld [vmem:[%s8970_s25 + $0x1] ss:$0 sm:$0xff]  ;;  %s5484_s7 = sshll.u32 %s7111_s28, 4  ;;  %s5485_s7 = int_to_ptr.vmem [resolvable:$true] %s5484_s7 }
0x100f   :  { %v8080_v15 = vadd.f32 %v2737_v44, %v7923_v54  ;;  %v2764_v40 = vsel %vm193_vm1, %v8075_v14, 0.0  ;;  %6482 = vmatpush3.msra.mxu1 %v5638_v49  ;;  %p7081_p1 = scmp.lt.s32.totalorder %s5485_s7, %s5485_s7 }
0x1010   :  { %2765 = vadd.xlane.f32.xlu0 %v2764_v40  ;;  %6483 = vmatprep.subr.mxu1 %v5637_v50 }
0x1011   :  { %v2761_v9 = vsel %vm193_vm1, %v8080_v15, 0.0  ;;  %6484 = vmatpush3.msra.mxu1 %v5637_v50 }
0x1012   :  { %2762 = vadd.xlane.f32.xlu1 %v2761_v9 }
0x108e   :  { %v2754_v16 = vpop.xlane.xlu0 %2753 }
0x108f   :  { %v2768_v17 = vmul.f32 0.03125, %v2754_v16 }
0x1090   :  { %v2751_v62 = vpop.xlane.xlu1 %2750 }
0x1091   :  { %v8087_v18 = vsub.f32 %v8057_v51, %v2768_v17  ;;  %v2767_v38 = vmul.f32 0.03125, %v2751_v62  ;;  %v5636_v17 = vld [vmem:[%s8971_s1 + $0x1] ss:$0 sm:$0xff]  ;;  %s8975_s1 = smov 104  }
0x1093   :  { %v8090_v45 = vsub.f32 %v8060_v63, %v2767_v38  ;;  %v2780_v54 = vmul.f32 %v8087_v18, %v8087_v18 }
0x1095   :  { %v2760_v19 = vpop.xlane.xlu0 %2759  ;;  %v2788_v20 = vsel %vm193_vm1, %v2780_v54, 0.0  ;;  %v2779_v21 = vmul.f32 %v8090_v45, %v8090_v45 }
0x1096   :  { %v2770_v22 = vmul.f32 0.03125, %v2760_v19  ;;  %2789 = vadd.xlane.f32.xlu0 %v2788_v20 }
0x1097   :  { %v2757_v23 = vpop.xlane.xlu1 %2756  ;;  %v2785_v24 = vsel %vm193_vm1, %v2779_v21, 0.0 }
0x1098   :  { %v8099_v11 = vsub.f32 %v8067_v60, %v2770_v22  ;;  %v2769_v56 = vmul.f32 0.03125, %v2757_v23  ;;  %2786 = vadd.xlane.f32.xlu1 %v2785_v24 }
0x1099   :  { %v2766_v52 = vpop.xlane.xlu0 %2765 }
0x109a   :  { %v8102_v59 = vsub.f32 %v8070_v12, %v2769_v56  ;;  %v2772_v25 = vmul.f32 0.03125, %v2766_v52  ;;  %v2782_v26 = vmul.f32 %v8099_v11, %v8099_v11 }
0x109b   :  { %v2763_v61 = vpop.xlane.xlu1 %2762 }
0x109c   :  { %v8107_v58 = vsub.f32 %v8075_v14, %v2772_v25  ;;  %v2771_v27 = vmul.f32 0.03125, %v2763_v61  ;;  %v2794_v28 = vsel %vm193_vm1, %v2782_v26, 0.0  ;;  %v2781_v30 = vmul.f32 %v8102_v59, %v8102_v59 }
0x109d   :  { %2795 = vadd.xlane.f32.xlu0 %v2794_v28 }
0x109e   :  { %v8113_v33 = vsub.f32 %v8080_v15, %v2771_v27  ;;  %v2791_v35 = vsel %vm193_vm1, %v2781_v30, 0.0  ;;  %v2784_v36 = vmul.f32 %v8107_v58, %v8107_v58 }
0x109f   :  { %2792 = vadd.xlane.f32.xlu1 %v2791_v35 }
0x10a0   :  { %v2800_v32 = vsel %vm193_vm1, %v2784_v36, 0.0  ;;  %v2783_v37 = vmul.f32 %v8113_v33, %v8113_v33 }
0x10a1   :  { %2801 = vadd.xlane.f32.xlu0 %v2800_v32 }
0x10a2   :  { %v2797_v39 = vsel %vm193_vm1, %v2783_v37, 0.0 }
0x10a3   :  { %2798 = vadd.xlane.f32.xlu1 %v2797_v39 }
0x111f   :  { %v2790_v48 = vpop.xlane.xlu0 %2789 }
0x1120   :  { %v2804_v53 = vmul.f32 0.03125, %v2790_v48 }
0x1121   :  { %v2787_v47 = vpop.xlane.xlu1 %2786 }
0x1122   :  { %v2810_v55 = vadd.f32 1e-12, %v2804_v53  ;;  %v2803_v57 = vmul.f32 0.03125, %v2787_v47 }
0x1124   :  { %6936 = vrsqrt.f32 %v2810_v55  ;;  %v2809_v0 = vadd.f32 1e-12, %v2803_v57 }
0x1126   :  { %6938 = vrsqrt.f32 %v2809_v0  ;;  %v2796_v1 = vpop.xlane.xlu0 %2795 }
0x1127   :  { %v2806_v3 = vmul.f32 0.03125, %v2796_v1 }
0x1128   :  { %v2793_v4 = vpop.xlane.xlu1 %2792 }
0x1129   :  { %v2812_v5 = vadd.f32 1e-12, %v2806_v3  ;;  %v2805_v41 = vmul.f32 0.03125, %v2793_v4 }
0x112a   :  { %v2802_v7 = vpop.xlane.xlu0 %2801 }
0x112b   :  { %6940 = vrsqrt.f32 %v2812_v5  ;;  %v2811_v2 = vadd.f32 1e-12, %v2805_v41  ;;  %v2808_v42 = vmul.f32 0.03125, %v2802_v7 }
0x112c   :  { %v2799_v31 = vpop.xlane.xlu1 %2798 }
0x112d   :  { %6942 = vrsqrt.f32 %v2811_v2  ;;  %v2814_v8 = vadd.f32 1e-12, %v2808_v42  ;;  %v2807_v6 = vmul.f32 0.03125, %v2799_v31  ;;  %v5654_v42 = vld [vmem:[%s8973_s30 + $0xc8] sm:$0xff] }
0x112f   :  { %6944 = vrsqrt.f32 %v2814_v8  ;;  %v2813_v13 = vadd.f32 1e-12, %v2807_v6  ;;  %v5653_v8 = vld [vmem:[%s8973_s30 + $0xc0] sm:$0xff] }
0x1131   :  { %v6937_v43 = vpop.eup %6936  ;;  %6946 = vrsqrt.f32 %v2813_v13 }
0x1132   :  { %v2822_v44 = vmul.f32 %v6937_v43, %v8087_v18  ;;  %v5656_v43 = vld [vmem:[%s8973_s30 + $0xd8] sm:$0xff] }
0x1133   :  { %v6939_v40 = vpop.eup %6938 }
0x1134   :  { %v2821_v9 = vmul.f32 %v6939_v40, %v8090_v45  ;;  %v2834_v16 = vmul.f32 %v5635_v46, %v2822_v44 }
0x1136   :  { %v2833_v62 = vmul.f32 %v5635_v46, %v2821_v9  ;;  %v2846_v19 = vadd.f32 %v5636_v17, %v2834_v16 }
0x1138   :  { %v6941_v38 = vpop.eup %6940  ;;  %v2845_v54 = vadd.f32 %v5636_v17, %v2833_v62  ;;  %v5655_v62 = vld [vmem:[%s8973_s30 + $0xd0] sm:$0xff] }
0x1139   :  { %v2824_v20 = vmul.f32 %v6941_v38, %v8099_v11 }
0x113a   :  { %v6943_v21 = vpop.eup %6942  ;;  %6485 = vmatprep.mubr.msk.f32.mxu1 %vm193_vm1, %v2845_v54  ;;  %v5657_v54 = vld [vmem:[%s8973_s30 + $0xe0] sm:$0xff] }
0x113b   :  { %6486 = vmatmul.mubr.msk.f32.vlgmr.msra.gmra.mxu1 %vm193_vm1, %v2846_v19  ;;  %v2823_v18 = vmul.f32 %v6943_v21, %v8102_v59  ;;  %v2836_v45 = vmul.f32 %v5635_v46, %v2824_v20  ;;  %v5658_v21 = vld [vmem:[%s8973_s30 + $0xe8] sm:$0xff] }
0x113c   :  { %v6945_v22 = vpop.eup %6944 }
0x113d   :  { %v2835_v23 = vmul.f32 %v5635_v46, %v2823_v18  ;;  %v2826_v24 = vmul.f32 %v6945_v22, %v8107_v58  ;;  %v2848_v26 = vadd.f32 %v5636_v17, %v2836_v45  ;;  %v5642_v58 = vld [vmem:[%s8972_s6 + $0x1] ss:$0 sm:$0xff]  ;;  %s8974_s6 = smov 96  }
0x113e   :  { %v6947_v56 = vpop.eup %6946 }
0x113f   :  { %v2847_v52 = vadd.f32 %v5636_v17, %v2835_v23  ;;  %v2825_v25 = vmul.f32 %v6947_v56, %v8113_v33  ;;  %v2838_v61 = vmul.f32 %v5635_v46, %v2826_v24 }
0x1141   :  { %6488 = vmatprep.mubr.msk.f32.mxu1 %vm193_vm1, %v2847_v52  ;;  %v2837_v11 = vmul.f32 %v5635_v46, %v2825_v25  ;;  %v2850_v28 = vadd.f32 %v5636_v17, %v2838_v61 }
0x1142   :  { %6489 = vmatmul.mubr.msk.f32.gmra.mxu1 %vm193_vm1, %v2848_v26 }
0x1143   :  { %v2849_v27 = vadd.f32 %v5636_v17, %v2837_v11 }
0x1145   :  { %6491 = vmatprep.mubr.msk.f32.mxu1 %vm193_vm1, %v2849_v27 }
0x1146   :  { %6492 = vmatmul.mubr.msk.f32.gmra.mxu1 %vm193_vm1, %v2850_v28 }
0x11fb   :  { %v6487_v59 = vpop.f32.mrf.mxu1 }
0x11fc   :  { %v8169_v49 = vadd.f32 %v6487_v59, %v5642_v58 }
0x11fd   :  { %v2948_v30 = vpop.f32.mrf.mxu1 }
0x11fe   :  { %v8155_v33 = vadd.f32 %v5642_v58, %v2948_v30 }
0x1200   :  { %6506 = vmatprep.mubr.msk.f32.mxu1 %vm472_vm3, %v8155_v33 }
0x1202   :  { %v6490_v35 = vpop.f32.mrf.mxu1 }
0x1203   :  { %v8165_v29 = vadd.f32 %v6490_v35, %v5642_v58 }
0x1204   :  { %v2958_v36 = vpop.f32.mrf.mxu1 }
0x1205   :  { %v8173_v50 = vadd.f32 %v5642_v58, %v2958_v36 }
0x1206   :  { %v6493_v32 = vpop.f32.mrf.mxu1 }
0x1207   :  { %v8159_v37 = vadd.f32 %v6493_v32, %v5642_v58 }
0x1208   :  { %v2968_v39 = vpop.f32.mrf.mxu1 }
0x1209   :  { %v8161_v34 = vadd.f32 %v5642_v58, %v2968_v39  ;;  %3005 = vrot.lane.b32.xlu1 %v8159_v37, %s7099_s2 }
0x120b   :  { %3003 = vrot.lane.b32.xlu0 %v8161_v34, %s7099_s2 }
0x120d   :  { %3001 = vrot.lane.b32.xlu1 %v8165_v29, %s7099_s2 }
0x120f   :  { %2997 = vrot.lane.b32.xlu0 %v8169_v49, %s7099_s2 }
0x1211   :  { %2999 = vrot.lane.b32.xlu1 %v8173_v50, %s7099_s2 }
0x1213   :  { %3196 = vrot.lane.b32.xlu0 %v8173_v50, %s7100_s29 }
0x1215   :  { %2995 = vrot.lane.b32.xlu1 %v8155_v33, %s7099_s2  ;;  %s8977_s2 = smov 72  }
0x1217   :  { %3352 = vrot.lane.b32.xlu0 %v8159_v37, %s8974_s6 }
0x1219   :  { %3202 = vrot.lane.b32.xlu1 %v8159_v37, %s7100_s29 }
0x121b   :  { %3200 = vrot.lane.b32.xlu0 %v8161_v34, %s7100_s29 }
0x121d   :  { %3198 = vrot.lane.b32.xlu1 %v8165_v29, %s7100_s29 }
0x1221   :  { %3194 = vrot.lane.b32.xlu1 %v8169_v49, %s7100_s29 }
0x1225   :  { %3192 = vrot.lane.b32.xlu1 %v8155_v33, %s7100_s29  ;;  %s8978_s29 = smov 80  }
0x1229   :  { %3350 = vrot.lane.b32.xlu1 %v8161_v34, %s8974_s6 }
0x127b   :  { %v3006_v48 = vpop.permute.xlu1 %3005 }
0x127c   :  { %6494 = vmatprep.subr.msk.mxu1 %vm472_vm3, %v3006_v48 }
0x127d   :  { %6495 = vmatpush3.xpose.msk.msra.mxu1 %vm472_vm3, %v3006_v48  ;;  %v3004_v53 = vpop.permute.xlu0 %3003 }
0x127e   :  { %6496 = vmatprep.subr.msk.mxu1 %vm472_vm3, %v3004_v53 }
0x127f   :  { %v3002_v47 = vpop.permute.xlu1 %3001 }
0x1281   :  { %6497 = vmatpush3.xpose.msk.msra.mxu1 %vm472_vm3, %v3004_v53  ;;  %v2998_v55 = vpop.permute.xlu0 %2997 }
0x1282   :  { %6498 = vmatprep.subr.msk.mxu1 %vm472_vm3, %v3002_v47 }
0x1283   :  { %v3000_v57 = vpop.permute.xlu1 %2999 }
0x1285   :  { %6499 = vmatpush3.xpose.msk.msra.mxu1 %vm472_vm3, %v3002_v47  ;;  %v3197_v0 = vpop.permute.xlu0 %3196 }
0x1286   :  { %6500 = vmatprep.subr.msk.mxu1 %vm472_vm3, %v3000_v57 }
0x1287   :  { %v2996_v1 = vpop.permute.xlu1 %2995 }
0x1289   :  { %6501 = vmatpush3.xpose.msk.msra.mxu1 %vm472_vm3, %v3000_v57  ;;  %v8205_v3 = vpop.permute.xlu0 %3352 }
0x128a   :  { %6502 = vmatprep.subr.msk.mxu1 %vm472_vm3, %v2998_v55 }
0x128b   :  { %v3203_v4 = vpop.permute.xlu1 %3202 }
0x128c   :  { %6515 = vmatprep.subr.mxu0 %v3203_v4 }
0x128d   :  { %6503 = vmatpush3.xpose.msk.msra.mxu1 %vm472_vm3, %v2998_v55  ;;  %6516 = vmatpush3.msra.mxu0 %v3203_v4  ;;  %v3201_v5 = vpop.permute.xlu0 %3200 }
0x128e   :  { %6504 = vmatprep.subr.msk.mxu1 %vm472_vm3, %v2996_v1  ;;  %6517 = vmatprep.subr.mxu0 %v3201_v5 }
0x128f   :  { %v3199_v41 = vpop.permute.xlu1 %3198  ;;  %6518 = vmatpush3.msra.mxu0 %v3201_v5 }
0x1290   :  { %6519 = vmatprep.subr.mxu0 %v3199_v41 }
0x1291   :  { %6505 = vmatpush3.xpose.msk.msra.mxu1 %vm472_vm3, %v2996_v1  ;;  %6520 = vmatpush3.msra.mxu0 %v3199_v41 }
0x1292   :  { %6521 = vmatprep.subr.mxu0 %v3197_v0 }
0x1293   :  { %v3195_v7 = vpop.permute.xlu1 %3194  ;;  %6522 = vmatpush3.msra.mxu0 %v3197_v0 }
0x1294   :  { %6507 = vmatmul.mubr.msk.f32.vlgmr.msra.gmra.mxu1 %vm472_vm3, %v8169_v49  ;;  %6523 = vmatprep.subr.mxu0 %v3195_v7 }
0x1295   :  { %6509 = vmatprep.mubr.msk.f32.mxu1 %vm472_vm3, %v8173_v50  ;;  %6524 = vmatpush3.msra.mxu0 %v3195_v7 }
0x1297   :  { %v3193_v2 = vpop.permute.xlu1 %3192 }
0x1298   :  { %6510 = vmatmul.mubr.msk.f32.gmra.mxu1 %vm472_vm3, %v8165_v29  ;;  %6525 = vmatprep.subr.mxu0 %v3193_v2 }
0x1299   :  { %6512 = vmatprep.mubr.msk.f32.mxu1 %vm472_vm3, %v8161_v34  ;;  %6526 = vmatpush3.msra.mxu0 %v3193_v2 }
0x129a   :  { %6536 = vmatprep.subr.msk.mxu0 %vm472_vm3, %v8205_v3 }
0x129b   :  { %v8251_v52 = vpop.permute.xlu1 %3350 }
0x129c   :  { %6513 = vmatmul.mubr.msk.f32.gmra.mxu1 %vm472_vm3, %v8159_v37 }
0x1354   :  { %v6508_v31 = vpop.f32.mrf.mxu1 }
0x1355   :  { %v3103_v6 = vadd.f32 %v6508_v31, %v5654_v42 }
0x1356   :  { %v3097_v13 = vpop.f32.mrf.mxu1 }
0x1357   :  { %v3098_v44 = vadd.f32 %v5653_v8, %v3097_v13  ;;  %v3129_v46 = vsel %vm95_vm0, %v3103_v6, -inf }
0x1358   :  { %3130 = vmax.xlane.f32.xlu1 %v3129_v46  ;;  %v6511_v40 = vpop.f32.mrf.mxu1 }
0x1359   :  { %v3113_v9 = vadd.f32 %v6511_v40, %v5656_v43  ;;  %v3126_v16 = vsel %vm95_vm0, %v3098_v44, -inf }
0x135a   :  { %v3107_v17 = vpop.f32.mrf.mxu1  ;;  %3127 = vmax.xlane.f32.xlu0 %v3126_v16 }
0x135b   :  { %v3108_v19 = vadd.f32 %v5655_v62, %v3107_v17  ;;  %v3135_v20 = vsel %vm95_vm0, %v3113_v9, -inf }
0x135c   :  { %v6514_v38 = vpop.f32.mrf.mxu1 }
0x135d   :  { %v3123_v45 = vadd.f32 %v6514_v38, %v5658_v21  ;;  %v3132_v24 = vsel %vm95_vm0, %v3108_v19, -inf }
0x135e   :  { %v3117_v18 = vpop.f32.mrf.mxu1  ;;  %3136 = vmax.xlane.f32.xlu0 %v3135_v20 }
0x135f   :  { %v3118_v22 = vadd.f32 %v5657_v54, %v3117_v18  ;;  %v3141_v56 = vsel %vm95_vm0, %v3123_v45, -inf }
0x1361   :  { %v3138_v23 = vsel %vm95_vm0, %v3118_v22, -inf }
0x1362   :  { %3139 = vmax.xlane.f32.xlu1 %v3138_v23  ;;  %3133 = vmax.xlane.f32.xlu0 %v3132_v24 }
0x1366   :  { %3142 = vmax.xlane.f32.xlu0 %v3141_v56 }
0x1373   :  { %3346 = vrot.lane.b32.xlu1 %v8173_v50, %s8974_s6 }
0x137c   :  { %3348 = vrot.lane.b32.xlu0 %v8165_v29, %s8974_s6 }
0x13e1   :  { %v3131_v25 = vpop.xlane.xlu1 %3130 }
0x13e2   :  { %v3145_v26 = vsub.f32 %v3103_v6, %v3131_v25 }
0x13e3   :  { %v3128_v61 = vpop.xlane.xlu0 %3127 }
0x13e4   :  { %v3152_v11 = vmul.f32 1.442695, %v3145_v26  ;;  %v3144_v27 = vsub.f32 %v3098_v44, %v3128_v61 }
0x13e6   :  { %6948 = vpow2.f32 %v3152_v11  ;;  %v3150_v28 = vmul.f32 1.442695, %v3144_v27 }
0x13e7   :  { %v3137_v36 = vpop.xlane.xlu0 %3136 }
0x13e8   :  { %6950 = vpow2.f32 %v3150_v28  ;;  %v3147_v39 = vsub.f32 %v3113_v9, %v3137_v36 }
0x13ea   :  { %v3156_v55 = vmul.f32 1.442695, %v3147_v39 }
0x13eb   :  { %v3134_v32 = vpop.xlane.xlu0 %3133  ;;  %v3140_v47 = vpop.xlane.xlu1 %3139 }
0x13ec   :  { %v3146_v53 = vsub.f32 %v3108_v19, %v3134_v32  ;;  %v3148_v0 = vsub.f32 %v3118_v22, %v3140_v47  ;;  %6952 = vpow2.f32 %v3156_v55  ;;  %v5677_v55 = vld [vmem:[%s8973_s30 + $0xf0] sm:$0xff] }
0x13ee   :  { %v3154_v1 = vmul.f32 1.442695, %v3146_v53  ;;  %v3158_v5 = vmul.f32 1.442695, %v3148_v0  ;;  %v5678_v53 = vld [vmem:[%s8973_s30 + $0xf8] sm:$0xff] }
0x13ef   :  { %v3143_v48 = vpop.xlane.xlu0 %3142  ;;  %v3347_v44 = vpop.permute.xlu1 %3346 }
0x13f0   :  { %v3149_v57 = vsub.f32 %v3123_v45, %v3143_v48  ;;  %6954 = vpow2.f32 %v3154_v1  ;;  %v5680_v1 = vld [vmem:[%s8973_s30 + $0x108] sm:$0xff] }
0x13f2   :  { %v3160_v4 = vmul.f32 1.442695, %v3149_v57 }
0x13f3   :  { %v6949_v59 = vpop.eup %6948  ;;  %v3349_v43 = vpop.permute.xlu0 %3348 }
0x13f4   :  { %v3165_v58 = vsel %vm95_vm0, %v6949_v59, 0.0  ;;  %6956 = vpow2.f32 %v3160_v4 }
0x13f5   :  { %v6951_v30 = vpop.eup %6950  ;;  %3166 = vadd.xlane.f32.xlu0 %v3165_v58  ;;  %6958 = vpow2.f32 %v3158_v5 }
0x13f6   :  { %v3162_v35 = vsel %vm95_vm0, %v6951_v30, 0.0 }
0x13f7   :  { %3163 = vadd.xlane.f32.xlu1 %v3162_v35 }
0x13f9   :  { %v6953_v41 = vpop.eup %6952 }
0x13fa   :  { %v3171_v2 = vsel %vm95_vm0, %v6953_v41, 0.0 }
0x13fd   :  { %v6955_v7 = vpop.eup %6954 }
0x13fe   :  { %v3168_v31 = vsel %vm95_vm0, %v6955_v7, 0.0 }
0x1401   :  { %v6957_v42 = vpop.eup %6956 }
0x1402   :  { %v6959_v8 = vpop.eup %6958  ;;  %v3177_v6 = vsel %vm95_vm0, %v6957_v42, 0.0 }
0x1403   :  { %v3174_v13 = vsel %vm95_vm0, %v6959_v8, 0.0 }
0x1408   :  { %3342 = vrot.lane.b32.xlu1 %v8155_v33, %s8974_s6 }
0x140b   :  { %3344 = vrot.lane.b32.xlu0 %v8169_v49, %s8974_s6  ;;  %s8976_s6 = smov 88  }
0x142a   :  { %3172 = vadd.xlane.f32.xlu0 %v3171_v2 }
0x142c   :  { %3169 = vadd.xlane.f32.xlu1 %v3168_v31  ;;  %v5679_v31 = vld [vmem:[%s8973_s30 + $0x100] sm:$0xff] }
0x142e   :  { %3178 = vadd.xlane.f32.xlu0 %v3177_v6  ;;  %v5681_v6 = vld [vmem:[%s8973_s30 + $0x110] sm:$0xff] }
0x1430   :  { %3175 = vadd.xlane.f32.xlu1 %v3174_v13 }
0x1441   :  { %3332 = vrot.lane.b32.xlu1 %v8169_v49, %s8975_s1 }
0x1444   :  { %3330 = vrot.lane.b32.xlu0 %v8155_v33, %s8975_s1 }
0x1445   :  { %3336 = vrot.lane.b32.xlu1 %v8165_v29, %s8975_s1 }
0x1448   :  { %3334 = vrot.lane.b32.xlu0 %v8173_v50, %s8975_s1 }
0x1449   :  { %3340 = vrot.lane.b32.xlu1 %v8159_v37, %s8975_s1 }
0x144c   :  { %3338 = vrot.lane.b32.xlu0 %v8161_v34, %s8975_s1 }
0x147e   :  { %v3167_v46 = vpop.xlane.xlu0 %3166 }
0x147f   :  { %6960 = vrcp.f32 %v3167_v46 }
0x1480   :  { %v3164_v40 = vpop.xlane.xlu1 %3163 }
0x1481   :  { %6962 = vrcp.f32 %v3164_v40 }
0x1482   :  { %v3345_v38 = vpop.permute.xlu0 %3344 }
0x1484   :  { %v3343_v54 = vpop.permute.xlu1 %3342 }
0x148c   :  { %v6961_v9 = vpop.eup %6960 }
0x148d   :  { %v3183_v62 = vmul.f32 %v6961_v9, %v6949_v59  ;;  %v5649_v59 = vld [vmem:[%s8914_s9 + $0x20] sm:$0xff] }
0x148e   :  { %v6963_v16 = vpop.eup %6962 }
0x148f   :  { %v3181_v17 = vmul.f32 %v6963_v16, %v6951_v30 }
0x1491   :  { %6527 = vmatprep.mubr.msk.f32.mxu0 %vm95_vm0, %v3181_v17 }
0x1492   :  { %6528 = vmatmul.mubr.msk.f32.vlgmr.msra.gmra.mxu0 %vm95_vm0, %v3183_v62 }
0x1493   :  { %6537 = vmatpush3.xpose.msk.msra.mxu0 %vm472_vm3, %v8205_v3 }
0x1494   :  { %6538 = vmatprep.subr.msk.mxu0 %vm472_vm3, %v8251_v52 }
0x1497   :  { %6539 = vmatpush3.xpose.msk.msra.mxu0 %vm472_vm3, %v8251_v52 }
0x1498   :  { %6540 = vmatprep.subr.msk.mxu0 %vm472_vm3, %v3349_v43 }
0x149b   :  { %6541 = vmatpush3.xpose.msk.msra.mxu0 %vm472_vm3, %v3349_v43 }
0x149c   :  { %6542 = vmatprep.subr.msk.mxu0 %vm472_vm3, %v3347_v44 }
0x149f   :  { %6543 = vmatpush3.xpose.msk.msra.mxu0 %vm472_vm3, %v3347_v44  ;;  %v5682_v44 = vld [vmem:[%s8973_s30 + $0x118] sm:$0xff] }
0x14a0   :  { %6544 = vmatprep.subr.msk.mxu0 %vm472_vm3, %v3345_v38 }
0x14a3   :  { %6545 = vmatpush3.xpose.msk.msra.mxu0 %vm472_vm3, %v3345_v38 }
0x14a4   :  { %6546 = vmatprep.subr.msk.mxu0 %vm472_vm3, %v3343_v54 }
0x14a7   :  { %6547 = vmatpush3.xpose.msk.msra.mxu0 %vm472_vm3, %v3343_v54 }
0x14a8   :  { %6589 = vmatprep.subr.mxu0 %v5649_v59 }
0x14b3   :  { %v3173_v3 = vpop.xlane.xlu0 %3172 }
0x14b4   :  { %6964 = vrcp.f32 %v3173_v3 }
0x14b5   :  { %v3170_v19 = vpop.xlane.xlu1 %3169 }
0x14b6   :  { %6966 = vrcp.f32 %v3170_v19 }
0x14b7   :  { %v3179_v20 = vpop.xlane.xlu0 %3178 }
0x14b8   :  { %6968 = vrcp.f32 %v3179_v20 }
0x14b9   :  { %v3176_v21 = vpop.xlane.xlu1 %3175 }
0x14ba   :  { %6970 = vrcp.f32 %v3176_v21 }
0x14bb   :  { %v3331_v52 = vpop.permute.xlu0 %3330 }
0x14bd   :  { %v3333_v61 = vpop.permute.xlu1 %3332 }
0x14bf   :  { %v3335_v11 = vpop.permute.xlu0 %3334 }
0x14c1   :  { %v6965_v18 = vpop.eup %6964  ;;  %v3337_v27 = vpop.permute.xlu1 %3336 }
0x14c2   :  { %v3187_v23 = vmul.f32 %v6965_v18, %v6953_v41 }
0x14c3   :  { %v6967_v22 = vpop.eup %6966  ;;  %v3339_v28 = vpop.permute.xlu0 %3338 }
0x14c4   :  { %v3185_v45 = vmul.f32 %v6967_v22, %v6955_v7 }
0x14c5   :  { %v6969_v24 = vpop.eup %6968  ;;  %v3341_v58 = vpop.permute.xlu1 %3340 }
0x14c6   :  { %6530 = vmatprep.mubr.msk.f32.mxu0 %vm95_vm0, %v3185_v45  ;;  %v3191_v26 = vmul.f32 %v6969_v24, %v6957_v42 }
0x14c7   :  { %v6971_v56 = vpop.eup %6970  ;;  %6531 = vmatmul.mubr.msk.f32.gmra.mxu0 %vm95_vm0, %v3187_v23 }
0x14c8   :  { %v3189_v25 = vmul.f32 %v6971_v56, %v6959_v8 }
0x14ca   :  { %6533 = vmatprep.mubr.msk.f32.mxu0 %vm95_vm0, %v3189_v25 }
0x14cb   :  { %6534 = vmatmul.mubr.msk.f32.gmra.mxu0 %vm95_vm0, %v3191_v26 }
0x14cc   :  { %6548 = vmatprep.mubr.msk.f32.mxu0 %vm472_vm3, %v3331_v52 }
0x14cf   :  { %6549 = vmatmul.mubr.msk.f32.vlgmr.msra.gmra.mxu0 %vm472_vm3, %v3333_v61 }
0x14d0   :  { %6551 = vmatprep.mubr.msk.f32.mxu0 %vm472_vm3, %v3335_v11  ;;  %6590 = vmatpush3.msra.mxu0 %v5649_v59 }
0x14d3   :  { %6552 = vmatmul.mubr.msk.f32.gmra.mxu0 %vm472_vm3, %v3337_v27 }
0x14d4   :  { %6554 = vmatprep.mubr.msk.f32.mxu0 %vm472_vm3, %v3339_v28 }
0x14d7   :  { %6555 = vmatmul.mubr.msk.f32.gmra.mxu0 %vm472_vm3, %v3341_v58 }
0x1552   :  { %v6529_v30 = vpop.f32.mrf.mxu0 }
0x1554   :  { %v3294_v35 = vpop.f32.mrf.mxu0 }
0x1555   :  { %6591 = vmatprep.mubr.msk.f32.mxu0 %vm472_vm3, %v3294_v35 }
0x1556   :  { %6592 = vmatmul.mubr.msk.f32.vlgmr.msra.gmra.mxu0 %vm472_vm3, %v6529_v30 }
0x1587   :  { %v6532_v36 = vpop.f32.mrf.mxu0 }
0x1589   :  { %v3304_v32 = vpop.f32.mrf.mxu0 }
0x158a   :  { %6594 = vmatprep.mubr.msk.f32.mxu0 %vm472_vm3, %v3304_v32 }
0x158b   :  { %v6535_v39 = vpop.f32.mrf.mxu0  ;;  %6595 = vmatmul.mubr.msk.f32.gmra.mxu0 %vm472_vm3, %v6532_v36 }
0x158d   :  { %v3314_v48 = vpop.f32.mrf.mxu0 }
0x158e   :  { %6597 = vmatprep.mubr.msk.f32.mxu0 %vm472_vm3, %v3314_v48 }
0x158f   :  { %v6550_v47 = vpop.f32.mrf.mxu0  ;;  %6598 = vmatmul.mubr.msk.f32.gmra.mxu0 %vm472_vm3, %v6535_v39 }
0x1590   :  { %v3450_v57 = vadd.f32 %v6550_v47, %v5678_v53 }
0x1591   :  { %v3444_v0 = vpop.f32.mrf.mxu0 }
0x1592   :  { %v3445_v4 = vadd.f32 %v5677_v55, %v3444_v0  ;;  %v3476_v5 = vsel %vm95_vm0, %v3450_v57, -inf }
0x1593   :  { %3477 = vmax.xlane.f32.xlu1 %v3476_v5  ;;  %v6553_v41 = vpop.f32.mrf.mxu0 }
0x1594   :  { %v3460_v7 = vadd.f32 %v6553_v41, %v5680_v1  ;;  %v3473_v2 = vsel %vm95_vm0, %v3445_v4, -inf }
0x1595   :  { %3474 = vmax.xlane.f32.xlu0 %v3473_v2  ;;  %v3454_v42 = vpop.f32.mrf.mxu0 }
0x1596   :  { %v3455_v13 = vadd.f32 %v5679_v31, %v3454_v42  ;;  %v3482_v43 = vsel %vm95_vm0, %v3460_v7, -inf }
0x1597   :  { %v6556_v8 = vpop.f32.mrf.mxu0 }
0x1598   :  { %v3470_v9 = vadd.f32 %v6556_v8, %v5682_v44  ;;  %v3479_v16 = vsel %vm95_vm0, %v3455_v13, -inf }
0x1599   :  { %3483 = vmax.xlane.f32.xlu0 %v3482_v43  ;;  %v3464_v46 = vpop.f32.mrf.mxu0 }
0x159a   :  { %v3465_v40 = vadd.f32 %v5681_v6, %v3464_v46  ;;  %v3488_v62 = vsel %vm95_vm0, %v3470_v9, -inf }
0x159c   :  { %v3485_v17 = vsel %vm95_vm0, %v3465_v40, -inf }
0x159d   :  { %3480 = vmax.xlane.f32.xlu0 %v3479_v16  ;;  %3486 = vmax.xlane.f32.xlu1 %v3485_v17 }
0x15a1   :  { %3489 = vmax.xlane.f32.xlu0 %v3488_v62 }
0x161c   :  { %v3478_v38 = vpop.xlane.xlu1 %3477 }
0x161d   :  { %v3492_v54 = vsub.f32 %v3450_v57, %v3478_v38 }
0x161e   :  { %v3475_v3 = vpop.xlane.xlu0 %3474 }
0x161f   :  { %v3499_v19 = vmul.f32 1.442695, %v3492_v54  ;;  %v3491_v20 = vsub.f32 %v3445_v4, %v3475_v3 }
0x1621   :  { %6972 = vpow2.f32 %v3499_v19  ;;  %v3497_v21 = vmul.f32 1.442695, %v3491_v20 }
0x1622   :  { %v3484_v18 = vpop.xlane.xlu0 %3483 }
0x1623   :  { %6974 = vpow2.f32 %v3497_v21  ;;  %v3494_v22 = vsub.f32 %v3460_v7, %v3484_v18 }
0x1625   :  { %v3503_v45 = vmul.f32 1.442695, %v3494_v22 }
0x1626   :  { %v3481_v23 = vpop.xlane.xlu0 %3480  ;;  %v3487_v35 = vpop.xlane.xlu1 %3486 }
0x1627   :  { %6976 = vpow2.f32 %v3503_v45  ;;  %v3493_v24 = vsub.f32 %v3455_v13, %v3481_v23  ;;  %v3495_v32 = vsub.f32 %v3465_v40, %v3487_v35  ;;  %v5650_v40 = vld [vmem:[%s8914_s9 + $0x28] sm:$0xff] }
0x1629   :  { %v3501_v56 = vmul.f32 1.442695, %v3493_v24  ;;  %v3505_v39 = vmul.f32 1.442695, %v3495_v32 }
0x162a   :  { %v3490_v58 = vpop.xlane.xlu0 %3489 }
0x162b   :  { %6978 = vpow2.f32 %v3501_v56  ;;  %v3496_v30 = vsub.f32 %v3470_v9, %v3490_v58 }
0x162d   :  { %v3507_v36 = vmul.f32 1.442695, %v3496_v30 }
0x162e   :  { %v8334_v52 = vpop.eup %6972 }
0x162f   :  { %v3512_v25 = vsel %vm95_vm0, %v8334_v52, 0.0  ;;  %6980 = vpow2.f32 %v3507_v36 }
0x1630   :  { %v8338_v26 = vpop.eup %6974  ;;  %3513 = vadd.xlane.f32.xlu0 %v3512_v25  ;;  %6982 = vpow2.f32 %v3505_v39 }
0x1631   :  { %v3509_v61 = vsel %vm95_vm0, %v8338_v26, 0.0 }
0x1632   :  { %3510 = vadd.xlane.f32.xlu1 %v3509_v61 }
0x1634   :  { %v8342_v11 = vpop.eup %6976 }
0x1635   :  { %v3518_v27 = vsel %vm95_vm0, %v8342_v11, 0.0 }
0x1636   :  { %3519 = vadd.xlane.f32.xlu0 %v3518_v27 }
0x1638   :  { %v8346_v28 = vpop.eup %6978 }
0x1639   :  { %v3515_v59 = vsel %vm95_vm0, %v8346_v28, 0.0 }
0x163a   :  { %3516 = vadd.xlane.f32.xlu1 %v3515_v59 }
0x163c   :  { %v8360_v48 = vpop.eup %6980 }
0x163d   :  { %v3524_v53 = vsel %vm95_vm0, %v8360_v48, 0.0  ;;  %v8364_v47 = vpop.eup %6982 }
0x163e   :  { %v3521_v55 = vsel %vm95_vm0, %v8364_v47, 0.0 }
0x164b   :  { %3549 = vrot.lane.b32.xlu1 %v8159_v37, %s8976_s6 }
0x164c   :  { %3547 = vrot.lane.b32.xlu0 %v8161_v34, %s8976_s6 }
0x1650   :  { %3545 = vrot.lane.b32.xlu0 %v8165_v29, %s8976_s6 }
0x1654   :  { %3543 = vrot.lane.b32.xlu0 %v8173_v50, %s8976_s6 }
0x1658   :  { %3541 = vrot.lane.b32.xlu0 %v8169_v49, %s8976_s6 }
0x166f   :  { %3525 = vadd.xlane.f32.xlu1 %v3524_v53 }
0x1677   :  { %3522 = vadd.xlane.f32.xlu0 %v3521_v55 }
0x1680   :  { %3919 = vrot.lane.b32.xlu1 %v8173_v50, %s8977_s2 }
0x1684   :  { %3907 = vrot.lane.b32.xlu1 %v8173_v50, %s8978_s29 }
0x1688   :  { %3911 = vrot.lane.b32.xlu1 %v8161_v34, %s8978_s29 }
0x168c   :  { %4391 = vrot.lane.b32.xlu1 %v8159_v37, %s8979_s0 }
0x168d   :  { %3539 = vrot.lane.b32.xlu0 %v8155_v33, %s8976_s6 }
0x1690   :  { %4387 = vrot.lane.b32.xlu1 %v8165_v29, %s8979_s0 }
0x1691   :  { %3925 = vrot.lane.b32.xlu0 %v8159_v37, %s8977_s2 }
0x1694   :  { %4383 = vrot.lane.b32.xlu1 %v8169_v49, %s8979_s0 }
0x1695   :  { %3923 = vrot.lane.b32.xlu0 %v8161_v34, %s8977_s2 }
0x1698   :  { %4369 = vrot.lane.b32.xlu1 %v8155_v33, %s8980_s3 }
0x1699   :  { %3921 = vrot.lane.b32.xlu0 %v8165_v29, %s8977_s2 }
0x169c   :  { %4373 = vrot.lane.b32.xlu1 %v8173_v50, %s8980_s3 }
0x169d   :  { %3917 = vrot.lane.b32.xlu0 %v8169_v49, %s8977_s2 }
0x16a0   :  { %4377 = vrot.lane.b32.xlu1 %v8161_v34, %s8980_s3 }
0x16a1   :  { %3915 = vrot.lane.b32.xlu0 %v8155_v33, %s8977_s2 }
0x16a5   :  { %3903 = vrot.lane.b32.xlu0 %v8155_v33, %s8978_s29 }
0x16a9   :  { %3905 = vrot.lane.b32.xlu0 %v8169_v49, %s8978_s29 }
0x16ad   :  { %3909 = vrot.lane.b32.xlu0 %v8165_v29, %s8978_s29 }
0x16b1   :  { %3913 = vrot.lane.b32.xlu0 %v8159_v37, %s8978_s29 }
0x16b5   :  { %4389 = vrot.lane.b32.xlu0 %v8161_v34, %s8979_s0 }
0x16b9   :  { %4385 = vrot.lane.b32.xlu0 %v8173_v50, %s8979_s0  ;;  %v3514_v57 = vpop.xlane.xlu0 %3513 }
0x16bb   :  { %v3511_v0 = vpop.xlane.xlu1 %3510 }
0x16bc   :  { %6984 = vrcp.f32 %v3511_v0 }
0x16bd   :  { %4381 = vrot.lane.b32.xlu0 %v8155_v33, %s8979_s0  ;;  %6986 = vrcp.f32 %v3514_v57 }
0x16bf   :  { %v3520_v1 = vpop.xlane.xlu0 %3519 }
0x16c1   :  { %4371 = vrot.lane.b32.xlu0 %v8169_v49, %s8980_s3 }
0x16c3   :  { %v3548_v4 = vpop.permute.xlu0 %3547  ;;  %v3517_v5 = vpop.xlane.xlu1 %3516 }
0x16c4   :  { %6988 = vrcp.f32 %v3517_v5 }
0x16c5   :  { %4375 = vrot.lane.b32.xlu0 %v8165_v29, %s8980_s3  ;;  %6990 = vrcp.f32 %v3520_v1 }
0x16c7   :  { %v3546_v41 = vpop.permute.xlu0 %3545  ;;  %v3550_v7 = vpop.permute.xlu1 %3549 }
0x16c8   :  { %6557 = vmatprep.subr.mxu1 %v3550_v7 }
0x16c9   :  { %v6985_v2 = vpop.eup %6984  ;;  %4379 = vrot.lane.b32.xlu0 %v8159_v37, %s8980_s3  ;;  %6558 = vmatpush3.msra.mxu1 %v3550_v7 }
0x16ca   :  { %v3528_v42 = vmul.f32 %v6985_v2, %v8338_v26  ;;  %6559 = vmatprep.subr.mxu1 %v3548_v4  ;;  %v6987_v43 = vpop.eup %6986 }
0x16cb   :  { %v3544_v31 = vpop.permute.xlu0 %3543  ;;  %6560 = vmatpush3.msra.mxu1 %v3548_v4  ;;  %v3530_v9 = vmul.f32 %v6987_v43, %v8334_v52 }
0x16cc   :  { %6569 = vmatprep.mubr.msk.f32.mxu1 %vm95_vm0, %v3528_v42  ;;  %6561 = vmatprep.subr.mxu1 %v3546_v41 }
0x16cd   :  { %6562 = vmatpush3.msra.mxu1 %v3546_v41 }
0x16ce   :  { %6563 = vmatprep.subr.mxu1 %v3544_v31 }
0x16cf   :  { %v3542_v8 = vpop.permute.xlu0 %3541  ;;  %6564 = vmatpush3.msra.mxu1 %v3544_v31 }
0x16d0   :  { %6565 = vmatprep.subr.mxu1 %v3542_v8 }
0x16d1   :  { %6566 = vmatpush3.msra.mxu1 %v3542_v8  ;;  %v6989_v44 = vpop.eup %6988  ;;  %v5714_v8 = vld [vmem:[%s8973_s30 + $0x128] sm:$0xff] }
0x16d2   :  { %v6991_v16 = vpop.eup %6990  ;;  %v3532_v17 = vmul.f32 %v6989_v44, %v8346_v28 }
0x16d3   :  { %v3534_v38 = vmul.f32 %v6991_v16, %v8342_v11 }
0x16f8   :  { %v3526_v6 = vpop.xlane.xlu1 %3525 }
0x16f9   :  { %6992 = vrcp.f32 %v3526_v6 }
0x16fc   :  { %v3920_v23 = vpop.permute.xlu1 %3919 }
0x1700   :  { %v3523_v13 = vpop.xlane.xlu0 %3522  ;;  %v3908_v26 = vpop.permute.xlu1 %3907 }
0x1701   :  { %6994 = vrcp.f32 %v3523_v13  ;;  %v5713_v13 = vld [vmem:[%s8973_s30 + $0x120] sm:$0xff] }
0x1704   :  { %v3540_v46 = vpop.permute.xlu0 %3539  ;;  %v3912_v28 = vpop.permute.xlu1 %3911 }
0x1705   :  { %6567 = vmatprep.subr.mxu1 %v3540_v46 }
0x1706   :  { %6568 = vmatpush3.msra.mxu1 %v3540_v46  ;;  %v6993_v54 = vpop.eup %6992  ;;  %v5716_v46 = vld [vmem:[%s8973_s30 + $0x138] sm:$0xff] }
0x1707   :  { %6570 = vmatmul.mubr.msk.f32.vlgmr.msra.gmra.mxu1 %vm95_vm0, %v3530_v9  ;;  %6578 = vmatprep.subr.mxu1 %v5650_v40  ;;  %v3538_v20 = vmul.f32 %v6993_v54, %v8360_v48 }
0x1708   :  { %6572 = vmatprep.mubr.msk.f32.mxu1 %vm95_vm0, %v3532_v17  ;;  %6579 = vmatpush3.msra.mxu1 %v5650_v40  ;;  %v3926_v62 = vpop.permute.xlu0 %3925  ;;  %v4392_v30 = vpop.permute.xlu1 %4391  ;;  %v5715_v17 = vld [vmem:[%s8973_s30 + $0x130] sm:$0xff] }
0x1709   :  { %6600 = vmatprep.subr.msk.mxu1 %vm472_vm3, %v3926_v62 }
0x170b   :  { %6573 = vmatmul.mubr.msk.f32.gmra.mxu1 %vm95_vm0, %v3534_v38 }
0x170c   :  { %v3924_v21 = vpop.permute.xlu0 %3923  ;;  %v4388_v36 = vpop.permute.xlu1 %4387 }
0x170e   :  { %v6995_v3 = vpop.eup %6994 }
0x170f   :  { %v3536_v19 = vmul.f32 %v6995_v3, %v8364_v47  ;;  %v5718_v3 = vld [vmem:[%s8973_s30 + $0x148] sm:$0xff] }
0x1710   :  { %v3922_v18 = vpop.permute.xlu0 %3921  ;;  %v4384_v39 = vpop.permute.xlu1 %4383 }
0x1711   :  { %6575 = vmatprep.mubr.msk.f32.mxu1 %vm95_vm0, %v3536_v19 }
0x1712   :  { %6576 = vmatmul.mubr.msk.f32.gmra.mxu1 %vm95_vm0, %v3538_v20 }
0x1714   :  { %v3918_v22 = vpop.permute.xlu0 %3917  ;;  %v4370_v53 = vpop.permute.xlu1 %4369 }
0x1718   :  { %v3916_v45 = vpop.permute.xlu0 %3915  ;;  %v4374_v57 = vpop.permute.xlu1 %4373 }
0x171c   :  { %v3904_v25 = vpop.permute.xlu0 %3903  ;;  %v4378_v1 = vpop.permute.xlu1 %4377 }
0x1720   :  { %v3906_v11 = vpop.permute.xlu0 %3905 }
0x1724   :  { %v3910_v58 = vpop.permute.xlu0 %3909 }
0x1728   :  { %v3914_v35 = vpop.permute.xlu0 %3913 }
0x172c   :  { %v4390_v32 = vpop.permute.xlu0 %4389 }
0x1730   :  { %v4386_v48 = vpop.permute.xlu0 %4385 }
0x1734   :  { %v4382_v47 = vpop.permute.xlu0 %4381 }
0x1738   :  { %v4372_v55 = vpop.permute.xlu0 %4371 }
0x173c   :  { %v4376_v0 = vpop.permute.xlu0 %4375 }
0x1740   :  { %v4380_v4 = vpop.permute.xlu0 %4379 }
0x17c7   :  { %v6571_v24 = vpop.f32.mrf.mxu1 }
0x17c9   :  { %v3641_v56 = vpop.f32.mrf.mxu1 }
0x17ca   :  { %6580 = vmatprep.mubr.msk.f32.mxu1 %vm472_vm3, %v3641_v56 }
0x17cb   :  { %v6574_v52 = vpop.f32.mrf.mxu1  ;;  %6581 = vmatmul.mubr.msk.f32.vlgmr.msra.gmra.mxu1 %vm472_vm3, %v6571_v24 }
0x17cc   :  { %6601 = vmatpush3.xpose.msk.msra.mxu1 %vm472_vm3, %v3926_v62 }
0x17cd   :  { %6602 = vmatprep.subr.msk.mxu1 %vm472_vm3, %v3924_v21  ;;  %v3651_v61 = vpop.f32.mrf.mxu1 }
0x17ce   :  { %6583 = vmatprep.mubr.msk.f32.mxu1 %vm472_vm3, %v3651_v61 }
0x17cf   :  { %6584 = vmatmul.mubr.msk.f32.gmra.mxu1 %vm472_vm3, %v6574_v52 }
0x17d0   :  { %6603 = vmatpush3.xpose.msk.msra.mxu1 %vm472_vm3, %v3924_v21  ;;  %v5717_v21 = vld [vmem:[%s8973_s30 + $0x140] sm:$0xff] }
0x17d1   :  { %6604 = vmatprep.subr.msk.mxu1 %vm472_vm3, %v3922_v18 }
0x17d2   :  { %v6577_v27 = vpop.f32.mrf.mxu1 }
0x17d4   :  { %6605 = vmatpush3.xpose.msk.msra.mxu1 %vm472_vm3, %v3922_v18  ;;  %v3661_v59 = vpop.f32.mrf.mxu1 }
0x17d5   :  { %6606 = vmatprep.subr.msk.mxu1 %vm472_vm3, %v3920_v23  ;;  %6586 = vmatprep.mubr.msk.f32.mxu1 %vm472_vm3, %v3661_v59 }
0x17d6   :  { %6587 = vmatmul.mubr.msk.f32.gmra.mxu1 %vm472_vm3, %v6577_v27 }
0x17d7   :  { %6612 = vmatprep.mubr.msk.f32.mxu1 %vm472_vm3, %v3904_v25 }
0x17d8   :  { %6607 = vmatpush3.xpose.msk.msra.mxu1 %vm472_vm3, %v3920_v23 }
0x17d9   :  { %6608 = vmatprep.subr.msk.mxu1 %vm472_vm3, %v3918_v22 }
0x17dc   :  { %6609 = vmatpush3.xpose.msk.msra.mxu1 %vm472_vm3, %v3918_v22 }
0x17dd   :  { %6610 = vmatprep.subr.msk.mxu1 %vm472_vm3, %v3916_v45 }
0x17e0   :  { %6611 = vmatpush3.xpose.msk.msra.mxu1 %vm472_vm3, %v3916_v45 }
0x17e1   :  { %6653 = vmatprep.subr.msk.mxu1 %vm472_vm3, %v4392_v30 }
0x17e3   :  { %6613 = vmatmul.mubr.msk.f32.vlgmr.msra.gmra.mxu1 %vm472_vm3, %v3906_v11 }
0x17e4   :  { %6615 = vmatprep.mubr.msk.f32.mxu1 %vm472_vm3, %v3908_v26  ;;  %6654 = vmatpush3.xpose.msk.msra.mxu1 %vm472_vm3, %v4392_v30 }
0x17e5   :  { %6655 = vmatprep.subr.msk.mxu1 %vm472_vm3, %v4390_v32 }
0x17e7   :  { %6616 = vmatmul.mubr.msk.f32.gmra.mxu1 %vm472_vm3, %v3910_v58 }
0x17e8   :  { %6618 = vmatprep.mubr.msk.f32.mxu1 %vm472_vm3, %v3912_v28  ;;  %6656 = vmatpush3.xpose.msk.msra.mxu1 %vm472_vm3, %v4390_v32 }
0x17e9   :  { %6657 = vmatprep.subr.msk.mxu1 %vm472_vm3, %v4388_v36 }
0x17eb   :  { %6619 = vmatmul.mubr.msk.f32.gmra.mxu1 %vm472_vm3, %v3914_v35 }
0x17ec   :  { %6658 = vmatpush3.xpose.msk.msra.mxu1 %vm472_vm3, %v4388_v36  ;;  %6665 = vmatprep.mubr.msk.f32.mxu1 %vm472_vm3, %v4370_v53 }
0x17ed   :  { %6659 = vmatprep.subr.msk.mxu1 %vm472_vm3, %v4386_v48 }
0x17f0   :  { %6660 = vmatpush3.xpose.msk.msra.mxu1 %vm472_vm3, %v4386_v48 }
0x17f1   :  { %6661 = vmatprep.subr.msk.mxu1 %vm472_vm3, %v4384_v39 }
0x17f4   :  { %6662 = vmatpush3.xpose.msk.msra.mxu1 %vm472_vm3, %v4384_v39 }
0x17f5   :  { %6663 = vmatprep.subr.msk.mxu1 %vm472_vm3, %v4382_v47 }
0x17f8   :  { %6664 = vmatpush3.xpose.msk.msra.mxu1 %vm472_vm3, %v4382_v47 }
0x17fb   :  { %6666 = vmatmul.mubr.msk.f32.vlgmr.msra.gmra.mxu1 %vm472_vm3, %v4372_v55 }
0x17fc   :  { %6668 = vmatprep.mubr.msk.f32.mxu1 %vm472_vm3, %v4374_v57 }
0x17ff   :  { %6669 = vmatmul.mubr.msk.f32.gmra.mxu1 %vm472_vm3, %v4376_v0 }
0x1800   :  { %6671 = vmatprep.mubr.msk.f32.mxu1 %vm472_vm3, %v4378_v1 }
0x1803   :  { %6672 = vmatmul.mubr.msk.f32.gmra.mxu1 %vm472_vm3, %v4380_v4 }
0x188b   :  { %v8475_v5 = vpop.f32.mrf.mxu1 }
0x188d   :  { %v8477_v41 = vpop.f32.mrf.mxu1 }
0x188f   :  { %v8479_v7 = vpop.f32.mrf.mxu1 }
0x1891   :  { %v8481_v2 = vpop.f32.mrf.mxu1 }
0x1896   :  { %v8483_v42 = vpop.f32.mrf.mxu1 }
0x1898   :  { %v8485_v31 = vpop.f32.mrf.mxu1 }
0x18a3   :  { %v6614_v6 = vpop.f32.mrf.mxu1 }
0x18a4   :  { %v4023_v43 = vadd.f32 %v6614_v6, %v5714_v8 }
0x18a5   :  { %v4017_v44 = vpop.f32.mrf.mxu1 }
0x18a6   :  { %v4018_v40 = vadd.f32 %v5713_v13, %v4017_v44  ;;  %v4049_v9 = vsel %vm95_vm0, %v4023_v43, -inf }
0x18a7   :  { %4050 = vmax.xlane.f32.xlu0 %v4049_v9  ;;  %v6617_v16 = vpop.f32.mrf.mxu1 }
0x18a8   :  { %v4033_v62 = vadd.f32 %v6617_v16, %v5716_v46  ;;  %v4046_v38 = vsel %vm95_vm0, %v4018_v40, -inf }
0x18a9   :  { %4047 = vmax.xlane.f32.xlu1 %v4046_v38  ;;  %v4027_v54 = vpop.f32.mrf.mxu1 }
0x18aa   :  { %v4028_v19 = vadd.f32 %v5715_v17, %v4027_v54  ;;  %v4055_v22 = vsel %vm95_vm0, %v4033_v62, -inf }
0x18ab   :  { %v6620_v20 = vpop.f32.mrf.mxu1 }
0x18ac   :  { %v4043_v18 = vadd.f32 %v6620_v20, %v5718_v3  ;;  %v4052_v45 = vsel %vm95_vm0, %v4028_v19, -inf }
0x18ad   :  { %4056 = vmax.xlane.f32.xlu1 %v4055_v22  ;;  %4053 = vmax.xlane.f32.xlu0 %v4052_v45  ;;  %v4037_v23 = vpop.f32.mrf.mxu1 }
0x18ae   :  { %v4038_v24 = vadd.f32 %v5717_v21, %v4037_v23  ;;  %v4061_v56 = vsel %vm95_vm0, %v4043_v18, -inf  ;;  %v5743_v21 = vld [vmem:[%s8973_s30 + $0x150] sm:$0xff] }
0x18b0   :  { %v4058_v52 = vsel %vm95_vm0, %v4038_v24, -inf }
0x18b1   :  { %4062 = vmax.xlane.f32.xlu1 %v4061_v56  ;;  %4059 = vmax.xlane.f32.xlu0 %v4058_v52  ;;  %v5745_v56 = vld [vmem:[%s8973_s30 + $0x160] sm:$0xff] }
0x18bb   :  { %v6667_v3 = vpop.f32.mrf.mxu1 }
0x18c2   :  { %4120 = vrot.lane.b32.xlu1 %v8161_v34, %s8981_s8 }
0x18c6   :  { %4118 = vrot.lane.b32.xlu1 %v8165_v29, %s8981_s8 }
0x18c7   :  { %4122 = vrot.lane.b32.xlu0 %v8159_v37, %s8981_s8 }
0x18cb   :  { %4116 = vrot.lane.b32.xlu0 %v8173_v50, %s8981_s8 }
0x1930   :  { %v4051_v25 = vpop.xlane.xlu0 %4050 }
0x1931   :  { %v4065_v26 = vsub.f32 %v4023_v43, %v4051_v25 }
0x1932   :  { %v4048_v61 = vpop.xlane.xlu1 %4047 }
0x1933   :  { %v4072_v11 = vmul.f32 1.442695, %v4065_v26  ;;  %v4064_v27 = vsub.f32 %v4018_v40, %v4048_v61 }
0x1935   :  { %6996 = vpow2.f32 %v4072_v11  ;;  %v4070_v28 = vmul.f32 1.442695, %v4064_v27  ;;  %v5748_v11 = vld [vmem:[%s8973_s30 + $0x178] sm:$0xff] }
0x1936   :  { %v4057_v59 = vpop.xlane.xlu1 %4056  ;;  %v4054_v58 = vpop.xlane.xlu0 %4053 }
0x1937   :  { %6998 = vpow2.f32 %v4070_v28  ;;  %v4067_v30 = vsub.f32 %v4033_v62, %v4057_v59  ;;  %v4066_v35 = vsub.f32 %v4028_v19, %v4054_v58  ;;  %v4483_v19 = vpop.f32.mrf.mxu1  ;;  %v5747_v59 = vld [vmem:[%s8973_s30 + $0x170] sm:$0xff] }
0x1938   :  { %v8553_v45 = vadd.f32 %v5743_v21, %v4483_v19 }
0x1939   :  { %v4076_v36 = vmul.f32 1.442695, %v4067_v30  ;;  %v4074_v32 = vmul.f32 1.442695, %v4066_v35  ;;  %v6670_v20 = vpop.f32.mrf.mxu1 }
0x193a   :  { %v4063_v39 = vpop.xlane.xlu1 %4062  ;;  %v4060_v48 = vpop.xlane.xlu0 %4059  ;;  %v4512_v26 = vsel %vm95_vm0, %v8553_v45, -inf }
0x193b   :  { %7000 = vpow2.f32 %v4076_v36  ;;  %v4069_v53 = vsub.f32 %v4043_v18, %v4063_v39  ;;  %v4068_v47 = vsub.f32 %v4038_v24, %v4060_v48  ;;  %v5744_v18 = vld [vmem:[%s8973_s30 + $0x158] sm:$0xff]  ;;  %v4493_v22 = vpop.f32.mrf.mxu1  ;;  %v5746_v24 = vld [vmem:[%s8973_s30 + $0x168] sm:$0xff]  ;;  %s8982_s30 = smov 40  }
0x193c   :  { %7002 = vpow2.f32 %v4074_v32  ;;  %v8555_v23 = vadd.f32 %v6667_v3, %v5744_v18  ;;  %v8563_v25 = vadd.f32 %v6670_v20, %v5746_v24  ;;  %v8567_v61 = vadd.f32 %v5745_v56, %v4493_v22 }
0x193d   :  { %v4080_v55 = vmul.f32 1.442695, %v4069_v53  ;;  %v4078_v57 = vmul.f32 1.442695, %v4068_v47  ;;  %v6673_v52 = vpop.f32.mrf.mxu1 }
0x193e   :  { %v4121_v0 = vpop.permute.xlu1 %4120  ;;  %v4123_v1 = vpop.permute.xlu0 %4122  ;;  %v4515_v27 = vsel %vm95_vm0, %v8555_v23, -inf  ;;  %v8577_v58 = vadd.f32 %v6673_v52, %v5748_v11  ;;  %v4521_v30 = vsel %vm95_vm0, %v8563_v25, -inf  ;;  %v4518_v36 = vsel %vm95_vm0, %v8567_v61, -inf }
0x193f   :  { %7004 = vpow2.f32 %v4080_v55  ;;  %6621 = vmatprep.subr.mxu0 %v4123_v1  ;;  %v4503_v28 = vpop.f32.mrf.mxu1 }
0x1940   :  { %7006 = vpow2.f32 %v4078_v57  ;;  %6622 = vmatpush3.msra.mxu0 %v4123_v1  ;;  %v8581_v35 = vadd.f32 %v5747_v59, %v4503_v28  ;;  %v4527_v32 = vsel %vm95_vm0, %v8577_v58, -inf }
0x1941   :  { %6623 = vmatprep.subr.mxu0 %v4121_v0 }
0x1942   :  { %v8519_v4 = vpop.eup %6996  ;;  %v4119_v8 = vpop.permute.xlu1 %4118  ;;  %6624 = vmatpush3.msra.mxu0 %v4121_v0  ;;  %v4524_v39 = vsel %vm95_vm0, %v8581_v35, -inf }
0x1943   :  { %6625 = vmatprep.subr.mxu0 %v4119_v8  ;;  %v4085_v6 = vsel %vm95_vm0, %v8519_v4, 0.0  ;;  %v4117_v43 = vpop.permute.xlu0 %4116 }
0x1944   :  { %v8523_v13 = vpop.eup %6998  ;;  %4086 = vadd.xlane.f32.xlu1 %v4085_v6  ;;  %6626 = vmatpush3.msra.mxu0 %v4119_v8 }
0x1945   :  { %6627 = vmatprep.subr.mxu0 %v4117_v43  ;;  %v4082_v44 = vsel %vm95_vm0, %v8523_v13, 0.0 }
0x1946   :  { %4083 = vadd.xlane.f32.xlu0 %v4082_v44  ;;  %6628 = vmatpush3.msra.mxu0 %v4117_v43 }
0x1948   :  { %v8527_v46 = vpop.eup %7000 }
0x1949   :  { %v8529_v40 = vpop.eup %7002  ;;  %v4091_v9 = vsel %vm95_vm0, %v8527_v46, 0.0 }
0x194a   :  { %4092 = vadd.xlane.f32.xlu1 %v4091_v9  ;;  %v4088_v16 = vsel %vm95_vm0, %v8529_v40, 0.0 }
0x194b   :  { %4089 = vadd.xlane.f32.xlu0 %v4088_v16 }
0x194c   :  { %v8535_v17 = vpop.eup %7004 }
0x194d   :  { %v8537_v62 = vpop.eup %7006  ;;  %v4097_v38 = vsel %vm95_vm0, %v8535_v17, 0.0 }
0x194e   :  { %4098 = vadd.xlane.f32.xlu1 %v4097_v38  ;;  %v4094_v54 = vsel %vm95_vm0, %v8537_v62, 0.0 }
0x194f   :  { %4095 = vadd.xlane.f32.xlu0 %v4094_v54 }
0x195f   :  { %4114 = vrot.lane.b32.xlu1 %v8169_v49, %s8981_s8 }
0x1965   :  { %4112 = vrot.lane.b32.xlu0 %v8155_v33, %s8981_s8 }
0x1983   :  { %4513 = vmax.xlane.f32.xlu1 %v4512_v26 }
0x1984   :  { %4516 = vmax.xlane.f32.xlu0 %v4515_v27 }
0x1987   :  { %4522 = vmax.xlane.f32.xlu1 %v4521_v30 }
0x1988   :  { %4519 = vmax.xlane.f32.xlu0 %v4518_v36 }
0x198b   :  { %4528 = vmax.xlane.f32.xlu1 %v4527_v32 }
0x198c   :  { %4525 = vmax.xlane.f32.xlu0 %v4524_v39 }
0x199c   :  { %4586 = vrot.lane.b32.xlu1 %v8161_v34, %s8982_s30 }
0x19a0   :  { %4584 = vrot.lane.b32.xlu1 %v8165_v29, %s8982_s30 }
0x19a2   :  { %4588 = vrot.lane.b32.xlu0 %v8159_v37, %s8982_s30 }
0x19a6   :  { %4582 = vrot.lane.b32.xlu0 %v8173_v50, %s8982_s30  ;;  %v5651_v50 = vld [vmem:[%s8914_s9 + $0x30] sm:$0xff] }
0x19cd   :  { %v4087_v48 = vpop.xlane.xlu1 %4086 }
0x19ce   :  { %7008 = vrcp.f32 %v4087_v48 }
0x19cf   :  { %v4084_v53 = vpop.xlane.xlu0 %4083 }
0x19d0   :  { %7010 = vrcp.f32 %v4084_v53 }
0x19d3   :  { %v4093_v47 = vpop.xlane.xlu1 %4092 }
0x19d4   :  { %7012 = vrcp.f32 %v4093_v47  ;;  %v4090_v55 = vpop.xlane.xlu0 %4089 }
0x19d5   :  { %7014 = vrcp.f32 %v4090_v55  ;;  %v8646_v55 = vpop.f32.mrf.mxu0 }
0x19d7   :  { %v4099_v57 = vpop.xlane.xlu1 %4098 }
0x19d8   :  { %7016 = vrcp.f32 %v4099_v57  ;;  %v4096_v34 = vpop.xlane.xlu0 %4095  ;;  %v8648_v57 = vpop.f32.mrf.mxu0 }
0x19d9   :  { %7018 = vrcp.f32 %v4096_v34 }
0x19da   :  { %v8650_v34 = vpop.f32.mrf.mxu0 }
0x19db   :  { %v4115_v0 = vpop.permute.xlu1 %4114  ;;  %v7009_v29 = vpop.eup %7008 }
0x19dc   :  { %6629 = vmatprep.subr.mxu0 %v4115_v0  ;;  %v4113_v37 = vpop.permute.xlu0 %4112  ;;  %v4103_v6 = vmul.f32 %v7009_v29, %v8519_v4 }
0x19dd   :  { %v7011_v1 = vpop.eup %7010  ;;  %6630 = vmatpush3.msra.mxu0 %v4115_v0  ;;  %v8652_v0 = vpop.f32.mrf.mxu0 }
0x19de   :  { %6631 = vmatprep.subr.mxu0 %v4113_v37  ;;  %v4101_v8 = vmul.f32 %v7011_v1, %v8523_v13 }
0x19df   :  { %6632 = vmatpush3.msra.mxu0 %v4113_v37  ;;  %v8654_v29 = vpop.f32.mrf.mxu0 }
0x19e0   :  { %6633 = vmatprep.mubr.msk.f32.mxu0 %vm95_vm0, %v4101_v8  ;;  %6642 = vmatprep.subr.mxu0 %v5651_v50 }
0x19e1   :  { %v7013_v43 = vpop.eup %7012  ;;  %6634 = vmatmul.mubr.msk.f32.vlgmr.msra.gmra.mxu0 %vm95_vm0, %v4103_v6  ;;  %v8656_v1 = vpop.f32.mrf.mxu0 }
0x19e2   :  { %v7015_v44 = vpop.eup %7014  ;;  %v4107_v9 = vmul.f32 %v7013_v43, %v8527_v46  ;;  %6643 = vmatpush3.msra.mxu0 %v5651_v50 }
0x19e3   :  { %v4105_v16 = vmul.f32 %v7015_v44, %v8529_v40 }
0x19e5   :  { %v7017_v38 = vpop.eup %7016  ;;  %6636 = vmatprep.mubr.msk.f32.mxu0 %vm95_vm0, %v4105_v16 }
0x19e6   :  { %v7019_v54 = vpop.eup %7018  ;;  %6637 = vmatmul.mubr.msk.f32.gmra.mxu0 %vm95_vm0, %v4107_v9  ;;  %v4111_v4 = vmul.f32 %v7017_v38, %v8535_v17 }
0x19e7   :  { %v4109_v13 = vmul.f32 %v7019_v54, %v8537_v62 }
0x19e9   :  { %6639 = vmatprep.mubr.msk.f32.mxu0 %vm95_vm0, %v4109_v13 }
0x19ea   :  { %6640 = vmatmul.mubr.msk.f32.gmra.mxu0 %vm95_vm0, %v4111_v4 }
0x1a0c   :  { %v4514_v3 = vpop.xlane.xlu1 %4513 }
0x1a0d   :  { %v4530_v46 = vsub.f32 %v8553_v45, %v4514_v3  ;;  %v4517_v19 = vpop.xlane.xlu0 %4516 }
0x1a0e   :  { %v4531_v40 = vsub.f32 %v8555_v23, %v4517_v19 }
0x1a0f   :  { %v4536_v20 = vmul.f32 1.442695, %v4530_v46 }
0x1a10   :  { %v4538_v21 = vmul.f32 1.442695, %v4531_v40  ;;  %v4523_v18 = vpop.xlane.xlu1 %4522 }
0x1a11   :  { %7020 = vpow2.f32 %v4536_v20  ;;  %v4533_v22 = vsub.f32 %v8563_v25, %v4523_v18  ;;  %v4520_v24 = vpop.xlane.xlu0 %4519 }
0x1a12   :  { %7022 = vpow2.f32 %v4538_v21  ;;  %v4532_v17 = vsub.f32 %v8567_v61, %v4520_v24 }
0x1a13   :  { %v4542_v62 = vmul.f32 1.442695, %v4533_v22 }
0x1a14   :  { %v4540_v56 = vmul.f32 1.442695, %v4532_v17  ;;  %v4529_v52 = vpop.xlane.xlu1 %4528 }
0x1a15   :  { %7024 = vpow2.f32 %v4542_v62  ;;  %v4535_v26 = vsub.f32 %v8577_v58, %v4529_v52  ;;  %v4526_v45 = vpop.xlane.xlu0 %4525 }
0x1a16   :  { %7026 = vpow2.f32 %v4540_v56  ;;  %v4534_v23 = vsub.f32 %v8581_v35, %v4526_v45 }
0x1a17   :  { %v4546_v11 = vmul.f32 1.442695, %v4535_v26 }
0x1a18   :  { %v4544_v27 = vmul.f32 1.442695, %v4534_v23  ;;  %v4587_v37 = vpop.permute.xlu1 %4586  ;;  %v5652_v23 = vld [vmem:[%s8914_s9 + $0x38] sm:$0xff] }
0x1a19   :  { %7028 = vpow2.f32 %v4546_v11  ;;  %v4589_v28 = vpop.permute.xlu0 %4588  ;;  %v3873_v11 = vadd.f32 %v8646_v55, %v8475_v5 }
0x1a1a   :  { %7030 = vpow2.f32 %v4544_v27  ;;  %6674 = vmatprep.subr.mxu0 %v4589_v28 }
0x1a1e   :  { %v8618_v25 = vpop.eup %7020 }
0x1a1f   :  { %v8620_v59 = vpop.eup %7022  ;;  %v4548_v61 = vsel %vm95_vm0, %v8618_v25, 0.0 }
0x1a20   :  { %4549 = vadd.xlane.f32.xlu0 %v4548_v61  ;;  %v4551_v58 = vsel %vm95_vm0, %v8620_v59, 0.0 }
0x1a21   :  { %4552 = vadd.xlane.f32.xlu1 %v4551_v58  ;;  %v3883_v58 = vadd.f32 %v8650_v34, %v8479_v7 }
0x1a22   :  { %v8626_v30 = vpop.eup %7024 }
0x1a23   :  { %v8628_v35 = vpop.eup %7026  ;;  %v4557_v36 = vsel %vm95_vm0, %v8626_v30, 0.0 }
0x1a24   :  { %v4554_v32 = vsel %vm95_vm0, %v8628_v35, 0.0 }
0x1a25   :  { %4558 = vadd.xlane.f32.xlu1 %v4557_v36  ;;  %4555 = vadd.xlane.f32.xlu0 %v4554_v32 }
0x1a26   :  { %v8634_v39 = vpop.eup %7028 }
0x1a27   :  { %v8636_v48 = vpop.eup %7030  ;;  %v4563_v53 = vsel %vm95_vm0, %v8634_v39, 0.0 }
0x1a28   :  { %v4560_v47 = vsel %vm95_vm0, %v8636_v48, 0.0 }
0x1a29   :  { %4564 = vadd.xlane.f32.xlu1 %v4563_v53  ;;  %4561 = vadd.xlane.f32.xlu0 %v4560_v47 }
0x1a3a   :  { %4580 = vrot.lane.b32.xlu1 %v8169_v49, %s8982_s30  ;;  %v4583_v49 = vpop.permute.xlu0 %4582 }
0x1a3f   :  { %4578 = vrot.lane.b32.xlu0 %v8155_v33, %s8982_s30  ;;  %v4585_v33 = vpop.permute.xlu1 %4584 }
0x1aa1   :  { %v6635_v50 = vpop.f32.mrf.mxu0 }
0x1aa3   :  { %v4214_v8 = vpop.f32.mrf.mxu0 }
0x1aa4   :  { %6644 = vmatprep.mubr.msk.f32.mxu0 %vm472_vm3, %v4214_v8 }
0x1aa5   :  { %6645 = vmatmul.mubr.msk.f32.vlgmr.msra.gmra.mxu0 %vm472_vm3, %v6635_v50 }
0x1aa6   :  { %v6638_v6 = vpop.f32.mrf.mxu0  ;;  %6675 = vmatpush3.msra.mxu0 %v4589_v28  ;;  %v3868_v28 = vadd.f32 %v8648_v57, %v8477_v41  ;;  %v3888_v41 = vadd.f32 %v8656_v1, %v8485_v31  ;;  %v5776_v1 = vld [vmem:[%s8916_s11 + $0x1] ss:$0 sm:$0xff] }
0x1aa7   :  { %6676 = vmatprep.subr.mxu0 %v4587_v37 }
0x1aa8   :  { %v4224_v43 = vpop.f32.mrf.mxu0  ;;  %6677 = vmatpush3.msra.mxu0 %v4587_v37 }
0x1aa9   :  { %6647 = vmatprep.mubr.msk.f32.mxu0 %vm472_vm3, %v4224_v43  ;;  %6678 = vmatprep.subr.mxu0 %v4585_v33  ;;  %v4550_v44 = vpop.xlane.xlu0 %4549 }
0x1aaa   :  { %v6641_v9 = vpop.f32.mrf.mxu0  ;;  %6648 = vmatmul.mubr.msk.f32.gmra.mxu0 %vm472_vm3, %v6638_v6  ;;  %v4553_v16 = vpop.xlane.xlu1 %4552  ;;  %7032 = vrcp.f32 %v4550_v44 }
0x1aab   :  { %7034 = vrcp.f32 %v4553_v16  ;;  %6679 = vmatpush3.msra.mxu0 %v4585_v33 }
0x1aac   :  { %6680 = vmatprep.subr.mxu0 %v4583_v49  ;;  %v4234_v38 = vpop.f32.mrf.mxu0 }
0x1aad   :  { %6681 = vmatpush3.msra.mxu0 %v4583_v49  ;;  %6650 = vmatprep.mubr.msk.f32.mxu0 %vm472_vm3, %v4234_v38 }
0x1aae   :  { %6651 = vmatmul.mubr.msk.f32.gmra.mxu0 %vm472_vm3, %v6641_v9  ;;  %v4559_v54 = vpop.xlane.xlu1 %4558  ;;  %v4556_v4 = vpop.xlane.xlu0 %4555 }
0x1aaf   :  { %7036 = vrcp.f32 %v4559_v54 }
0x1ab0   :  { %7038 = vrcp.f32 %v4556_v4 }
0x1ab2   :  { %v4565_v13 = vpop.xlane.xlu1 %4564  ;;  %v4562_v3 = vpop.xlane.xlu0 %4561 }
0x1ab3   :  { %7040 = vrcp.f32 %v4565_v13 }
0x1ab4   :  { %7042 = vrcp.f32 %v4562_v3 }
0x1ab6   :  { %v4581_v46 = vpop.permute.xlu1 %4580  ;;  %v4579_v20 = vpop.permute.xlu0 %4578 }
0x1ab7   :  { %v7033_v19 = vpop.eup %7032  ;;  %6682 = vmatprep.subr.mxu0 %v4581_v46 }
0x1ab8   :  { %v7035_v40 = vpop.eup %7034  ;;  %6683 = vmatpush3.msra.mxu0 %v4581_v46  ;;  %v4567_v21 = vmul.f32 %v7033_v19, %v8618_v25 }
0x1ab9   :  { %v4569_v18 = vmul.f32 %v7035_v40, %v8620_v59  ;;  %6684 = vmatprep.subr.mxu0 %v4579_v20 }
0x1aba   :  { %6685 = vmatpush3.msra.mxu0 %v4579_v20  ;;  %6686 = vmatprep.mubr.msk.f32.mxu0 %vm95_vm0, %v4567_v21 }
0x1abb   :  { %6687 = vmatmul.mubr.msk.f32.vlgmr.msra.gmra.mxu0 %vm95_vm0, %v4569_v18  ;;  %6695 = vmatprep.subr.mxu0 %v5652_v23 }
0x1abc   :  { %v7037_v22 = vpop.eup %7036  ;;  %6696 = vmatpush3.msra.mxu0 %v5652_v23 }
0x1abd   :  { %v7039_v24 = vpop.eup %7038  ;;  %v4573_v17 = vmul.f32 %v7037_v22, %v8626_v30 }
0x1abe   :  { %v4571_v62 = vmul.f32 %v7039_v24, %v8628_v35  ;;  %v3878_v35 = vadd.f32 %v8652_v0, %v8481_v2  ;;  %v5775_v0 = vld [vmem:[%s8915_s10 + $0x1] ss:$0 sm:$0xff] }
0x1ac0   :  { %v7041_v56 = vpop.eup %7040  ;;  %6689 = vmatprep.mubr.msk.f32.mxu0 %vm95_vm0, %v4571_v62 }
0x1ac1   :  { %v7043_v52 = vpop.eup %7042  ;;  %6690 = vmatmul.mubr.msk.f32.gmra.mxu0 %vm95_vm0, %v4573_v17  ;;  %v4577_v26 = vmul.f32 %v7041_v56, %v8634_v39  ;;  %v3893_v39 = vadd.f32 %v8654_v29, %v8483_v42 }
0x1ac2   :  { %v4575_v45 = vmul.f32 %v7043_v52, %v8636_v48 }
0x1ac4   :  { %6692 = vmatprep.mubr.msk.f32.mxu0 %vm95_vm0, %v4575_v45 }
0x1ac5   :  { %6693 = vmatmul.mubr.msk.f32.gmra.mxu0 %vm95_vm0, %v4577_v26 }
0x1b65   :  { %v6646_v27 = vpop.f32.mrf.mxu0 }
0x1b66   :  { %v4357_v25 = vadd.f32 %v6646_v27, %v3873_v11 }
0x1b67   :  { %v4327_v59 = vpop.f32.mrf.mxu0 }
0x1b68   :  { %v4356_v61 = vadd.f32 %v4327_v59, %v3868_v28 }
0x1b6a   :  { %v6649_v30 = vpop.f32.mrf.mxu0 }
0x1b6b   :  { %v4359_v36 = vadd.f32 %v6649_v30, %v3883_v58 }
0x1b6c   :  { %v4337_v32 = vpop.f32.mrf.mxu0 }
0x1b6d   :  { %v4358_v5 = vadd.f32 %v4337_v32, %v3878_v35 }
0x1b6e   :  { %v6652_v48 = vpop.f32.mrf.mxu0 }
0x1b6f   :  { %v4361_v53 = vadd.f32 %v6652_v48, %v3893_v39 }
0x1b70   :  { %v4347_v47 = vpop.f32.mrf.mxu0 }
0x1b71   :  { %v4360_v55 = vadd.f32 %v4347_v47, %v3888_v41 }
0x1b7b   :  { %v6688_v57 = vpop.f32.mrf.mxu0 }
0x1b7d   :  { %v4680_v37 = vpop.f32.mrf.mxu0 }
0x1b7e   :  { %6697 = vmatprep.mubr.msk.f32.mxu0 %vm472_vm3, %v4680_v37 }
0x1b7f   :  { %6698 = vmatmul.mubr.msk.f32.vlgmr.msra.gmra.mxu0 %vm472_vm3, %v6688_v57 }
0x1b81   :  { %v6691_v7 = vpop.f32.mrf.mxu0 }
0x1b83   :  { %v4690_v2 = vpop.f32.mrf.mxu0 }
0x1b84   :  { %6700 = vmatprep.mubr.msk.f32.mxu0 %vm472_vm3, %v4690_v2 }
0x1b85   :  { %v6694_v34 = vpop.f32.mrf.mxu0  ;;  %6701 = vmatmul.mubr.msk.f32.gmra.mxu0 %vm472_vm3, %v6691_v7 }
0x1b87   :  { %v4700_v42 = vpop.f32.mrf.mxu0 }
0x1b88   :  { %6703 = vmatprep.mubr.msk.f32.mxu0 %vm472_vm3, %v4700_v42 }
0x1b89   :  { %6704 = vmatmul.mubr.msk.f32.gmra.mxu0 %vm472_vm3, %v6694_v34 }
0x1c3f   :  { %v6699_v31 = vpop.f32.mrf.mxu0 }
0x1c40   :  { %v4823_v29 = vadd.f32 %v6699_v31, %v4357_v25 }
0x1c41   :  { %v4793_v50 = vpop.f32.mrf.mxu0 }
0x1c42   :  { %v4839_v8 = vadd.f32 %v5775_v0, %v4823_v29  ;;  %v4822_v49 = vadd.f32 %v4793_v50, %v4356_v61 }
0x1c44   :  { %v4851_v33 = vmul.f32 %v5776_v1, %v4839_v8  ;;  %v4838_v6 = vadd.f32 %v5775_v0, %v4822_v49  ;;  %v5784_v8 = vld [vmem:[%s8919_s14 + $0x38] sm:$0xff]  ;;  %v5783_v49 = vld [vmem:[%s8919_s14 + $0x30] sm:$0xff] }
0x1c45   :  { %v6702_v43 = vpop.f32.mrf.mxu0  ;;  %6706 = vmatprep.subr.mxu1 %v5784_v8 }
0x1c46   :  { %v4850_v44 = vmul.f32 %v5776_v1, %v4838_v6  ;;  %v4825_v9 = vadd.f32 %v6702_v43, %v4359_v36  ;;  %v8704_v16 = vadd.f32 %v4851_v33, %v8057_v51  ;;  %6707 = vmatpush3.msra.mxu1 %v5784_v8  ;;  %v5782_v33 = vld [vmem:[%s8919_s14 + $0x28] sm:$0xff]  ;;  %v5781_v6 = vld [vmem:[%s8919_s14 + $0x20] sm:$0xff]  ;;  %v5799_v8 = vld [vmem:[%s8921_s16 + $0xb0] sm:$0xff] }
0x1c47   :  { %v4803_v38 = vpop.f32.mrf.mxu0  ;;  %6708 = vmatprep.subr.mxu1 %v5783_v49 }
0x1c48   :  { %v4841_v54 = vadd.f32 %v5775_v0, %v4825_v9  ;;  %v4824_v4 = vadd.f32 %v4803_v38, %v4358_v5  ;;  %v4869_v13 = vsel %vm193_vm1, %v8704_v16, 0.0  ;;  %v8709_v3 = vadd.f32 %v4850_v44, %v8060_v63  ;;  %6709 = vmatpush3.msra.mxu1 %v5783_v49  ;;  %v5798_v49 = vld [vmem:[%s8921_s16 + $0xa8] sm:$0xff] }
0x1c49   :  { %v6705_v46 = vpop.f32.mrf.mxu0  ;;  %4870 = vadd.xlane.f32.xlu0 %v4869_v13  ;;  %6710 = vmatprep.subr.mxu1 %v5782_v33 }
0x1c4a   :  { %v4853_v19 = vmul.f32 %v5776_v1, %v4841_v54  ;;  %v4840_v40 = vadd.f32 %v5775_v0, %v4824_v4  ;;  %v4827_v20 = vadd.f32 %v6705_v46, %v4361_v53  ;;  %v4866_v21 = vsel %vm193_vm1, %v8709_v3, 0.0  ;;  %6711 = vmatpush3.msra.mxu1 %v5782_v33  ;;  %v5797_v33 = vld [vmem:[%s8921_s16 + $0xa0] sm:$0xff] }
0x1c4b   :  { %v4813_v18 = vpop.f32.mrf.mxu0  ;;  %4867 = vadd.xlane.f32.xlu1 %v4866_v21  ;;  %6712 = vmatprep.subr.mxu1 %v5781_v6 }
0x1c4c   :  { %v4852_v51 = vmul.f32 %v5776_v1, %v4840_v40  ;;  %v4843_v22 = vadd.f32 %v5775_v0, %v4827_v20  ;;  %v4826_v24 = vadd.f32 %v4813_v18, %v4360_v55  ;;  %v8714_v17 = vadd.f32 %v4853_v19, %v8067_v60  ;;  %6713 = vmatpush3.msra.mxu1 %v5781_v6  ;;  %v5796_v6 = vld [vmem:[%s8921_s16 + $0x98] sm:$0xff] }
0x1c4d   :  { %6764 = vmatprep.subr.mxu1 %v7098_v10 }
0x1c4e   :  { %v4855_v62 = vmul.f32 %v5776_v1, %v4843_v22  ;;  %v4842_v56 = vadd.f32 %v5775_v0, %v4826_v24  ;;  %v4875_v63 = vsel %vm193_vm1, %v8714_v17, 0.0  ;;  %v8719_v52 = vadd.f32 %v4852_v51, %v8070_v12 }
0x1c4f   :  { %4876 = vadd.xlane.f32.xlu1 %v4875_v63 }
0x1c50   :  { %v4854_v26 = vmul.f32 %v5776_v1, %v4842_v56  ;;  %v4872_v45 = vsel %vm193_vm1, %v8719_v52, 0.0  ;;  %v8724_v23 = vadd.f32 %v4855_v62, %v8075_v14 }
0x1c51   :  { %4873 = vadd.xlane.f32.xlu0 %v4872_v45 }
0x1c52   :  { %v4881_v60 = vsel %vm193_vm1, %v8724_v23, 0.0  ;;  %v8729_v11 = vadd.f32 %v4854_v26, %v8080_v15  ;;  %v5779_v26 = vld [vmem:[%s8917_s12 + $0x1] ss:$0 sm:$0xff] }
0x1c53   :  { %4882 = vadd.xlane.f32.xlu1 %v4881_v60 }
0x1c54   :  { %v4878_v12 = vsel %vm193_vm1, %v8729_v11, 0.0 }
0x1c55   :  { %4879 = vadd.xlane.f32.xlu0 %v4878_v12 }
0x1cd2   :  { %v4871_v27 = vpop.xlane.xlu0 %4870 }
0x1cd3   :  { %v4885_v28 = vmul.f32 0.03125, %v4871_v27 }
0x1cd4   :  { %v4868_v25 = vpop.xlane.xlu1 %4867 }
0x1cd5   :  { %v8734_v59 = vsub.f32 %v8704_v16, %v4885_v28  ;;  %v4884_v14 = vmul.f32 0.03125, %v4868_v25  ;;  %v5780_v28 = vld [vmem:[%s8918_s13 + $0x1] ss:$0 sm:$0xff] }
0x1cd7   :  { %v8737_v61 = vsub.f32 %v8709_v3, %v4884_v14  ;;  %v4897_v58 = vmul.f32 %v8734_v59, %v8734_v59 }
0x1cd8   :  { %v4877_v15 = vpop.xlane.xlu1 %4876 }
0x1cd9   :  { %v4887_v30 = vmul.f32 0.03125, %v4877_v15  ;;  %v4905_v35 = vsel %vm193_vm1, %v4897_v58, 0.0  ;;  %v4896_v36 = vmul.f32 %v8737_v61, %v8737_v61 }
0x1cda   :  { %v4874_v32 = vpop.xlane.xlu0 %4873  ;;  %4906 = vadd.xlane.f32.xlu1 %v4905_v35 }
0x1cdb   :  { %v8745_v39 = vsub.f32 %v8714_v17, %v4887_v30  ;;  %v4886_v5 = vmul.f32 0.03125, %v4874_v32  ;;  %v4902_v48 = vsel %vm193_vm1, %v4896_v36, 0.0 }
0x1cdc   :  { %v4883_v41 = vpop.xlane.xlu1 %4882  ;;  %4903 = vadd.xlane.f32.xlu0 %v4902_v48 }
0x1cdd   :  { %v8749_v53 = vsub.f32 %v8719_v52, %v4886_v5  ;;  %v4889_v47 = vmul.f32 0.03125, %v4883_v41  ;;  %v4899_v55 = vmul.f32 %v8745_v39, %v8745_v39 }
0x1cde   :  { %v4880_v57 = vpop.xlane.xlu0 %4879 }
0x1cdf   :  { %v8754_v37 = vsub.f32 %v8724_v23, %v4889_v47  ;;  %v4888_v7 = vmul.f32 0.03125, %v4880_v57  ;;  %v4911_v2 = vsel %vm193_vm1, %v4899_v55, 0.0  ;;  %v4898_v34 = vmul.f32 %v8749_v53, %v8749_v53 }
0x1ce0   :  { %4912 = vadd.xlane.f32.xlu1 %v4911_v2  ;;  %v5807_v2 = vld [vmem:[%s8921_s16 + $0xf0] sm:$0xff] }
0x1ce1   :  { %v8760_v42 = vsub.f32 %v8729_v11, %v4888_v7  ;;  %v4908_v31 = vsel %vm193_vm1, %v4898_v34, 0.0  ;;  %v4901_v0 = vmul.f32 %v8754_v37, %v8754_v37  ;;  %v5806_v34 = vld [vmem:[%s8921_s16 + $0xe8] sm:$0xff] }
0x1ce2   :  { %4909 = vadd.xlane.f32.xlu0 %v4908_v31  ;;  %v5804_v31 = vld [vmem:[%s8921_s16 + $0xd8] sm:$0xff] }
0x1ce3   :  { %v4917_v29 = vsel %vm193_vm1, %v4901_v0, 0.0  ;;  %v4900_v1 = vmul.f32 %v8760_v42, %v8760_v42  ;;  %v5803_v0 = vld [vmem:[%s8921_s16 + $0xd0] sm:$0xff] }
0x1ce4   :  { %4918 = vadd.xlane.f32.xlu1 %v4917_v29  ;;  %v5802_v29 = vld [vmem:[%s8921_s16 + $0xc8] sm:$0xff] }
0x1ce5   :  { %v4914_v50 = vsel %vm193_vm1, %v4900_v1, 0.0  ;;  %v5801_v1 = vld [vmem:[%s8921_s16 + $0xc0] sm:$0xff] }
0x1ce6   :  { %4915 = vadd.xlane.f32.xlu0 %v4914_v50  ;;  %v5800_v50 = vld [vmem:[%s8921_s16 + $0xb8] sm:$0xff] }
0x1d63   :  { %v4907_v43 = vpop.xlane.xlu1 %4906 }
0x1d64   :  { %v4921_v44 = vmul.f32 0.03125, %v4907_v43  ;;  %v5795_v43 = vld [vmem:[%s8921_s16 + $0x90] sm:$0xff] }
0x1d65   :  { %v4904_v9 = vpop.xlane.xlu0 %4903 }
0x1d66   :  { %v4927_v38 = vadd.f32 1e-12, %v4921_v44  ;;  %v4920_v54 = vmul.f32 0.03125, %v4904_v9  ;;  %v5794_v44 = vld [vmem:[%s8921_s16 + $0x88] sm:$0xff]  ;;  %v5793_v9 = vld [vmem:[%s8921_s16 + $0x80] sm:$0xff] }
0x1d68   :  { %7044 = vrsqrt.f32 %v4927_v38  ;;  %v4926_v4 = vadd.f32 1e-12, %v4920_v54  ;;  %v5786_v38 = vld [vmem:[%s8920_s15 + $0x1] ss:$0 sm:$0xff] }
0x1d69   :  { %v4913_v13 = vpop.xlane.xlu1 %4912 }
0x1d6a   :  { %7046 = vrsqrt.f32 %v4926_v4  ;;  %v4923_v46 = vmul.f32 0.03125, %v4913_v13 }
0x1d6b   :  { %v4910_v19 = vpop.xlane.xlu0 %4909 }
0x1d6c   :  { %v4929_v40 = vadd.f32 1e-12, %v4923_v46  ;;  %v4922_v20 = vmul.f32 0.03125, %v4910_v19 }
0x1d6d   :  { %v4919_v21 = vpop.xlane.xlu1 %4918 }
0x1d6e   :  { %7048 = vrsqrt.f32 %v4929_v40  ;;  %v4928_v18 = vadd.f32 1e-12, %v4922_v20  ;;  %v4925_v51 = vmul.f32 0.03125, %v4919_v21 }
0x1d6f   :  { %v4916_v22 = vpop.xlane.xlu0 %4915 }
0x1d70   :  { %7050 = vrsqrt.f32 %v4928_v18  ;;  %v4931_v24 = vadd.f32 1e-12, %v4925_v51  ;;  %v4924_v62 = vmul.f32 0.03125, %v4916_v22 }
0x1d72   :  { %7052 = vrsqrt.f32 %v4931_v24  ;;  %v4930_v56 = vadd.f32 1e-12, %v4924_v62 }
0x1d74   :  { %7054 = vrsqrt.f32 %v4930_v56 }
0x1d75   :  { %v7045_v63 = vpop.eup %7044 }
0x1d76   :  { %v4939_v45 = vmul.f32 %v7045_v63, %v8734_v59 }
0x1d77   :  { %v7047_v60 = vpop.eup %7046 }
0x1d78   :  { %v4938_v12 = vmul.f32 %v7047_v60, %v8737_v61  ;;  %v4951_v27 = vmul.f32 %v5779_v26, %v4939_v45 }
0x1d7a   :  { %v4950_v25 = vmul.f32 %v5779_v26, %v4938_v12  ;;  %v4963_v35 = vadd.f32 %v5780_v28, %v4951_v27 }
0x1d7b   :  { %v7049_v14 = vpop.eup %7048 }
0x1d7c   :  { %v4962_v58 = vadd.f32 %v5780_v28, %v4950_v25  ;;  %v4941_v15 = vmul.f32 %v7049_v14, %v8745_v39 }
0x1d7d   :  { %v7051_v30 = vpop.eup %7050 }
0x1d7e   :  { %6714 = vmatprep.mubr.msk.f32.mxu1 %vm193_vm1, %v4962_v58  ;;  %v4940_v36 = vmul.f32 %v7051_v30, %v8749_v53  ;;  %v4953_v59 = vmul.f32 %v5779_v26, %v4941_v15 }
0x1d7f   :  { %v7053_v32 = vpop.eup %7052  ;;  %6715 = vmatmul.mubr.msk.f32.vlgmr.msra.gmra.mxu1 %vm193_vm1, %v4963_v35 }
0x1d80   :  { %v4952_v61 = vmul.f32 %v5779_v26, %v4940_v36  ;;  %v4943_v5 = vmul.f32 %v7053_v32, %v8754_v37  ;;  %v4965_v41 = vadd.f32 %v5780_v28, %v4953_v59  ;;  %v5808_v37 = vld [vmem:[%s8921_s16 + $0xf8] sm:$0xff] }
0x1d81   :  { %v7055_v48 = vpop.eup %7054  ;;  %6723 = vmatprep.subr.mxu0 %v5808_v37 }
0x1d82   :  { %v4964_v47 = vadd.f32 %v5780_v28, %v4952_v61  ;;  %v4942_v55 = vmul.f32 %v7055_v48, %v8760_v42  ;;  %v4955_v57 = vmul.f32 %v5779_v26, %v4943_v5  ;;  %6724 = vmatpush3.msra.mxu0 %v5808_v37  ;;  %v5805_v42 = vld [vmem:[%s8921_s16 + $0xe0] sm:$0xff] }
0x1d83   :  { %6725 = vmatprep.subr.mxu0 %v5807_v2 }
0x1d84   :  { %6717 = vmatprep.mubr.msk.f32.mxu1 %vm193_vm1, %v4964_v47  ;;  %v4954_v39 = vmul.f32 %v5779_v26, %v4942_v55  ;;  %v4967_v7 = vadd.f32 %v5780_v28, %v4955_v57  ;;  %6726 = vmatpush3.msra.mxu0 %v5807_v2 }
0x1d85   :  { %6718 = vmatmul.mubr.msk.f32.gmra.mxu1 %vm193_vm1, %v4965_v41  ;;  %6727 = vmatprep.subr.mxu0 %v5806_v34 }
0x1d86   :  { %v4966_v53 = vadd.f32 %v5780_v28, %v4954_v39  ;;  %6728 = vmatpush3.msra.mxu0 %v5806_v34 }
0x1d87   :  { %6729 = vmatprep.subr.mxu0 %v5805_v42 }
0x1d88   :  { %6720 = vmatprep.mubr.msk.f32.mxu1 %vm193_vm1, %v4966_v53  ;;  %6730 = vmatpush3.msra.mxu0 %v5805_v42 }
0x1d89   :  { %6721 = vmatmul.mubr.msk.f32.gmra.mxu1 %vm193_vm1, %v4967_v7  ;;  %6731 = vmatprep.subr.mxu0 %v5804_v31 }
0x1d8a   :  { %6732 = vmatpush3.msra.mxu0 %v5804_v31  ;;  %6776 = vmatprep.mubr.msk.f32.mxu1 %vm7110_vm4, %v7098_v10 }
0x1d8b   :  { %6733 = vmatprep.subr.mxu0 %v5803_v0 }
0x1d8c   :  { %6734 = vmatpush3.msra.mxu0 %v5803_v0 }
0x1d8d   :  { %6735 = vmatprep.subr.mxu0 %v5802_v29 }
0x1d8e   :  { %6736 = vmatpush3.msra.mxu0 %v5802_v29 }
0x1d8f   :  { %6737 = vmatprep.subr.mxu0 %v5801_v1 }
0x1d90   :  { %6738 = vmatpush3.msra.mxu0 %v5801_v1 }
0x1d91   :  { %6739 = vmatprep.subr.mxu0 %v5800_v50 }
0x1d92   :  { %6740 = vmatpush3.msra.mxu0 %v5800_v50 }
0x1d93   :  { %6741 = vmatprep.subr.mxu0 %v5799_v8 }
0x1d94   :  { %6742 = vmatpush3.msra.mxu0 %v5799_v8 }
0x1d95   :  { %6743 = vmatprep.subr.mxu0 %v5798_v49 }
0x1d96   :  { %6744 = vmatpush3.msra.mxu0 %v5798_v49 }
0x1d97   :  { %6745 = vmatprep.subr.mxu0 %v5797_v33 }
0x1d98   :  { %6746 = vmatpush3.msra.mxu0 %v5797_v33 }
0x1d99   :  { %6747 = vmatprep.subr.mxu0 %v5796_v6 }
0x1d9a   :  { %6748 = vmatpush3.msra.mxu0 %v5796_v6 }
0x1d9b   :  { %6749 = vmatprep.subr.mxu0 %v5795_v43 }
0x1d9c   :  { %6750 = vmatpush3.msra.mxu0 %v5795_v43 }
0x1d9d   :  { %6751 = vmatprep.subr.mxu0 %v5794_v44 }
0x1d9e   :  { %6752 = vmatpush3.msra.mxu0 %v5794_v44 }
0x1d9f   :  { %6753 = vmatprep.subr.mxu0 %v5793_v9 }
0x1da0   :  { %6754 = vmatpush3.msra.mxu0 %v5793_v9 }
0x1e3f   :  { %v6716_v54 = vpop.f32.mrf.mxu1 }
0x1e40   :  { %v5071_v4 = vadd.f32 %v6716_v54, %v5786_v38 }
0x1e41   :  { %v5065_v13 = vpop.f32.mrf.mxu1 }
0x1e42   :  { %v5095_v46 = vmul.f32 %v5071_v4, %v5071_v4  ;;  %v5066_v19 = vadd.f32 %v5786_v38, %v5065_v13 }
0x1e44   :  { %v5101_v40 = vmul.f32 %v5095_v46, %v5071_v4  ;;  %v5094_v20 = vmul.f32 %v5066_v19, %v5066_v19 }
0x1e45   :  { %v6719_v21 = vpop.f32.mrf.mxu1 }
0x1e46   :  { %v5107_v18 = vmul.f32 0.044715, %v5101_v40  ;;  %v5100_v51 = vmul.f32 %v5094_v20, %v5066_v19  ;;  %v5081_v22 = vadd.f32 %v6719_v21, %v5786_v38 }
0x1e47   :  { %v5075_v24 = vpop.f32.mrf.mxu1 }
0x1e48   :  { %v5113_v62 = vadd.f32 %v5107_v18, %v5071_v4  ;;  %v5106_v56 = vmul.f32 0.044715, %v5100_v51  ;;  %v5097_v63 = vmul.f32 %v5081_v22, %v5081_v22  ;;  %v5076_v26 = vadd.f32 %v5786_v38, %v5075_v24 }
0x1e49   :  { %v6722_v45 = vpop.f32.mrf.mxu1 }
0x1e4a   :  { %v5119_v60 = vmul.f32 0.7978846, %v5113_v62  ;;  %v5112_v12 = vadd.f32 %v5106_v56, %v5066_v19  ;;  %v5103_v27 = vmul.f32 %v5097_v63, %v5081_v22  ;;  %v5096_v28 = vmul.f32 %v5076_v26, %v5076_v26 }
0x1e4b   :  { %v5091_v25 = vadd.f32 %v6722_v45, %v5786_v38  ;;  %v5085_v14 = vpop.f32.mrf.mxu1 }
0x1e4c   :  { %7056 = vtanh.f32 %v5119_v60  ;;  %v5118_v58 = vmul.f32 0.7978846, %v5112_v12  ;;  %v5109_v15 = vmul.f32 0.044715, %v5103_v27  ;;  %v5102_v30 = vmul.f32 %v5096_v28, %v5076_v26  ;;  %v5812_v60 = vld [vmem:[%s8923_s18 + $0x1] ss:$0 sm:$0xff] }
0x1e4d   :  { %v5099_v35 = vmul.f32 %v5091_v25, %v5091_v25  ;;  %v5086_v36 = vadd.f32 %v5786_v38, %v5085_v14 }
0x1e4e   :  { %7058 = vtanh.f32 %v5118_v58  ;;  %v5115_v59 = vadd.f32 %v5109_v15, %v5081_v22  ;;  %v5108_v32 = vmul.f32 0.044715, %v5102_v30 }
0x1e4f   :  { %v5105_v61 = vmul.f32 %v5099_v35, %v5091_v25  ;;  %v5098_v5 = vmul.f32 %v5086_v36, %v5086_v36 }
0x1e50   :  { %v5121_v48 = vmul.f32 0.7978846, %v5115_v59  ;;  %v5114_v41 = vadd.f32 %v5108_v32, %v5076_v26 }
0x1e51   :  { %v5111_v47 = vmul.f32 0.044715, %v5105_v61  ;;  %v5104_v55 = vmul.f32 %v5098_v5, %v5086_v36 }
0x1e52   :  { %7060 = vtanh.f32 %v5121_v48  ;;  %v5120_v57 = vmul.f32 0.7978846, %v5114_v41 }
0x1e53   :  { %v5117_v39 = vadd.f32 %v5111_v47, %v5091_v25  ;;  %v5110_v7 = vmul.f32 0.044715, %v5104_v55 }
0x1e54   :  { %7062 = vtanh.f32 %v5120_v57 }
0x1e55   :  { %v5123_v53 = vmul.f32 0.7978846, %v5117_v39  ;;  %v5116_v37 = vadd.f32 %v5110_v7, %v5086_v36  ;;  %v5395_v7 = vld [vmem:[%s8927_s22 + $0x18] sm:$0xff] }
0x1e57   :  { %7064 = vtanh.f32 %v5123_v53  ;;  %v5122_v2 = vmul.f32 0.7978846, %v5116_v37  ;;  %v5394_v53 = vld [vmem:[%s8927_s22 + $0x10] sm:$0xff]  ;;  %v5393_v37 = vld [vmem:[%s8927_s22 + $0x8] sm:$0xff] }
0x1e59   :  { %v7057_v34 = vpop.eup %7056  ;;  %7066 = vtanh.f32 %v5122_v2  ;;  %v5392_v2 = vld [vmem:[%s8927_s22] sm:$0xff] }
0x1e5a   :  { %v5131_v42 = vadd.f32 1.0, %v7057_v34 }
0x1e5b   :  { %v7059_v31 = vpop.eup %7058 }
0x1e5c   :  { %v5130_v0 = vadd.f32 1.0, %v7059_v31  ;;  %v5137_v29 = vmul.f32 0.5, %v5131_v42 }
0x1e5e   :  { %v5136_v1 = vmul.f32 0.5, %v5130_v0  ;;  %v5143_v6 = vmul.f32 %v5137_v29, %v5071_v4  ;;  %v5814_v29 = vld [vmem:[%s8925_s20] ss:$0 sm:$0xff]  ;;  %s7076_s20 = scalar_lea.vmem %s5485_s7, 32 }
0x1e5f   :  { %v7061_v50 = vpop.eup %7060  ;;  %p7077_p0 = scmp.ne.s32.totalorder %s5485_s7, %s7076_s20  ;;  %p7082_p2 = scmp.lt.s32.totalorder %s7076_s20, %s7076_s20 }
0x1e60   :  { %v5142_v8 = vmul.f32 %v5136_v1, %v5066_v19  ;;  %v5133_v49 = vadd.f32 1.0, %v7061_v50  ;;  %v5815_v50 = vld [vmem:[%s8926_s21] ss:$0 sm:$0xff] }
0x1e61   :  { %v7063_v33 = vpop.eup %7062  ;;  %p7083_p3 = por %p7082_p2, %p7081_p1 }
0x1e62   :  { %6755 = vmatprep.mubr.f32.mxu0 %v5142_v8  ;;  %v5132_v43 = vadd.f32 1.0, %v7063_v33  ;;  %v5139_v44 = vmul.f32 0.5, %v5133_v49 }
0x1e63   :  { %6756 = vmatmul.mubr.f32.vlgmr.msra.gmra.mxu0 %v5143_v6  ;;  %p7084_p4 = pnand %p7083_p3, %p7077_p0 }
0x1e64   :  { %v7065_v9 = vpop.eup %7064  ;;  %v5138_v38 = vmul.f32 0.5, %v5132_v43  ;;  %v5145_v40 = vmul.f32 %v5139_v44, %v5081_v22  ;;  %v5810_v22 = vld [vmem:[%s8922_s17 + $0x1] ss:$0 sm:$0xff] }
0x1e65   :  { %v5135_v54 = vadd.f32 1.0, %v7065_v9 }
0x1e66   :  { %v7067_v13 = vpop.eup %7066  ;;  %v5144_v46 = vmul.f32 %v5138_v38, %v5076_v26 }
0x1e67   :  { %v5134_v20 = vadd.f32 1.0, %v7067_v13  ;;  %v5141_v21 = vmul.f32 0.5, %v5135_v54 }
0x1e68   :  { %6758 = vmatprep.mubr.f32.mxu0 %v5144_v46 }
0x1e69   :  { %6759 = vmatmul.mubr.f32.gmra.mxu0 %v5145_v40  ;;  %v5140_v18 = vmul.f32 0.5, %v5134_v20  ;;  %v5147_v19 = vmul.f32 %v5141_v21, %v5091_v25 }
0x1e6b   :  { %v5146_v51 = vmul.f32 %v5140_v18, %v5086_v36 }
0x1e6d   :  { %6761 = vmatprep.mubr.f32.mxu0 %v5146_v51 }
0x1e6e   :  { %6762 = vmatmul.mubr.f32.gmra.mxu0 %v5147_v19 }
0x1f23   :  { %v6757_v4 = vpop.f32.mrf.mxu0 }
0x1f24   :  { %v5245_v14 = vadd.f32 %v6757_v4, %v5810_v22 }
0x1f25   :  { %v5239_v24 = vpop.f32.mrf.mxu0 }
0x1f26   :  { %v5240_v35 = vadd.f32 %v5810_v22, %v5239_v24  ;;  %v5277_v32 = vmul.f32 %v5812_v60, %v5245_v14 }
0x1f28   :  { %v5276_v5 = vmul.f32 %v5812_v60, %v5240_v35 }
0x1f29   :  { %v6760_v62 = vpop.f32.mrf.mxu0 }
0x1f2a   :  { %v5255_v26 = vadd.f32 %v6760_v62, %v5810_v22 }
0x1f2b   :  { %v5249_v56 = vpop.f32.mrf.mxu0 }
0x1f2c   :  { %v5250_v27 = vadd.f32 %v5810_v22, %v5249_v56  ;;  %v5279_v58 = vmul.f32 %v5812_v60, %v5255_v26 }
0x1f2e   :  { %v6763_v63 = vpop.f32.mrf.mxu0  ;;  %v5278_v36 = vmul.f32 %v5812_v60, %v5250_v27  ;;  %v5285_v61 = vadd.f32 %v5279_v58, %v8714_v17  ;;  %v5288_v17 = vld [vmem:[%s8924_s19] sm:$0x3] }
0x1f2f   :  { %v5265_v45 = vadd.f32 %v6763_v63, %v5810_v22 }
0x1f30   :  { %v5259_v12 = vpop.f32.mrf.mxu0  ;;  %v5284_v48 = vadd.f32 %v5278_v36, %v8719_v52 }
0x1f31   :  { %v5281_v28 = vmul.f32 %v5812_v60, %v5265_v45  ;;  %v5260_v25 = vadd.f32 %v5810_v22, %v5259_v12 }
0x1f33   :  { %v5287_v15 = vadd.f32 %v5281_v28, %v8724_v23  ;;  %v5280_v30 = vmul.f32 %v5812_v60, %v5260_v25  ;;  %v5283_v23 = vadd.f32 %v5277_v32, %v8704_v16 }
0x1f35   :  { %v5286_v59 = vadd.f32 %v5280_v30, %v8729_v11  ;;  %6765 = vmatpush3.msra.mxu1 %v5287_v15  ;;  %v5282_v11 = vadd.f32 %v5276_v5, %v8709_v3 }
0x1f36   :  { %6766 = vmatprep.subr.mxu1 %v7098_v10 }
0x1f37   :  { %6767 = vmatpush3.msra.mxu1 %v5286_v59 }
0x1f38   :  { %6768 = vmatprep.subr.mxu1 %v7098_v10 }
0x1f39   :  { %6769 = vmatpush3.msra.mxu1 %v5285_v61 }
0x1f3a   :  { %6770 = vmatprep.subr.mxu1 %v7098_v10 }
0x1f3b   :  { %6771 = vmatpush3.msra.mxu1 %v5284_v48 }
0x1f3c   :  { %6772 = vmatprep.subr.mxu1 %v7098_v10 }
0x1f3d   :  { %6773 = vmatpush3.msra.mxu1 %v5283_v23 }
0x1f3e   :  { %6774 = vmatprep.subr.mxu1 %v7098_v10 }
0x1f3f   :  { %6775 = vmatpush3.msra.mxu1 %v5282_v11 }
0x1f40   :  { %6777 = vmatmul.mubr.msk.f32.vlgmr.msra.gmra.mxu1 %vm95_vm0, %v5288_v17  ;;  %6779 = vmatprep.subr.mxu1 %v7098_v10 }
0x1f41   :  { %6787 = vmatprep.mubr.msk.f32.mxu1 %vm7110_vm4, %v7098_v10  ;;  %6780 = vmatpush3.msra.mxu1 %v5395_v7 }
0x1f42   :  { %6781 = vmatprep.subr.mxu1 %v7098_v10 }
0x1f43   :  { %6782 = vmatpush3.msra.mxu1 %v5394_v53 }
0x1f44   :  { %6783 = vmatprep.subr.mxu1 %v7098_v10 }
0x1f45   :  { %6784 = vmatpush3.msra.mxu1 %v5393_v37 }
0x1f46   :  { %6785 = vmatprep.subr.mxu1 %v7098_v10  ;;  %v5816_v10 = vld [vmem:[%s8928_s23] ss:$0 sm:$0xff] }
0x1f47   :  { %6786 = vmatpush3.msra.mxu1 %v5392_v2 }
0x2000   :  { %v5358_v16 = vpop.f32.mrf.mxu1 }
0x2001   :  { %v5365_v52 = vsel %vm5364_vm5, %v5358_v16, 0.0 }
0x2002   :  { %5366 = vadd.xlane.f32.xlu0 %v5365_v52  ;;  %v6778_v3 = vpop.f32.mrf.mxu1 }
0x208b   :  { %v5367_v41 = vpop.xlane.xlu0 %5366 }
0x208c   :  { %v5368_v47 = vmul.f32 0.03125, %v5367_v41 }
0x208e   :  { %v5369_v55 = vsub.f32 %v5358_v16, %v5368_v47 }
0x2090   :  { %v5370_v57 = vmul.f32 %v5369_v55, %v5369_v55 }
0x2092   :  { %v5371_v39 = vsel %vm5364_vm5, %v5370_v57, 0.0 }
0x2093   :  { %5372 = vadd.xlane.f32.xlu1 %v5371_v39 }
0x211c   :  { %v5373_v34 = vpop.xlane.xlu1 %5372 }
0x211d   :  { %v5374_v42 = vmul.f32 0.03125, %v5373_v34 }
0x211f   :  { %v5375_v31 = vadd.f32 1e-12, %v5374_v42 }
0x2121   :  { %7068 = vrsqrt.f32 %v5375_v31 }
0x212e   :  { %v7069_v0 = vpop.eup %7068 }
0x212f   :  { %v5377_v1 = vmul.f32 %v7069_v0, %v5369_v55 }
0x2131   :  { %v5384_v8 = vmul.f32 %v5814_v29, %v5377_v1 }
0x2133   :  { %v5391_v49 = vadd.f32 %v5815_v50, %v5384_v8 }
0x2135   :  { %6788 = vmatmul.mubr.msk.f32.vlgmr.msra.gmra.mxu1 %vm193_vm1, %v5391_v49 }
0x21f5   :  { %v5472_v33 = vpop.f32.mrf.mxu1 }
0x21f6   :  { %v5473_v6 = vadd.f32 %v5816_v10, %v5472_v33 }
0x21f7   :  { %v6789_v43 = vpop.f32.mrf.mxu1 }
0x21f8   :  { %5477 = vst.msk [vmem:[#allocation3] sm:$0x3] %vm5476_vm6, %v5473_v6 }
0x21f9   :  { %7087 = shalt.err (!%p7084_p4)
}
0x21fa   :  { %5487 = dma.vmem_to_hbm [thread:$0]  %s5485_s7, 32, %s8929_s24, [#allocation4]  }
0x21fb   :  { %7096 = dma.done.wait [#allocation4], 32  }
0x21fc   :  { %7097 = vsyncadd [#allocation4], 4294967264 }
0x21fd   :  { %5491 = vsyncpa [#allocation4], 1 }

</bundles_post_ra>
